<compile_context>
chip_gen: v6e
topology: v6e:2x2x1
jax: 0.10.0
libtpu: 0.0.40
codegen_flags: <defaults>
</compile_context>

<pallas_src>
import functools

import jax
import jax.numpy as jnp
from jax.experimental import pallas as pl
from jax.experimental.pallas import tpu as pltpu

N_FEATURES = 100
N_OUT = 784
HIDDEN = (256, 512, 1024)

K_PAD = 128        # 100 padded up to one full lane tile
N_OUT_PAD = 896    # 784 padded up to 7 * 128


def _round_up(n, m):
    return ((n + m - 1) // m) * m


def _leaky_relu(x, slope=0.2):
    return jnp.where(x > 0, x, slope * x)


def _make_kernel(bf16_epilogue):
    def generator_kernel(x_ref,
                         w0_ref, b0_ref,
                         w1_ref, b1_ref,
                         w2_ref, b2_ref,
                         w3_ref, b3_ref,
                         out_ref):
        # hidden0: Linear(100->256) + LeakyReLU(0.2)   (bf16 matmul, f32 accum)
        h = jnp.dot(x_ref[...], w0_ref[...], preferred_element_type=jnp.float32)
        h = _leaky_relu(h + b0_ref[...])
        # hidden1: Linear(256->512) + LeakyReLU(0.2)
        h = jnp.dot(h.astype(jnp.bfloat16), w1_ref[...],
                    preferred_element_type=jnp.float32)
        h = _leaky_relu(h + b1_ref[...])
        # hidden2: Linear(512->1024) + LeakyReLU(0.2)
        h = jnp.dot(h.astype(jnp.bfloat16), w2_ref[...],
                    preferred_element_type=jnp.float32)
        h = _leaky_relu(h + b2_ref[...])
        # out: Linear(1024->784[padded 896]) + Tanh
        h = jnp.dot(h.astype(jnp.bfloat16), w3_ref[...],
                    preferred_element_type=jnp.float32)
        h = h + b3_ref[...]
        if bf16_epilogue:
            # Halves EUP (tanh) occupancy on v6e/v7x; keep False on v5e.
            h = h.astype(jnp.bfloat16)
        out_ref[...] = jnp.tanh(h).astype(out_ref.dtype)

    return generator_kernel


def _choose_tm(B, max_tile):
    """Pick the batch tile: large, low pad waste, >=2 grid steps when possible."""
    if B <= 16:
        return 16
    if B <= 2 * max_tile:
        # Split into two tiles so both TensorCores (v7x) get work.
        half = -(-B // 2)
        return min(_round_up(half, 16), max_tile)
    # Large batch: sweep TM candidates (multiples of 128) and minimize padding.
    best_tm = max_tile
    best_pad = _round_up(B, max_tile) - B
    for tm in range(max_tile, 255, -128):
        pad = _round_up(B, tm) - B
        if pad < best_pad:
            best_tm, best_pad = tm, pad
    return best_tm


def prepare_params(params):
    """One-time cast/pad of the weights (hoisted out of the per-call path).

    params: list of (W, b); W (in, out) f32, b (1, out) f32.
    Returns a flat tuple of bf16 padded weights and f32 biases.
    """
    (w0, b0), (w1, b1), (w2, b2), (w3, b3) = params
    w0_p = jnp.pad(w0.astype(jnp.bfloat16), ((0, K_PAD - N_FEATURES), (0, 0)))
    w1_p = w1.astype(jnp.bfloat16)
    w2_p = w2.astype(jnp.bfloat16)
    w3_p = jnp.pad(w3.astype(jnp.bfloat16), ((0, 0), (0, N_OUT_PAD - N_OUT)))
    b3_p = jnp.pad(b3, ((0, 0), (0, N_OUT_PAD - N_OUT)))
    return (w0_p, b0, w1_p, b1, w2_p, b2, w3_p, b3_p)


def generator_forward(x, prepared, *, max_tile=512,
                      out_dtype=jnp.float32, bf16_epilogue=False):
    """x: (B, 100) float32. prepared: output of prepare_params()."""
    B = x.shape[0]
    TM = _choose_tm(B, max_tile)
    B_pad = _round_up(B, TM)

    w0, b0, w1, b1, w2, b2, w3, b3 = prepared

    # Only the activation is padded/cast per call; weights were prepared once.
    x_p = jnp.pad(x.astype(jnp.bfloat16),
                  ((0, B_pad - B), (0, K_PAD - N_FEATURES)))

    grid = (B_pad // TM,)

    def resident(shape):
        # Constant block index -> DMA'd once, VMEM-resident across the grid.
        # Single-buffered: double-buffering a constant block wastes VMEM.
        return pl.BlockSpec(shape, lambda i: (0, 0),
                            pipeline_mode=pl.Buffered(1))

    in_specs = [
        pl.BlockSpec((TM, K_PAD), lambda i: (i, 0)),          # x tile
        resident((K_PAD, HIDDEN[0])), resident((1, HIDDEN[0])),
        resident((HIDDEN[0], HIDDEN[1])), resident((1, HIDDEN[1])),
        resident((HIDDEN[1], HIDDEN[2])), resident((1, HIDDEN[2])),
        resident((HIDDEN[2], N_OUT_PAD)), resident((1, N_OUT_PAD)),
    ]
    out_spec = pl.BlockSpec((TM, N_OUT_PAD), lambda i: (i, 0))

    out = pl.pallas_call(
        _make_kernel(bf16_epilogue),
        out_shape=jax.ShapeDtypeStruct((B_pad, N_OUT_PAD), out_dtype),
        grid_spec=pltpu.PrefetchScalarGridSpec(
            num_scalar_prefetch=0,
            grid=grid,
            in_specs=in_specs,
            out_specs=out_spec,
        ),
        compiler_params=pltpu.CompilerParams(
            dimension_semantics=("parallel",),
            vmem_limit_bytes=48 << 20,   # <= v7x physical 64 MiB; plenty for TM=512
        ),
    )(x_p, w0, b0, w1, b1, w2, b2, w3, b3)

    return out[:B, :N_OUT]


def init_params(key):
    """Deterministic init mimicking PyTorch nn.Linear (uniform +/- 1/sqrt(fan_in))."""
    dims = (N_FEATURES,) + HIDDEN + (N_OUT,)
    params = []
    for i in range(len(dims) - 1):
        fan_in, fan_out = dims[i], dims[i + 1]
        key, kw, kb = jax.random.split(key, 3)
        bound = 1.0 / jnp.sqrt(fan_in)
        w = jax.random.uniform(kw, (fan_in, fan_out), jnp.float32, -bound, bound)
        b = jax.random.uniform(kb, (1, fan_out), jnp.float32, -bound, bound)
        params.append((w, b))
    return params


def reference_forward(x, params):
    h = x
    for i, (w, b) in enumerate(params):
        h = h @ w + b
        if i < len(params) - 1:
            h = jnp.where(h > 0, h, 0.2 * h)
        else:
            h = jnp.tanh(h)
    return h


if __name__ == "__main__":
    key = jax.random.PRNGKey(0)
    key, kx = jax.random.split(key)
    B = 8
    x = jax.random.normal(kx, (B, N_FEATURES), jnp.float32)
    params = init_params(key)

    # One-time weight cast/pad (hoisted out of the forward hot path).
    prepared = prepare_params(params)
    prepared = jax.tree_util.tree_map(jax.block_until_ready, prepared)

    fwd = jax.jit(functools.partial(generator_forward, max_tile=512))
    out = jax.block_until_ready(fwd(x, prepared))

    ref = reference_forward(x, params)
    assert out.shape == (B, N_OUT), out.shape
    # bf16 weights/activations on the MXU -> relaxed tolerance vs f32 reference.
    assert jnp.allclose(out, ref, atol=2e-2, rtol=2e-2), float(
        jnp.max(jnp.abs(out - ref)))

    print("KERNEL_OK")
</pallas_src>

<mosaic_0001>
module attributes {stable_mosaic.version = 11 : i64} {
  func.func @generator_kernel(%arg0: i32, %arg1: memref<16x128xbf16, #tpu.memory_space<vmem>>, %arg2: memref<128x256xbf16, #tpu.memory_space<vmem>>, %arg3: memref<1x256xf32, #tpu.memory_space<vmem>>, %arg4: memref<256x512xbf16, #tpu.memory_space<vmem>>, %arg5: memref<1x512xf32, #tpu.memory_space<vmem>>, %arg6: memref<512x1024xbf16, #tpu.memory_space<vmem>>, %arg7: memref<1x1024xf32, #tpu.memory_space<vmem>>, %arg8: memref<1024x896xbf16, #tpu.memory_space<vmem>>, %arg9: memref<1x896xf32, #tpu.memory_space<vmem>>, %arg10: memref<16x896xf32, #tpu.memory_space<vmem>>) attributes {dimension_semantics = [#tpu.dimension_semantics<parallel>], iteration_bounds = array<i64: 1>, scalar_prefetch = 0 : i64, scratch_operands = 0 : i64, tpu.core_type = #tpu.core_type<tc>, window_params = [{transform_indices = @transform_0, window_bounds = array<i64: 16, 128>}, {pipeline_mode = #tpu.pipeline_mode<synchronous>, transform_indices = @transform_1, window_bounds = array<i64: 128, 256>}, {pipeline_mode = #tpu.pipeline_mode<synchronous>, transform_indices = @transform_2, window_bounds = array<i64: 1, 256>}, {pipeline_mode = #tpu.pipeline_mode<synchronous>, transform_indices = @transform_3, window_bounds = array<i64: 256, 512>}, {pipeline_mode = #tpu.pipeline_mode<synchronous>, transform_indices = @transform_4, window_bounds = array<i64: 1, 512>}, {pipeline_mode = #tpu.pipeline_mode<synchronous>, transform_indices = @transform_5, window_bounds = array<i64: 512, 1024>}, {pipeline_mode = #tpu.pipeline_mode<synchronous>, transform_indices = @transform_6, window_bounds = array<i64: 1, 1024>}, {pipeline_mode = #tpu.pipeline_mode<synchronous>, transform_indices = @transform_7, window_bounds = array<i64: 1024, 896>}, {pipeline_mode = #tpu.pipeline_mode<synchronous>, transform_indices = @transform_8, window_bounds = array<i64: 1, 896>}, {transform_indices = @transform_9, window_bounds = array<i64: 16, 896>}]} {
    %c0 = arith.constant 0 : index
    %c0_0 = arith.constant 0 : index
    %0 = vector.load %arg1[%c0, %c0_0] : memref<16x128xbf16, #tpu.memory_space<vmem>>, vector<16x128xbf16>
    %c0_1 = arith.constant 0 : index
    %c0_2 = arith.constant 0 : index
    %1 = vector.load %arg2[%c0_1, %c0_2] : memref<128x256xbf16, #tpu.memory_space<vmem>>, vector<128x256xbf16>
    %cst = arith.constant dense<0.000000e+00> : vector<16x256xf32>
    %2 = tpu.matmul %0, %1, %cst {dimension_numbers = #tpu.dot_dimension_numbers<[1], [0], [0], [1], [0, 0, 1, 1], [], []>} : vector<16x128xbf16>, vector<128x256xbf16>, vector<16x256xf32> -> vector<16x256xf32>
    %c0_3 = arith.constant 0 : index
    %c0_4 = arith.constant 0 : index
    %3 = vector.load %arg3[%c0_3, %c0_4] : memref<1x256xf32, #tpu.memory_space<vmem>>, vector<1x256xf32>
    %4 = vector.broadcast %3 : vector<1x256xf32> to vector<16x256xf32>
    %5 = arith.addf %2, %4 : vector<16x256xf32>
    %cst_5 = arith.constant 0.000000e+00 : f32
    %6 = vector.broadcast %cst_5 : f32 to vector<16x256xf32>
    %7 = arith.cmpf ogt, %5, %6 : vector<16x256xf32>
    %cst_6 = arith.constant 2.000000e-01 : f32
    %8 = vector.broadcast %cst_6 : f32 to vector<16x256xf32>
    %9 = arith.mulf %8, %5 : vector<16x256xf32>
    %10 = arith.select %7, %5, %9 : vector<16x256xi1>, vector<16x256xf32>
    %11 = arith.truncf %10 : vector<16x256xf32> to vector<16x256xbf16>
    %c0_7 = arith.constant 0 : index
    %c0_8 = arith.constant 0 : index
    %12 = vector.load %arg4[%c0_7, %c0_8] : memref<256x512xbf16, #tpu.memory_space<vmem>>, vector<256x512xbf16>
    %cst_9 = arith.constant dense<0.000000e+00> : vector<16x512xf32>
    %13 = tpu.matmul %11, %12, %cst_9 {dimension_numbers = #tpu.dot_dimension_numbers<[1], [0], [0], [1], [0, 0, 1, 1], [], []>} : vector<16x256xbf16>, vector<256x512xbf16>, vector<16x512xf32> -> vector<16x512xf32>
    %c0_10 = arith.constant 0 : index
    %c0_11 = arith.constant 0 : index
    %14 = vector.load %arg5[%c0_10, %c0_11] : memref<1x512xf32, #tpu.memory_space<vmem>>, vector<1x512xf32>
    %15 = vector.broadcast %14 : vector<1x512xf32> to vector<16x512xf32>
    %16 = arith.addf %13, %15 : vector<16x512xf32>
    %cst_12 = arith.constant 0.000000e+00 : f32
    %17 = vector.broadcast %cst_12 : f32 to vector<16x512xf32>
    %18 = arith.cmpf ogt, %16, %17 : vector<16x512xf32>
    %cst_13 = arith.constant 2.000000e-01 : f32
    %19 = vector.broadcast %cst_13 : f32 to vector<16x512xf32>
    %20 = arith.mulf %19, %16 : vector<16x512xf32>
    %21 = arith.select %18, %16, %20 : vector<16x512xi1>, vector<16x512xf32>
    %22 = arith.truncf %21 : vector<16x512xf32> to vector<16x512xbf16>
    %c0_14 = arith.constant 0 : index
    %c0_15 = arith.constant 0 : index
    %23 = vector.load %arg6[%c0_14, %c0_15] : memref<512x1024xbf16, #tpu.memory_space<vmem>>, vector<512x1024xbf16>
    %cst_16 = arith.constant dense<0.000000e+00> : vector<16x1024xf32>
    %24 = tpu.matmul %22, %23, %cst_16 {dimension_numbers = #tpu.dot_dimension_numbers<[1], [0], [0], [1], [0, 0, 1, 1], [], []>} : vector<16x512xbf16>, vector<512x1024xbf16>, vector<16x1024xf32> -> vector<16x1024xf32>
    %c0_17 = arith.constant 0 : index
    %c0_18 = arith.constant 0 : index
    %25 = vector.load %arg7[%c0_17, %c0_18] : memref<1x1024xf32, #tpu.memory_space<vmem>>, vector<1x1024xf32>
    %26 = vector.broadcast %25 : vector<1x1024xf32> to vector<16x1024xf32>
    %27 = arith.addf %24, %26 : vector<16x1024xf32>
    %cst_19 = arith.constant 0.000000e+00 : f32
    %28 = vector.broadcast %cst_19 : f32 to vector<16x1024xf32>
    %29 = arith.cmpf ogt, %27, %28 : vector<16x1024xf32>
    %cst_20 = arith.constant 2.000000e-01 : f32
    %30 = vector.broadcast %cst_20 : f32 to vector<16x1024xf32>
    %31 = arith.mulf %30, %27 : vector<16x1024xf32>
    %32 = arith.select %29, %27, %31 : vector<16x1024xi1>, vector<16x1024xf32>
    %33 = arith.truncf %32 : vector<16x1024xf32> to vector<16x1024xbf16>
    %c0_21 = arith.constant 0 : index
    %c0_22 = arith.constant 0 : index
    %34 = vector.load %arg8[%c0_21, %c0_22] : memref<1024x896xbf16, #tpu.memory_space<vmem>>, vector<1024x896xbf16>
    %cst_23 = arith.constant dense<0.000000e+00> : vector<16x896xf32>
    %35 = tpu.matmul %33, %34, %cst_23 {dimension_numbers = #tpu.dot_dimension_numbers<[1], [0], [0], [1], [0, 0, 1, 1], [], []>} : vector<16x1024xbf16>, vector<1024x896xbf16>, vector<16x896xf32> -> vector<16x896xf32>
    %c0_24 = arith.constant 0 : index
    %c0_25 = arith.constant 0 : index
    %36 = vector.load %arg9[%c0_24, %c0_25] : memref<1x896xf32, #tpu.memory_space<vmem>>, vector<1x896xf32>
    %37 = vector.broadcast %36 : vector<1x896xf32> to vector<16x896xf32>
    %38 = arith.addf %35, %37 : vector<16x896xf32>
    %39 = math.tanh %38 : vector<16x896xf32>
    %c0_26 = arith.constant 0 : index
    %c0_27 = arith.constant 0 : index
    %40 = vector.load %arg10[%c0_26, %c0_27] : memref<16x896xf32, #tpu.memory_space<vmem>>, vector<16x896xf32>
    tpu.vector_store %arg10[%c0_26, %c0_27], %39 {strides = array<i32>} : memref<16x896xf32, #tpu.memory_space<vmem>>, vector<16x896xf32>,
    return
  }
  func.func @transform_0(%arg0: i32) -> (i32, i32) {
    %c0_i32 = arith.constant 0 : i32
    %c0_i32_0 = arith.constant 0 : i32
    return %arg0, %c0_i32 : i32, i32
  }
  func.func @transform_1(%arg0: i32) -> (i32, i32) {
    %c0_i32 = arith.constant 0 : i32
    %c0_i32_0 = arith.constant 0 : i32
    %c0_i32_1 = arith.constant 0 : i32
    return %c0_i32, %c0_i32_0 : i32, i32
  }
  func.func @transform_2(%arg0: i32) -> (i32, i32) {
    %c0_i32 = arith.constant 0 : i32
    %c0_i32_0 = arith.constant 0 : i32
    %c0_i32_1 = arith.constant 0 : i32
    return %c0_i32, %c0_i32_0 : i32, i32
  }
  func.func @transform_3(%arg0: i32) -> (i32, i32) {
    %c0_i32 = arith.constant 0 : i32
    %c0_i32_0 = arith.constant 0 : i32
    %c0_i32_1 = arith.constant 0 : i32
    return %c0_i32, %c0_i32_0 : i32, i32
  }
  func.func @transform_4(%arg0: i32) -> (i32, i32) {
    %c0_i32 = arith.constant 0 : i32
    %c0_i32_0 = arith.constant 0 : i32
    %c0_i32_1 = arith.constant 0 : i32
    return %c0_i32, %c0_i32_0 : i32, i32
  }
  func.func @transform_5(%arg0: i32) -> (i32, i32) {
    %c0_i32 = arith.constant 0 : i32
    %c0_i32_0 = arith.constant 0 : i32
    %c0_i32_1 = arith.constant 0 : i32
    return %c0_i32, %c0_i32_0 : i32, i32
  }
  func.func @transform_6(%arg0: i32) -> (i32, i32) {
    %c0_i32 = arith.constant 0 : i32
    %c0_i32_0 = arith.constant 0 : i32
    %c0_i32_1 = arith.constant 0 : i32
    return %c0_i32, %c0_i32_0 : i32, i32
  }
  func.func @transform_7(%arg0: i32) -> (i32, i32) {
    %c0_i32 = arith.constant 0 : i32
    %c0_i32_0 = arith.constant 0 : i32
    %c0_i32_1 = arith.constant 0 : i32
    return %c0_i32, %c0_i32_0 : i32, i32
  }
  func.func @transform_8(%arg0: i32) -> (i32, i32) {
    %c0_i32 = arith.constant 0 : i32
    %c0_i32_0 = arith.constant 0 : i32
    %c0_i32_1 = arith.constant 0 : i32
    return %c0_i32, %c0_i32_0 : i32, i32
  }
  func.func @transform_9(%arg0: i32) -> (i32, i32) {
    %c0_i32 = arith.constant 0 : i32
    %c0_i32_0 = arith.constant 0 : i32
    return %arg0, %c0_i32 : i32, i32
  }
}

</mosaic_0001>

<bundles_post_ra>
// kernel: generator_forward.1
= control target key start
LH: loop header
LB: loop body
LE: loop exit
PB: predicated region body
PF: predicated region fallthrough
CT: control target
= control target key end

     0   :  { %14 = vsyncpa [#allocation3], 0  ;;  %s8530_s0 = inlined_call_operand.vmem [shape: bf16[16,128], index: 0, kind: input, shape index: {}]   ;;  %s8531_s1 = inlined_call_operand.hbm [shape: bf16[128,256], index: 1, kind: input, shape index: {}]   ;;  %s8532_s2 = inlined_call_operand.hbm [shape: f32[1,256], index: 2, kind: input, shape index: {}]   ;;  %s8533_s3 = inlined_call_operand.hbm [shape: bf16[256,512], index: 3, kind: input, shape index: {}]   ;;  %s8534_s4 = inlined_call_operand.hbm [shape: f32[1,512], index: 4, kind: input, shape index: {}]   ;;  %s8535_s5 = inlined_call_operand.hbm [shape: bf16[512,1024], index: 5, kind: input, shape index: {}]   ;;  %s8536_s6 = inlined_call_operand.hbm [shape: f32[1,1024], index: 6, kind: input, shape index: {}]   ;;  %s8537_s7 = inlined_call_operand.hbm [shape: bf16[1024,896], index: 7, kind: input, shape index: {}]   ;;  %s8538_s8 = inlined_call_operand.hbm [shape: f32[1,896], index: 8, kind: input, shape index: {}]   ;;  %s8539_s9 = inlined_call_operand.vmem [shape: f32[16,896], index: 9, kind: output, shape index: {}]  }
   0x1   :  { %15 = vsyncpa [#allocation5], 0 }
   0x2   :  { %16 = vsyncpa [#allocation8], 0 }
   0x3   :  { %17 = vsyncpa [#allocation11], 0 }
   0x4   :  { %18 = vsyncpa [#allocation14], 0  ;;  %s8224_s30 = smov [#allocation4]   ;;  %s8225_s11 = smov [#allocation7]  }
   0x5   :  { %s39_s10 = sshll.u32 %s8224_s30, 4  ;;  %s61_s12 = sshll.u32 %s8225_s11, 4  ;;  %s40_s10 = int_to_ptr.vmem [resolvable:$true] %s39_s10  ;;  %s62_s12 = int_to_ptr.vmem [resolvable:$true] %s61_s12 }
   0x6   :  { %s8062_s13 = scalar_lea.vmem %s40_s10, 32  ;;  %p8067_p1 = scmp.lt.s32.totalorder %s40_s10, %s40_s10 }
   0x7   :  { %p8063_p0 = scmp.ne.s32.totalorder %s40_s10, %s8062_s13  ;;  %p8068_p2 = scmp.lt.s32.totalorder %s8062_s13, %s8062_s13 }
   0x9   :  { %p8069_p3 = por %p8068_p2, %p8067_p1 }
   0xb   :  { %p8070_p4 = pnand %p8069_p3, %p8063_p0 }
   0xd   :  { %8073 = shalt.err (!%p8070_p4)
}
   0xe   :  { %42 = dma.hbm_to_vmem [thread:$0]  %s8532_s2, 32, %s40_s10, [#allocation5]  }
   0xf   :  { %s8082_s16 = scalar_lea.vmem %s62_s12, 64  ;;  %p8087_p6 = scmp.lt.s32.totalorder %s62_s12, %s62_s12 }
  0x10   :  { %p8083_p5 = scmp.ne.s32.totalorder %s62_s12, %s8082_s16  ;;  %p8088_p7 = scmp.lt.s32.totalorder %s8082_s16, %s8082_s16 }
  0x12   :  { %p8089_p8 = por %p8088_p7, %p8087_p6 }
  0x14   :  { %p8090_p9 = pnand %p8089_p8, %p8083_p5 }
  0x16   :  { %8093 = shalt.err (!%p8090_p9)
}
  0x17   :  { %64 = dma.hbm_to_vmem [thread:$0]  %s8534_s4, 64, %s62_s12, [#allocation8]  }
  0x18   :  { %s8226_s19 = smov [#allocation10]   ;;  %s8227_s21 = smov [#allocation2]  }
  0x19   :  { %s83_s20 = sshll.u32 %s8226_s19, 4  ;;  %s26_s22 = sshll.u32 %s8227_s21, 4  ;;  %s84_s20 = int_to_ptr.vmem [resolvable:$true] %s83_s20  ;;  %s27_s22 = int_to_ptr.vmem [resolvable:$true] %s26_s22 }
  0x1a   :  { %s8102_s23 = scalar_lea.vmem %s84_s20, 128  ;;  %p8107_p11 = scmp.lt.s32.totalorder %s84_s20, %s84_s20 }
  0x1b   :  { %p8103_p10 = scmp.ne.s32.totalorder %s84_s20, %s8102_s23  ;;  %p8108_p12 = scmp.lt.s32.totalorder %s8102_s23, %s8102_s23 }
  0x1d   :  { %p8109_p13 = por %p8108_p12, %p8107_p11 }
  0x1f   :  { %p8110_p0 = pnand %p8109_p13, %p8103_p10 }
  0x21   :  { %8113 = shalt.err (!%p8110_p0)
}
  0x22   :  { %86 = dma.hbm_to_vmem [thread:$0]  %s8536_s6, 128, %s84_s20, [#allocation11]  }
  0x23   :  { %s8122_s25 = scalar_lea.vmem %s27_s22, 2048  ;;  %p8127_p2 = scmp.lt.s32.totalorder %s27_s22, %s27_s22 }
  0x24   :  { %p8123_p1 = scmp.ne.s32.totalorder %s27_s22, %s8122_s25  ;;  %p8128_p3 = scmp.lt.s32.totalorder %s8122_s25, %s8122_s25 }
  0x26   :  { %p8129_p4 = por %p8128_p3, %p8127_p2 }
  0x28   :  { %p8130_p5 = pnand %p8129_p4, %p8123_p1 }
  0x2a   :  { %8133 = shalt.err (!%p8130_p5)
}
  0x2b   :  { %s8228_s4 = smov 128   ;;  %s8229_s26 = smov 8  }
  0x2c   :  { %32 = dma.hbm_to_vmem [thread:$0]  %s8531_s1, 2048, %s27_s22, [#allocation3], %s8228_s4, %s8228_s4, %s8229_s26  }
  0x2d   :  { %s8230_s29 = smov [#allocation6]  }
  0x2e   :  { %s48_s30 = sshll.u32 %s8230_s29, 4  ;;  %s49_s30 = int_to_ptr.vmem [resolvable:$true] %s48_s30 }
  0x2f   :  { %s8142_s10 = scalar_lea.vmem %s49_s30, 8192  ;;  %p8147_p7 = scmp.lt.s32.totalorder %s49_s30, %s49_s30 }
  0x30   :  { %p8143_p6 = scmp.ne.s32.totalorder %s49_s30, %s8142_s10  ;;  %p8148_p8 = scmp.lt.s32.totalorder %s8142_s10, %s8142_s10 }
  0x32   :  { %p8149_p9 = por %p8148_p8, %p8147_p7 }
  0x34   :  { %p8150_p10 = pnand %p8149_p9, %p8143_p6 }
  0x36   :  { %8153 = shalt.err (!%p8150_p10)
}
  0x37   :  { %s8231_s6 = smov 256   ;;  %s8232_s11 = smov 16  }
  0x38   :  { %54 = dma.hbm_to_vmem [thread:$0]  %s8533_s3, 8192, %s49_s30, [#allocation5], %s8231_s6, %s8231_s6, %s8232_s11  }
  0x39   :  { %s8233_s14 = smov [#allocation9]  }
  0x3a   :  { %s70_s15 = sshll.u32 %s8233_s14, 4  ;;  %s71_s15 = int_to_ptr.vmem [resolvable:$true] %s70_s15 }
  0x3b   :  { %s8162_s1 = scalar_lea.vmem %s71_s15, 32768  ;;  %p8167_p12 = scmp.lt.s32.totalorder %s71_s15, %s71_s15 }
  0x3c   :  { %p8163_p11 = scmp.ne.s32.totalorder %s71_s15, %s8162_s1  ;;  %p8168_p13 = scmp.lt.s32.totalorder %s8162_s1, %s8162_s1 }
  0x3e   :  { %p8169_p0 = por %p8168_p13, %p8167_p12 }
  0x40   :  { %p8170_p1 = pnand %p8169_p0, %p8163_p11 }
  0x42   :  { %8173 = shalt.err (!%p8170_p1)
}
  0x43   :  { %s8234_s16 = smov 512   ;;  %s8235_s17 = smov 32  }
  0x44   :  { %76 = dma.hbm_to_vmem [thread:$0]  %s8535_s5, 32768, %s71_s15, [#allocation8], %s8234_s16, %s8234_s16, %s8235_s17  }
  0x45   :  { %s8236_s20 = smov [#allocation12]  }
  0x46   :  { %s92_s21 = sshll.u32 %s8236_s20, 4  ;;  %s93_s21 = int_to_ptr.vmem [resolvable:$true] %s92_s21 }
  0x47   :  { %s8182_s3 = scalar_lea.vmem %s93_s21, 57344  ;;  %p8187_p3 = scmp.lt.s32.totalorder %s93_s21, %s93_s21 }
  0x48   :  { %p8183_p2 = scmp.ne.s32.totalorder %s93_s21, %s8182_s3  ;;  %p8188_p4 = scmp.lt.s32.totalorder %s8182_s3, %s8182_s3 }
  0x4a   :  { %p8189_p5 = por %p8188_p4, %p8187_p3 }
  0x4c   :  { %p8190_p6 = pnand %p8189_p5, %p8183_p2 }
  0x4e   :  { %8193 = shalt.err (!%p8190_p6)
}
  0x4f   :  { %s8237_s22 = smov 448   ;;  %s8238_s23 = smov 28  }
  0x50   :  { %98 = dma.hbm_to_vmem [thread:$0]  %s8537_s7, 57344, %s93_s21, [#allocation11], %s8237_s22, %s8237_s22, %s8238_s23  }
  0x51   :  { %s8239_s25 = smov [#allocation13]  }
  0x52   :  { %s105_s4 = sshll.u32 %s8239_s25, 4  ;;  %s106_s4 = int_to_ptr.vmem [resolvable:$true] %s105_s4 }
  0x53   :  { %s8202_s5 = scalar_lea.vmem %s106_s4, 112  ;;  %s8206_s26 = scalar_lea.vmem %s106_s4, 128 }
  0x54   :  { %p8203_p7 = scmp.ne.s32.totalorder %s106_s4, %s8202_s5  ;;  %p8207_p8 = scmp.lt.s32.totalorder %s106_s4, %s106_s4 }
  0x55   :  { %p8208_p9 = scmp.lt.s32.totalorder %s8206_s26, %s8202_s5 }
  0x57   :  { %p8209_p10 = por %p8208_p9, %p8207_p8 }
  0x59   :  { %p8210_p11 = pnand %p8209_p10, %p8203_p7 }
  0x5b   :  { %8213 = shalt.err (!%p8210_p11)
}
  0x5c   :  { %108 = dma.hbm_to_vmem [thread:$0]  %s8538_s8, 112, %s106_s4, [#allocation14]  }
  0x5d   :  { %8214 = dma.done.wait [#allocation3], 2048  }
  0x5e   :  { %8215 = vsyncadd [#allocation3], 4294965248 }
  0x5f   :  { %8216 = dma.done.wait [#allocation5], 8224  }
  0x60   :  { %8217 = vsyncadd [#allocation5], 4294959072 }
  0x61   :  { %8218 = dma.done.wait [#allocation8], 32832  }
  0x62   :  { %8219 = vsyncadd [#allocation8], 4294934464 }
  0x63   :  { %8220 = dma.done.wait [#allocation11], 57472  }
  0x64   :  { %8221 = vsyncadd [#allocation11], 4294909824 }
  0x65   :  { %8222 = dma.done.wait [#allocation14], 112  }
  0x66   :  { %8223 = vsyncadd [#allocation14], 4294967184  ;;  %v8240_v0 = vmov 0   ;;  %v7265_v1 = vld [vmem:[#allocation2 + $0x74] ss:$8 sps:$4 sm:$0xff]   ;;  %v7289_v29 = vld [vmem:[%s8530_s0] sm:$0xff]  }
  0x67   :  { %282 = vmatprep.mubr.bf16.mxu0 %v8240_v0  ;;  %v7267_v2 = vld [vmem:[#allocation2 + $0x70] ss:$8 sps:$4 sm:$0xff]   ;;  %250 = vmatprep.subr.bf16.mxu0 %v7265_v1  ;;  %v7268_v3 = vld [vmem:[#allocation2 + $0x64] ss:$8 sps:$4 sm:$0xff]   ;;  %v7270_v4 = vld [vmem:[#allocation2 + $0x60] ss:$8 sps:$4 sm:$0xff]  }
  0x68   :  { %251 = vmatpush1.bf16.msra.mxu0 %v7267_v2  ;;  %v7271_v5 = vld [vmem:[#allocation2 + $0x54] ss:$8 sps:$4 sm:$0xff]   ;;  %v7273_v6 = vld [vmem:[#allocation2 + $0x50] ss:$8 sps:$4 sm:$0xff]   ;;  %v7274_v7 = vld [vmem:[#allocation2 + $0x44] ss:$8 sps:$4 sm:$0xff]  }
  0x69   :  { %252 = vmatprep.subr.bf16.mxu0 %v7268_v3  ;;  %v7276_v8 = vld [vmem:[#allocation2 + $0x40] ss:$8 sps:$4 sm:$0xff]   ;;  %v7277_v9 = vld [vmem:[#allocation2 + $0x34] ss:$8 sps:$4 sm:$0xff]   ;;  %v7279_v11 = vld [vmem:[#allocation2 + $0x30] ss:$8 sps:$4 sm:$0xff]  }
  0x6a   :  { %v7290_v10 = vld [vmem:[#allocation6 + $0xe4] ss:$16 sps:$4 sm:$0xff]   ;;  %v7295_v12 = vld [vmem:[#allocation6 + $0xe0] ss:$16 sps:$4 sm:$0xff]   ;;  %v7294_v26 = vld [vmem:[#allocation6 + $0xec] ss:$16 sps:$4 sm:$0xff]  }
  0x6b   :  { %713 = vmatprep.subr.bf16.mxu1 %v7290_v10  ;;  %v7296_v13 = vld [vmem:[#allocation6 + $0xc4] ss:$16 sps:$4 sm:$0xff]   ;;  %v7301_v15 = vld [vmem:[#allocation6 + $0xc0] ss:$16 sps:$4 sm:$0xff]   ;;  %v7292_v30 = vld [vmem:[#allocation6 + $0xe8] ss:$16 sps:$4 sm:$0xff]  }
  0x6c   :  { %253 = vmatpush1.bf16.msra.mxu0 %v7270_v4  ;;  %v7280_v14 = vld [vmem:[#allocation2 + $0x24] ss:$8 sps:$4 sm:$0xff]   ;;  %714 = vmatpush1.bf16.msra.mxu1 %v7295_v12  ;;  %v7282_v17 = vld [vmem:[#allocation2 + $0x20] ss:$8 sps:$4 sm:$0xff]   ;;  %v7283_v18 = vld [vmem:[#allocation2 + $0x14] ss:$8 sps:$4 sm:$0xff]  }
  0x6d   :  { %254 = vmatprep.subr.bf16.mxu0 %v7271_v5  ;;  %715 = vmatprep.subr.bf16.mxu1 %v7296_v13  ;;  %v7302_v16 = vld [vmem:[#allocation6 + $0xa4] ss:$16 sps:$4 sm:$0xff]   ;;  %v7307_v19 = vld [vmem:[#allocation6 + $0xa0] ss:$16 sps:$4 sm:$0xff]   ;;  %v7300_v31 = vld [vmem:[#allocation6 + $0xcc] ss:$16 sps:$4 sm:$0xff]  }
  0x6e   :  { %v7308_v20 = vld [vmem:[#allocation6 + $0x84] ss:$16 sps:$4 sm:$0xff]   ;;  %v7313_v23 = vld [vmem:[#allocation6 + $0x80] ss:$16 sps:$4 sm:$0xff]   ;;  %v7298_v34 = vld [vmem:[#allocation6 + $0xc8] ss:$16 sps:$4 sm:$0xff]  }
  0x6f   :  { %v7285_v21 = vld [vmem:[#allocation2 + $0x10] ss:$8 sps:$4 sm:$0xff]   ;;  %v7286_v22 = vld [vmem:[#allocation2 + $0x4] ss:$8 sps:$4 sm:$0xff]   ;;  %v7288_v25 = vld [vmem:[#allocation2] ss:$8 sps:$4 sm:$0xff]  }
  0x70   :  { %255 = vmatpush1.bf16.msra.mxu0 %v7273_v6  ;;  %716 = vmatpush1.bf16.msra.mxu1 %v7301_v15  ;;  %v7314_v24 = vld [vmem:[#allocation6 + $0x64] ss:$16 sps:$4 sm:$0xff]   ;;  %v7319_v27 = vld [vmem:[#allocation6 + $0x60] ss:$16 sps:$4 sm:$0xff]   ;;  %v7306_v35 = vld [vmem:[#allocation6 + $0xac] ss:$16 sps:$4 sm:$0xff]  }
  0x71   :  { %256 = vmatprep.subr.bf16.mxu0 %v7274_v7  ;;  %717 = vmatprep.subr.bf16.mxu1 %v7302_v16  ;;  %v7320_v28 = vld [vmem:[#allocation6 + $0x44] ss:$16 sps:$4 sm:$0xff]   ;;  %v7325_v32 = vld [vmem:[#allocation6 + $0x40] ss:$16 sps:$4 sm:$0xff]   ;;  %v7304_v38 = vld [vmem:[#allocation6 + $0xa8] ss:$16 sps:$4 sm:$0xff]  }
  0x72   :  { %v7326_v33 = vld [vmem:[#allocation6 + $0x24] ss:$16 sps:$4 sm:$0xff]   ;;  %v7331_v36 = vld [vmem:[#allocation6 + $0x20] ss:$16 sps:$4 sm:$0xff]   ;;  %v7312_v39 = vld [vmem:[#allocation6 + $0x8c] ss:$16 sps:$4 sm:$0xff]  }
  0x73   :  { %v7332_v37 = vld [vmem:[#allocation6 + $0x4] ss:$16 sps:$4 sm:$0xff]   ;;  %v7337_v40 = vld [vmem:[#allocation6] ss:$16 sps:$4 sm:$0xff]   ;;  %v7310_v42 = vld [vmem:[#allocation6 + $0x88] ss:$16 sps:$4 sm:$0xff]  }
  0x74   :  { %257 = vmatpush1.bf16.msra.mxu0 %v7276_v8  ;;  %718 = vmatpush1.bf16.msra.mxu1 %v7307_v19  ;;  %v7338_v41 = vld [vmem:[#allocation6 + $0x1e4] ss:$16 sps:$4 sm:$0xff]   ;;  %v7318_v43 = vld [vmem:[#allocation6 + $0x6c] ss:$16 sps:$4 sm:$0xff]   ;;  %v7343_v44 = vld [vmem:[#allocation6 + $0x1e0] ss:$16 sps:$4 sm:$0xff]  }
  0x75   :  { %258 = vmatprep.subr.bf16.mxu0 %v7277_v9  ;;  %719 = vmatprep.subr.bf16.mxu1 %v7308_v20  ;;  %v7316_v45 = vld [vmem:[#allocation6 + $0x68] ss:$16 sps:$4 sm:$0xff]   ;;  %v7344_v46 = vld [vmem:[#allocation6 + $0x1c4] ss:$16 sps:$4 sm:$0xff]   ;;  %v7324_v47 = vld [vmem:[#allocation6 + $0x4c] ss:$16 sps:$4 sm:$0xff]  }
  0x76   :  { %v7349_v48 = vld [vmem:[#allocation6 + $0x1c0] ss:$16 sps:$4 sm:$0xff]   ;;  %v7350_v49 = vld [vmem:[#allocation6 + $0x1a4] ss:$16 sps:$4 sm:$0xff]   ;;  %v7322_v50 = vld [vmem:[#allocation6 + $0x48] ss:$16 sps:$4 sm:$0xff]  }
  0x77   :  { %v7330_v51 = vld [vmem:[#allocation6 + $0x2c] ss:$16 sps:$4 sm:$0xff]   ;;  %v7355_v52 = vld [vmem:[#allocation6 + $0x1a0] ss:$16 sps:$4 sm:$0xff]   ;;  %v7356_v53 = vld [vmem:[#allocation6 + $0x184] ss:$16 sps:$4 sm:$0xff]  }
  0x78   :  { %259 = vmatpush1.bf16.msra.mxu0 %v7279_v11  ;;  %720 = vmatpush1.bf16.msra.mxu1 %v7313_v23  ;;  %v7328_v54 = vld [vmem:[#allocation6 + $0x28] ss:$16 sps:$4 sm:$0xff]   ;;  %v7336_v55 = vld [vmem:[#allocation6 + $0xc] ss:$16 sps:$4 sm:$0xff]   ;;  %v7361_v56 = vld [vmem:[#allocation6 + $0x180] ss:$16 sps:$4 sm:$0xff]  }
  0x79   :  { %260 = vmatprep.subr.bf16.mxu0 %v7280_v14  ;;  %721 = vmatprep.subr.bf16.mxu1 %v7314_v24  ;;  %v7362_v57 = vld [vmem:[#allocation6 + $0x164] ss:$16 sps:$4 sm:$0xff]   ;;  %v7334_v58 = vld [vmem:[#allocation6 + $0x8] ss:$16 sps:$4 sm:$0xff]   ;;  %v7342_v59 = vld [vmem:[#allocation6 + $0x1ec] ss:$16 sps:$4 sm:$0xff]  }
  0x7a   :  { %v7340_v60 = vld [vmem:[#allocation6 + $0x1e8] ss:$16 sps:$4 sm:$0xff]   ;;  %v7348_v61 = vld [vmem:[#allocation6 + $0x1cc] ss:$16 sps:$4 sm:$0xff]   ;;  %v7367_v5 = vld [vmem:[#allocation6 + $0x160] ss:$16 sps:$4 sm:$0xff]  }
  0x7b   :  { %v7346_v62 = vld [vmem:[#allocation6 + $0x1c8] ss:$16 sps:$4 sm:$0xff]   ;;  %v7354_v63 = vld [vmem:[#allocation6 + $0x1ac] ss:$16 sps:$4 sm:$0xff]   ;;  %v7368_v6 = vld [vmem:[#allocation6 + $0x144] ss:$16 sps:$4 sm:$0xff]  }
  0x7c   :  { %261 = vmatpush1.bf16.msra.mxu0 %v7282_v17  ;;  %722 = vmatpush1.bf16.msra.mxu1 %v7319_v27  ;;  %v7352_v0 = vld [vmem:[#allocation6 + $0x1a8] ss:$16 sps:$4 sm:$0xff]   ;;  %v7360_v1 = vld [vmem:[#allocation6 + $0x18c] ss:$16 sps:$4 sm:$0xff]   ;;  %v7373_v9 = vld [vmem:[#allocation6 + $0x140] ss:$16 sps:$4 sm:$0xff]  }
  0x7d   :  { %262 = vmatprep.subr.bf16.mxu0 %v7283_v18  ;;  %723 = vmatprep.subr.bf16.mxu1 %v7320_v28  ;;  %v7358_v2 = vld [vmem:[#allocation6 + $0x188] ss:$16 sps:$4 sm:$0xff]   ;;  %v7366_v3 = vld [vmem:[#allocation6 + $0x16c] ss:$16 sps:$4 sm:$0xff]   ;;  %v7374_v10 = vld [vmem:[#allocation6 + $0x124] ss:$16 sps:$4 sm:$0xff]  }
  0x7e   :  { %v7364_v4 = vld [vmem:[#allocation6 + $0x168] ss:$16 sps:$4 sm:$0xff]   ;;  %v7372_v7 = vld [vmem:[#allocation6 + $0x14c] ss:$16 sps:$4 sm:$0xff]   ;;  %v7379_v13 = vld [vmem:[#allocation6 + $0x120] ss:$16 sps:$4 sm:$0xff]  }
  0x7f   :  { %v7370_v8 = vld [vmem:[#allocation6 + $0x148] ss:$16 sps:$4 sm:$0xff]   ;;  %v7378_v11 = vld [vmem:[#allocation6 + $0x12c] ss:$16 sps:$4 sm:$0xff]   ;;  %v7380_v14 = vld [vmem:[#allocation6 + $0x104] ss:$16 sps:$4 sm:$0xff]  }
  0x80   :  { %263 = vmatpush1.bf16.msra.mxu0 %v7285_v21  ;;  %724 = vmatpush1.bf16.msra.mxu1 %v7325_v32  ;;  %v7376_v12 = vld [vmem:[#allocation6 + $0x128] ss:$16 sps:$4 sm:$0xff]   ;;  %v7384_v16 = vld [vmem:[#allocation6 + $0x10c] ss:$16 sps:$4 sm:$0xff]   ;;  %v7385_v17 = vld [vmem:[#allocation6 + $0x100] ss:$16 sps:$4 sm:$0xff]  }
  0x81   :  { %264 = vmatprep.subr.bf16.mxu0 %v7286_v22  ;;  %725 = vmatprep.subr.bf16.mxu1 %v7326_v33  ;;  %v7382_v15 = vld [vmem:[#allocation6 + $0x108] ss:$16 sps:$4 sm:$0xff]   ;;  %v152_v28 = vld [vmem:[#allocation4] sm:$0x3] }
  0x82   :  { %v883_v18 = vld [vmem:[#allocation9 + $0x1c0] sm:$0xff] }
  0x83   :  { %v887_v19 = vld [vmem:[#allocation9 + $0x1e0] sm:$0xff] }
  0x84   :  { %265 = vmatpush1.bf16.msra.mxu0 %v7288_v25  ;;  %726 = vmatpush1.bf16.msra.mxu1 %v7331_v36  ;;  %v1011_v20 = vld [vmem:[#allocation9 + $0x5c0] sm:$0xff]  ;;  %v6512_v21 = vcombine.low %v883_v18, %v887_v19  ;;  %v6513_v22 = vcombine.high %v883_v18, %v887_v19 }
  0x85   :  { %756 = vmatprep.subr.bf16.mxu0 %v7294_v26  ;;  %727 = vmatprep.subr.bf16.mxu1 %v7332_v37  ;;  %v1015_v23 = vld [vmem:[#allocation9 + $0x5e0] sm:$0xff]  ;;  %v154_v26 = vlaneseq }
  0x86   :  { %v6640_v24 = vcombine.low %v1011_v20, %v1015_v23  ;;  %v6641_v25 = vcombine.high %v1011_v20, %v1015_v23  ;;  %v847_v18 = vld [vmem:[#allocation9 + $0xa0] sm:$0xff] }
  0x87   :  { %283 = vmatmul.mubr.bf16.vlgmr.msra.gmra.mxu0 %v7289_v29  ;;  %v8318_v27 = vshrl.u32 %v154_v26, 7  ;;  %v971_v19 = vld [vmem:[#allocation9 + $0x480] sm:$0xff] }
  0x88   :  { %757 = vmatpush1.bf16.msra.mxu0 %v7292_v30  ;;  %728 = vmatpush1.bf16.msra.mxu1 %v7337_v40  ;;  %v975_v20 = vld [vmem:[#allocation9 + $0x4a0] sm:$0xff] }
  0x89   :  { %758 = vmatprep.subr.bf16.mxu0 %v7300_v31  ;;  %729 = vmatprep.subr.bf16.mxu1 %v7338_v41  ;;  %v8321_v29 = vsub.s32 0, %v8318_v27  ;;  %v8324_v30 = vsub.s32 1, %v8318_v27  ;;  %v839_v26 = vld [vmem:[#allocation9 + $0x60] sm:$0xff] }
  0x8b   :  { %v157_v31 = vrot.slane %v152_v28, %v8321_v29  ;;  %v161_v32 = vrot.slane %v152_v28, %v8324_v30  ;;  %v963_v28 = vld [vmem:[#allocation9 + $0x440] sm:$0xff] }
  0x8c   :  { %759 = vmatpush1.bf16.msra.mxu0 %v7298_v34  ;;  %730 = vmatpush2.bf16.msra.mxu1 %v7343_v44  ;;  %v875_v44 = vld [vmem:[#allocation9 + $0x180] sm:$0xff] }
  0x8d   :  { %760 = vmatprep.subr.bf16.mxu0 %v7306_v35  ;;  %731 = vmatprep.subr.bf16.mxu1 %v7344_v46  ;;  %v1003_v46 = vld [vmem:[#allocation9 + $0x580] sm:$0xff] }
  0x90   :  { %761 = vmatpush1.bf16.msra.mxu0 %v7304_v38  ;;  %732 = vmatpush2.bf16.msra.mxu1 %v7349_v48 }
  0x91   :  { %762 = vmatprep.subr.bf16.mxu0 %v7312_v39  ;;  %733 = vmatprep.subr.bf16.mxu1 %v7350_v49 }
  0x94   :  { %763 = vmatpush1.bf16.msra.mxu0 %v7310_v42  ;;  %734 = vmatpush2.bf16.msra.mxu1 %v7355_v52 }
  0x95   :  { %764 = vmatprep.subr.bf16.mxu0 %v7318_v43  ;;  %735 = vmatprep.subr.bf16.mxu1 %v7356_v53 }
  0x98   :  { %765 = vmatpush1.bf16.msra.mxu0 %v7316_v45  ;;  %736 = vmatpush2.bf16.msra.mxu1 %v7361_v56  ;;  %v879_v45 = vld [vmem:[#allocation9 + $0x1a0] sm:$0xff] }
  0x99   :  { %766 = vmatprep.subr.bf16.mxu0 %v7324_v47  ;;  %737 = vmatprep.subr.bf16.mxu1 %v7362_v57  ;;  %v1007_v47 = vld [vmem:[#allocation9 + $0x5a0] sm:$0xff] }
  0x9a   :  { %v995_v56 = vld [vmem:[#allocation9 + $0x540] sm:$0xff] }
  0x9b   :  { %v999_v57 = vld [vmem:[#allocation9 + $0x560] sm:$0xff] }
  0x9c   :  { %767 = vmatpush1.bf16.msra.mxu0 %v7322_v50  ;;  %738 = vmatpush2.bf16.msra.mxu1 %v7367_v5 }
  0x9d   :  { %768 = vmatprep.subr.bf16.mxu0 %v7330_v51  ;;  %739 = vmatprep.subr.bf16.mxu1 %v7368_v6  ;;  %v6624_v6 = vcombine.low %v995_v56, %v999_v57 }
  0xa0   :  { %769 = vmatpush1.bf16.msra.mxu0 %v7328_v54  ;;  %740 = vmatpush2.bf16.msra.mxu1 %v7373_v9  ;;  %v867_v54 = vld [vmem:[#allocation9 + $0x140] sm:$0xff] }
  0xa1   :  { %770 = vmatprep.subr.bf16.mxu0 %v7336_v55  ;;  %741 = vmatprep.subr.bf16.mxu1 %v7374_v10  ;;  %v871_v55 = vld [vmem:[#allocation9 + $0x160] sm:$0xff] }
  0xa2   :  { %v6496_v5 = vcombine.low %v867_v54, %v871_v55  ;;  %v851_v9 = vld [vmem:[#allocation9 + $0xc0] sm:$0xff] }
  0xa3   :  { %v855_v10 = vld [vmem:[#allocation9 + $0xe0] sm:$0xff] }
  0xa4   :  { %771 = vmatpush1.bf16.msra.mxu0 %v7334_v58  ;;  %742 = vmatpush2.bf16.msra.mxu1 %v7379_v13 }
  0xa5   :  { %772 = vmatprep.subr.bf16.mxu0 %v7342_v59  ;;  %743 = vmatprep.subr.bf16.mxu1 %v7380_v14  ;;  %v6505_v59 = vcombine.high %v875_v44, %v879_v45 }
  0xa8   :  { %773 = vmatpush2.bf16.msra.mxu0 %v7340_v60  ;;  %744 = vmatpush2.bf16.msra.mxu1 %v7385_v17  ;;  %v6633_v60 = vcombine.high %v1003_v46, %v1007_v47  ;;  %v843_v17 = vld [vmem:[#allocation9 + $0x80] sm:$0xff] }
  0xa9   :  { %774 = vmatprep.subr.bf16.mxu0 %v7348_v61  ;;  %2405 = vmatprep.subr.bf16.mxu1 %v6513_v22  ;;  %v6504_v61 = vcombine.low %v875_v44, %v879_v45  ;;  %v6473_v23 = vcombine.high %v843_v17, %v847_v18  ;;  %v947_v44 = vld [vmem:[#allocation9 + $0x3c0] sm:$0xff] }
  0xaa   :  { %v951_v45 = vld [vmem:[#allocation9 + $0x3e0] sm:$0xff] }
  0xac   :  { %775 = vmatpush2.bf16.msra.mxu0 %v7346_v62  ;;  %v6632_v62 = vcombine.low %v1003_v46, %v1007_v47  ;;  %v1075_v46 = vld [vmem:[#allocation9 + $0x7c0] sm:$0xff] }
  0xad   :  { %776 = vmatprep.subr.bf16.mxu0 %v7354_v63  ;;  %v859_v63 = vld [vmem:[#allocation9 + $0x100] sm:$0xff] }
  0xae   :  { %v1079_v47 = vld [vmem:[#allocation9 + $0x7e0] sm:$0xff] }
  0xb0   :  { %777 = vmatpush2.bf16.msra.mxu0 %v7352_v0  ;;  %v863_v0 = vld [vmem:[#allocation9 + $0x120] sm:$0xff] }
  0xb1   :  { %778 = vmatprep.subr.bf16.mxu0 %v7360_v1  ;;  %v987_v1 = vld [vmem:[#allocation9 + $0x500] sm:$0xff]  ;;  %v6488_v13 = vcombine.low %v859_v63, %v863_v0 }
  0xb4   :  { %779 = vmatpush2.bf16.msra.mxu0 %v7358_v2  ;;  %v991_v2 = vld [vmem:[#allocation9 + $0x520] sm:$0xff] }
  0xb5   :  { %780 = vmatprep.subr.bf16.mxu0 %v7366_v3  ;;  %v6497_v3 = vcombine.high %v867_v54, %v871_v55  ;;  %v6616_v14 = vcombine.low %v987_v1, %v991_v2  ;;  %v1067_v54 = vld [vmem:[#allocation9 + $0x780] sm:$0xff] }
  0xb6   :  { %v1071_v55 = vld [vmem:[#allocation9 + $0x7a0] sm:$0xff] }
  0xb8   :  { %781 = vmatpush2.bf16.msra.mxu0 %v7364_v4  ;;  %v6625_v4 = vcombine.high %v995_v56, %v999_v57  ;;  %v6576_v56 = vcombine.low %v947_v44, %v951_v45  ;;  %v6704_v57 = vcombine.low %v1075_v46, %v1079_v47 }
  0xb9   :  { %782 = vmatprep.subr.bf16.mxu0 %v7372_v7  ;;  %v6489_v7 = vcombine.high %v859_v63, %v863_v0  ;;  %v1063_v63 = vld [vmem:[#allocation9 + $0x760] sm:$0xff] }
  0xbc   :  { %783 = vmatpush2.bf16.msra.mxu0 %v7370_v8  ;;  %v6617_v8 = vcombine.high %v987_v1, %v991_v2  ;;  %v6696_v1 = vcombine.low %v1067_v54, %v1071_v55 }
  0xbd   :  { %784 = vmatprep.subr.bf16.mxu0 %v7378_v11  ;;  %v979_v11 = vld [vmem:[#allocation9 + $0x4c0] sm:$0xff] }
  0xc0   :  { %785 = vmatpush2.bf16.msra.mxu0 %v7376_v12  ;;  %v983_v12 = vld [vmem:[#allocation9 + $0x4e0] sm:$0xff] }
  0xc1   :  { %786 = vmatprep.subr.bf16.mxu0 %v7384_v16  ;;  %v6609_v16 = vcombine.high %v979_v11, %v983_v12  ;;  %v6608_v22 = vcombine.low %v979_v11, %v983_v12  ;;  %v915_v12 = vld [vmem:[#allocation9 + $0x2c0] sm:$0xff] }
  0xc4   :  { %787 = vmatpush2.bf16.msra.mxu0 %v7382_v15  ;;  %v6481_v15 = vcombine.high %v851_v9, %v855_v10 }
  0xc5   :  { %2448 = vmatprep.subr.bf16.mxu0 %v6641_v25  ;;  %v835_v25 = vld [vmem:[#allocation9 + $0x40] sm:$0xff] }
 0x147   :  { %v284_v33 = vpop.f32.mrf.mxu0 }
 0x148   :  { %v285_v34 = vadd.f32 %v284_v33, %v157_v31  ;;  %v6600_v33 = vcombine.low %v971_v19, %v975_v20 }
 0x149   :  { %v286_v35 = vpop.f32.mrf.mxu0 }
 0x14a   :  { %v287_v36 = vadd.f32 %v286_v35, %v161_v32  ;;  %v297_v38 = vmul.f32 0.2, %v285_v34  ;;  %vm293_vm2 = vcmp.gt.f32.partialorder %v285_v34, 0.0 }
 0x14b   :  { %v288_v37 = vpop.f32.mrf.mxu0 }
 0x14c   :  { %v298_v39 = vmul.f32 0.2, %v287_v36  ;;  %v289_v40 = vadd.f32 %v288_v37, %v157_v31  ;;  %vm294_vm1 = vcmp.gt.f32.partialorder %v287_v36, 0.0  ;;  %v301_v53 = vsel %vm293_vm2, %v285_v34, %v297_v38  ;;  %v967_v31 = vld [vmem:[#allocation9 + $0x460] sm:$0xff] }
 0x14d   :  { %v290_v41 = vpop.f32.mrf.mxu0  ;;  %v6465_v34 = vcombine.high %v835_v25, %v839_v26  ;;  %v6593_v35 = vcombine.high %v963_v28, %v967_v31  ;;  %v831_v37 = vld [vmem:[#allocation9 + $0x20] sm:$0xff] }
 0x14e   :  { %vm295_vm0 = vcmp.gt.f32.partialorder %v289_v40, 0.0  ;;  %v299_v42 = vmul.f32 0.2, %v289_v40  ;;  %v291_v43 = vadd.f32 %v290_v41, %v161_v32  ;;  %v302_v50 = vsel %vm294_vm1, %v287_v36, %v298_v39  ;;  %v827_v36 = vld [vmem:[#allocation9] sm:$0xff] }
 0x14f   :  { %v6472_v32 = vcombine.low %v843_v17, %v847_v18  ;;  %v955_v38 = vld [vmem:[#allocation9 + $0x400] sm:$0xff]  ;;  %v6592_v41 = vcombine.low %v963_v28, %v967_v31 }
 0x150   :  { %v300_v48 = vmul.f32 0.2, %v291_v43  ;;  %vm296_vm3 = vcmp.gt.f32.partialorder %v291_v43, 0.0  ;;  %v303_v49 = vsel %vm295_vm0, %v289_v40, %v299_v42  ;;  %v959_v39 = vld [vmem:[#allocation9 + $0x420] sm:$0xff]  ;;  %v6464_v40 = vcombine.low %v835_v25, %v839_v26 }
 0x151   :  { %v305_v58 = vpack.c.bf16 %v303_v49, %v301_v53  ;;  %v6457_v42 = vcombine.high %v827_v36, %v831_v37  ;;  %v6584_v49 = vcombine.low %v955_v38, %v959_v39  ;;  %v943_v53 = vld [vmem:[#allocation9 + $0x3a0] sm:$0xff] }
 0x152   :  { %v304_v51 = vsel %vm296_vm3, %v291_v43, %v300_v48  ;;  %v6585_v43 = vcombine.high %v955_v38, %v959_v39  ;;  %v6456_v48 = vcombine.low %v827_v36, %v831_v37  ;;  %v1039_v26 = vld [vmem:[#allocation9 + $0x6a0] sm:$0xff] }
 0x153   :  { %v306_v52 = vpack.c.bf16 %v304_v51, %v302_v50  ;;  %v6577_v50 = vcombine.high %v947_v44, %v951_v45  ;;  %v6705_v51 = vcombine.high %v1075_v46, %v1079_v47  ;;  %v1031_v37 = vld [vmem:[#allocation9 + $0x660] sm:$0xff] }
 0x154   :  { %v1023_v45 = vld [vmem:[#allocation9 + $0x620] sm:$0xff] }
 0x155   :  { %745 = vmatprep.mubr.bf16.mxu1 %v306_v52  ;;  %788 = vmatprep.mubr.bf16.mxu0 %v306_v52  ;;  %v939_v52 = vld [vmem:[#allocation9 + $0x380] sm:$0xff] }
 0x156   :  { %746 = vmatmul.mubr.bf16.vlgmr.msra.gmra.mxu1 %v305_v58  ;;  %789 = vmatmul.mubr.bf16.vlgmr.msra.gmra.mxu0 %v305_v58  ;;  %v6569_v58 = vcombine.high %v939_v52, %v943_v53  ;;  %v6568_v0 = vcombine.low %v939_v52, %v943_v53  ;;  %v8336_v53 = vld [vmem:[#allocation9 + $0x5e8] sm:$0xff] }
 0x157   :  { %2406 = vmatpush1.bf16.msra.mxu1 %v6512_v21  ;;  %2449 = vmatpush1.bf16.msra.mxu0 %v6640_v24  ;;  %v6480_v21 = vcombine.low %v851_v9, %v855_v10  ;;  %v6601_v24 = vcombine.high %v971_v19, %v975_v20 }
 0x158   :  { %2407 = vmatprep.subr.bf16.mxu1 %v6505_v59  ;;  %2450 = vmatprep.subr.bf16.mxu0 %v6633_v60  ;;  %v6697_v59 = vcombine.high %v1067_v54, %v1071_v55  ;;  %v931_v60 = vld [vmem:[#allocation9 + $0x340] sm:$0xff] }
 0x15b   :  { %2408 = vmatpush1.bf16.msra.mxu1 %v6504_v61  ;;  %2451 = vmatpush1.bf16.msra.mxu0 %v6632_v62  ;;  %v935_v61 = vld [vmem:[#allocation9 + $0x360] sm:$0xff] }
 0x15c   :  { %2409 = vmatprep.subr.bf16.mxu1 %v6497_v3  ;;  %2452 = vmatprep.subr.bf16.mxu0 %v6625_v4  ;;  %v1059_v62 = vld [vmem:[#allocation9 + $0x740] sm:$0xff]  ;;  %v6561_v2 = vcombine.high %v931_v60, %v935_v61 }
 0x15d   :  { %v6689_v3 = vcombine.high %v1059_v62, %v1063_v63  ;;  %v923_v4 = vld [vmem:[#allocation9 + $0x300] sm:$0xff]  ;;  %v6688_v9 = vcombine.low %v1059_v62, %v1063_v63 }
 0x15f   :  { %2410 = vmatpush1.bf16.msra.mxu1 %v6496_v5  ;;  %2453 = vmatpush1.bf16.msra.mxu0 %v6624_v6  ;;  %v927_v5 = vld [vmem:[#allocation9 + $0x320] sm:$0xff] }
 0x160   :  { %2411 = vmatprep.subr.bf16.mxu1 %v6489_v7  ;;  %2454 = vmatprep.subr.bf16.mxu0 %v6617_v8  ;;  %v1051_v6 = vld [vmem:[#allocation9 + $0x700] sm:$0xff]  ;;  %v6560_v8 = vcombine.low %v931_v60, %v935_v61  ;;  %v6553_v10 = vcombine.high %v923_v4, %v927_v5 }
 0x161   :  { %v1055_v7 = vld [vmem:[#allocation9 + $0x720] sm:$0xff] }
 0x162   :  { %v6681_v11 = vcombine.high %v1051_v6, %v1055_v7  ;;  %v6680_v17 = vcombine.low %v1051_v6, %v1055_v7 }
 0x163   :  { %2412 = vmatpush1.bf16.msra.mxu1 %v6488_v13  ;;  %2455 = vmatpush1.bf16.msra.mxu0 %v6616_v14  ;;  %v919_v13 = vld [vmem:[#allocation9 + $0x2e0] sm:$0xff] }
 0x164   :  { %2413 = vmatprep.subr.bf16.mxu1 %v6481_v15  ;;  %2456 = vmatprep.subr.bf16.mxu0 %v6609_v16  ;;  %v1043_v14 = vld [vmem:[#allocation9 + $0x6c0] sm:$0xff]  ;;  %v6552_v16 = vcombine.low %v923_v4, %v927_v5  ;;  %v6545_v18 = vcombine.high %v915_v12, %v919_v13  ;;  %v6544_v20 = vcombine.low %v915_v12, %v919_v13 }
 0x165   :  { %v1047_v15 = vld [vmem:[#allocation9 + $0x6e0] sm:$0xff] }
 0x166   :  { %v6673_v19 = vcombine.high %v1043_v14, %v1047_v15 }
 0x167   :  { %2414 = vmatpush1.bf16.msra.mxu1 %v6480_v21  ;;  %2457 = vmatpush1.bf16.msra.mxu0 %v6608_v22  ;;  %v6672_v21 = vcombine.low %v1043_v14, %v1047_v15  ;;  %v907_v22 = vld [vmem:[#allocation9 + $0x280] sm:$0xff] }
 0x168   :  { %2415 = vmatprep.subr.bf16.mxu1 %v6473_v23  ;;  %2458 = vmatprep.subr.bf16.mxu0 %v6601_v24  ;;  %v911_v23 = vld [vmem:[#allocation9 + $0x2a0] sm:$0xff] }
 0x169   :  { %v1035_v24 = vld [vmem:[#allocation9 + $0x680] sm:$0xff]  ;;  %v6537_v25 = vcombine.high %v907_v22, %v911_v23  ;;  %v6536_v28 = vcombine.low %v907_v22, %v911_v23 }
 0x16a   :  { %v6664_v31 = vcombine.low %v1035_v24, %v1039_v26 }
 0x16b   :  { %2416 = vmatpush1.bf16.msra.mxu1 %v6472_v32  ;;  %2459 = vmatpush1.bf16.msra.mxu0 %v6600_v33  ;;  %v6665_v32 = vcombine.high %v1035_v24, %v1039_v26  ;;  %v899_v33 = vld [vmem:[#allocation9 + $0x240] sm:$0xff] }
 0x16c   :  { %2417 = vmatprep.subr.bf16.mxu1 %v6465_v34  ;;  %2460 = vmatprep.subr.bf16.mxu0 %v6593_v35  ;;  %v903_v34 = vld [vmem:[#allocation9 + $0x260] sm:$0xff] }
 0x16d   :  { %v1027_v35 = vld [vmem:[#allocation9 + $0x640] sm:$0xff]  ;;  %v6529_v36 = vcombine.high %v899_v33, %v903_v34  ;;  %v6528_v38 = vcombine.low %v899_v33, %v903_v34 }
 0x16e   :  { %v6656_v39 = vcombine.low %v1027_v35, %v1031_v37 }
 0x16f   :  { %2418 = vmatpush1.bf16.msra.mxu1 %v6464_v40  ;;  %2461 = vmatpush1.bf16.msra.mxu0 %v6592_v41  ;;  %v6657_v40 = vcombine.high %v1027_v35, %v1031_v37  ;;  %v891_v41 = vld [vmem:[#allocation9 + $0x200] sm:$0xff]  ;;  %v1004_v37 = vld [vmem:[#allocation9 + $0x588] sm:$0xff] }
 0x170   :  { %2419 = vmatprep.subr.bf16.mxu1 %v6457_v42  ;;  %2462 = vmatprep.subr.bf16.mxu0 %v6585_v43  ;;  %v895_v42 = vld [vmem:[#allocation9 + $0x220] sm:$0xff] }
 0x171   :  { %v1019_v43 = vld [vmem:[#allocation9 + $0x600] sm:$0xff]  ;;  %v6521_v44 = vcombine.high %v891_v41, %v895_v42  ;;  %v6520_v46 = vcombine.low %v891_v41, %v895_v42 }
 0x172   :  { %v6648_v47 = vcombine.low %v1019_v43, %v1023_v45 }
 0x173   :  { %2420 = vmatpush1.bf16.msra.mxu1 %v6456_v48  ;;  %2463 = vmatpush1.bf16.msra.mxu0 %v6584_v49  ;;  %v6649_v48 = vcombine.high %v1019_v43, %v1023_v45  ;;  %v8328_v49 = vld [vmem:[#allocation9 + $0x1c8] sm:$0xff] }
 0x174   :  { %2421 = vmatprep.subr.bf16.mxu1 %v6577_v50  ;;  %2464 = vmatprep.subr.bf16.mxu0 %v6705_v51  ;;  %v8330_v50 = vld [vmem:[#allocation9 + $0x1e8] sm:$0xff] }
 0x175   :  { %v8332_v51 = vld [vmem:[#allocation9 + $0x5c8] sm:$0xff]  ;;  %v6515_v52 = vcombine.high %v8328_v49, %v8330_v50  ;;  %v6514_v54 = vcombine.low %v8328_v49, %v8330_v50 }
 0x176   :  { %v6642_v55 = vcombine.low %v8332_v51, %v8336_v53  ;;  %v872_v45 = vld [vmem:[#allocation9 + $0x168] sm:$0xff] }
 0x177   :  { %2422 = vmatpush2.bf16.msra.mxu1 %v6576_v56  ;;  %2465 = vmatpush2.bf16.msra.mxu0 %v6704_v57  ;;  %v6643_v56 = vcombine.high %v8332_v51, %v8336_v53  ;;  %v371_v57 = vld [vmem:[#allocation7] sm:$0xf] }
 0x178   :  { %2423 = vmatprep.subr.bf16.mxu1 %v6569_v58  ;;  %2466 = vmatprep.subr.bf16.mxu0 %v6697_v59  ;;  %v8345_v58 = vsub.s32 3, %v8318_v27  ;;  %v8348_v59 = vsub.s32 2, %v8318_v27  ;;  %v376_v60 = vrot.slane %v371_v57, %v8321_v29  ;;  %v380_v63 = vrot.slane %v371_v57, %v8324_v30 }
 0x17b   :  { %2424 = vmatpush2.bf16.msra.mxu1 %v6568_v0  ;;  %2467 = vmatpush2.bf16.msra.mxu0 %v6696_v1  ;;  %v388_v0 = vrot.slane %v371_v57, %v8345_v58  ;;  %v384_v1 = vrot.slane %v371_v57, %v8348_v59 }
 0x17c   :  { %2425 = vmatprep.subr.bf16.mxu1 %v6561_v2  ;;  %2468 = vmatprep.subr.bf16.mxu0 %v6689_v3 }
 0x17f   :  { %2426 = vmatpush2.bf16.msra.mxu1 %v6560_v8  ;;  %2469 = vmatpush2.bf16.msra.mxu0 %v6688_v9 }
 0x180   :  { %2427 = vmatprep.subr.bf16.mxu1 %v6553_v10  ;;  %2470 = vmatprep.subr.bf16.mxu0 %v6681_v11 }
 0x183   :  { %2428 = vmatpush2.bf16.msra.mxu1 %v6552_v16  ;;  %2471 = vmatpush2.bf16.msra.mxu0 %v6680_v17 }
 0x184   :  { %2429 = vmatprep.subr.bf16.mxu1 %v6545_v18  ;;  %2472 = vmatprep.subr.bf16.mxu0 %v6673_v19 }
 0x187   :  { %2430 = vmatpush2.bf16.msra.mxu1 %v6544_v20  ;;  %2473 = vmatpush2.bf16.msra.mxu0 %v6672_v21 }
 0x188   :  { %2431 = vmatprep.subr.bf16.mxu1 %v6537_v25  ;;  %2474 = vmatprep.subr.bf16.mxu0 %v6665_v32  ;;  %v880_v32 = vld [vmem:[#allocation9 + $0x1a8] sm:$0xff] }
 0x18b   :  { %2432 = vmatpush2.bf16.msra.mxu1 %v6536_v28  ;;  %2475 = vmatpush2.bf16.msra.mxu0 %v6664_v31  ;;  %v876_v31 = vld [vmem:[#allocation9 + $0x188] sm:$0xff] }
 0x18c   :  { %2433 = vmatprep.subr.bf16.mxu1 %v6529_v36  ;;  %2476 = vmatprep.subr.bf16.mxu0 %v6657_v40  ;;  %v6507_v43 = vcombine.high %v876_v31, %v880_v32 }
 0x18f   :  { %2434 = vmatpush2.bf16.msra.mxu1 %v6528_v38  ;;  %2477 = vmatpush2.bf16.msra.mxu0 %v6656_v39  ;;  %v1008_v38 = vld [vmem:[#allocation9 + $0x5a8] sm:$0xff] }
 0x190   :  { %2435 = vmatprep.subr.bf16.mxu1 %v6521_v44  ;;  %2478 = vmatprep.subr.bf16.mxu0 %v6649_v48  ;;  %v868_v44 = vld [vmem:[#allocation9 + $0x148] sm:$0xff] }
 0x191   :  { %v1000_v48 = vld [vmem:[#allocation9 + $0x568] sm:$0xff]  ;;  %v6499_v57 = vcombine.high %v868_v44, %v872_v45  ;;  %v6498_v49 = vcombine.low %v868_v44, %v872_v45 }
 0x193   :  { %2436 = vmatpush2.bf16.msra.mxu1 %v6520_v46  ;;  %2479 = vmatpush2.bf16.msra.mxu0 %v6648_v47  ;;  %v6635_v46 = vcombine.high %v1004_v37, %v1008_v38  ;;  %v996_v47 = vld [vmem:[#allocation9 + $0x548] sm:$0xff] }
 0x194   :  { %2491 = vmatprep.subr.bf16.mxu1 %v6515_v52  ;;  %2534 = vmatprep.subr.bf16.mxu0 %v6643_v56  ;;  %v6506_v52 = vcombine.low %v876_v31, %v880_v32  ;;  %v6634_v56 = vcombine.low %v1004_v37, %v1008_v38  ;;  %v6626_v50 = vcombine.low %v996_v47, %v1000_v48  ;;  %v1076_v37 = vld [vmem:[#allocation9 + $0x7c8] sm:$0xff] }
 0x195   :  { %v1080_v38 = vld [vmem:[#allocation9 + $0x7e8] sm:$0xff] }
 0x196   :  { %v6707_v45 = vcombine.high %v1076_v37, %v1080_v38 }
 0x216   :  { %v747_v61 = vpop.f32.mrf.mxu1  ;;  %v790_v62 = vpop.f32.mrf.mxu0 }
 0x217   :  { %v748_v4 = vadd.f32 %v747_v61, %v376_v60  ;;  %v791_v11 = vadd.f32 %v790_v62, %v384_v1  ;;  %v860_v61 = vld [vmem:[#allocation9 + $0x108] sm:$0xff] }
 0x218   :  { %v749_v2 = vpop.f32.mrf.mxu1  ;;  %v792_v3 = vpop.f32.mrf.mxu0  ;;  %v864_v62 = vld [vmem:[#allocation9 + $0x128] sm:$0xff] }
 0x219   :  { %v750_v5 = vadd.f32 %v749_v2, %v380_v63  ;;  %v793_v8 = vadd.f32 %v792_v3, %v388_v0  ;;  %vm799_vm4 = vcmp.gt.f32.partialorder %v748_v4, 0.0  ;;  %v807_v19 = vmul.f32 0.2, %v748_v4  ;;  %v984_v2 = vld [vmem:[#allocation9 + $0x4e8] sm:$0xff] }
 0x21a   :  { %v751_v6 = vpop.f32.mrf.mxu1  ;;  %v794_v7 = vpop.f32.mrf.mxu0  ;;  %v809_v21 = vmul.f32 0.2, %v791_v11  ;;  %vm801_vm10 = vcmp.gt.f32.partialorder %v791_v11, 0.0  ;;  %v6491_v51 = vcombine.high %v860_v61, %v864_v62  ;;  %v6490_v3 = vcombine.low %v860_v61, %v864_v62  ;;  %v932_v62 = vld [vmem:[#allocation9 + $0x348] sm:$0xff] }
 0x21b   :  { %v752_v9 = vadd.f32 %v751_v6, %v376_v60  ;;  %v795_v10 = vadd.f32 %v794_v7, %v384_v1  ;;  %v808_v14 = vmul.f32 0.2, %v750_v5  ;;  %vm800_vm6 = vcmp.gt.f32.partialorder %v750_v5, 0.0  ;;  %v980_v1 = vld [vmem:[#allocation9 + $0x4c8] sm:$0xff] }
 0x21c   :  { %v753_v12 = vpop.f32.mrf.mxu1  ;;  %v796_v13 = vpop.f32.mrf.mxu0  ;;  %v810_v20 = vmul.f32 0.2, %v793_v8  ;;  %vm802_vm8 = vcmp.gt.f32.partialorder %v793_v8, 0.0  ;;  %v815_v33 = vsel %vm799_vm4, %v748_v4, %v807_v19  ;;  %v817_v39 = vsel %vm801_vm10, %v791_v11, %v809_v21  ;;  %v844_v7 = vld [vmem:[#allocation9 + $0x88] sm:$0xff] }
 0x21d   :  { %v811_v15 = vmul.f32 0.2, %v752_v9  ;;  %vm803_vm5 = vcmp.gt.f32.partialorder %v752_v9, 0.0  ;;  %v813_v16 = vmul.f32 0.2, %v795_v10  ;;  %v754_v17 = vadd.f32 %v753_v12, %v380_v63  ;;  %v988_v63 = vld [vmem:[#allocation9 + $0x508] sm:$0xff] }
 0x21e   :  { %v797_v18 = vadd.f32 %v796_v13, %v388_v0  ;;  %vm805_vm7 = vcmp.gt.f32.partialorder %v795_v10, 0.0  ;;  %v816_v25 = vsel %vm800_vm6, %v750_v5, %v808_v14  ;;  %v818_v34 = vsel %vm802_vm8, %v793_v8, %v810_v20  ;;  %v992_v0 = vld [vmem:[#allocation9 + $0x528] sm:$0xff] }
 0x21f   :  { %vm804_vm9 = vcmp.gt.f32.partialorder %v754_v17, 0.0  ;;  %v812_v22 = vmul.f32 0.2, %v754_v17  ;;  %v819_v23 = vsel %vm803_vm5, %v752_v9, %v811_v15  ;;  %v821_v26 = vsel %vm805_vm7, %v795_v10, %v813_v16  ;;  %v848_v8 = vld [vmem:[#allocation9 + $0xa8] sm:$0xff] }
 0x220   :  { %vm806_vm11 = vcmp.gt.f32.partialorder %v797_v18, 0.0  ;;  %v814_v24 = vmul.f32 0.2, %v797_v18  ;;  %v8357_v40 = vpack.c.bf16 %v819_v23, %v815_v33  ;;  %v8361_v42 = vpack.c.bf16 %v821_v26, %v817_v39  ;;  %v972_v9 = vld [vmem:[#allocation9 + $0x488] sm:$0xff] }
 0x221   :  { %v820_v28 = vsel %vm804_vm9, %v754_v17, %v812_v22  ;;  %v6627_v60 = vcombine.high %v996_v47, %v1000_v48  ;;  %v6619_v53 = vcombine.high %v988_v63, %v992_v0  ;;  %v6618_v4 = vcombine.low %v988_v63, %v992_v0  ;;  %v976_v10 = vld [vmem:[#allocation9 + $0x4a8] sm:$0xff] }
 0x222   :  { %v8355_v35 = vpack.c.bf16 %v820_v28, %v816_v25  ;;  %v822_v36 = vsel %vm806_vm11, %v797_v18, %v814_v24  ;;  %v6611_v6 = vcombine.high %v980_v1, %v984_v2  ;;  %v6610_v12 = vcombine.low %v980_v1, %v984_v2  ;;  %v836_v15 = vld [vmem:[#allocation9 + $0x48] sm:$0xff] }
 0x223   :  { %v8359_v41 = vpack.c.bf16 %v822_v36, %v818_v34  ;;  %v6475_v13 = vcombine.high %v844_v7, %v848_v8  ;;  %v6603_v14 = vcombine.high %v972_v9, %v976_v10  ;;  %v840_v16 = vld [vmem:[#allocation9 + $0x68] sm:$0xff]  ;;  %v6474_v19 = vcombine.low %v844_v7, %v848_v8 }
 0x224   :  { %2437 = vmatprep.mubr.bf16.mxu1 %v8355_v35  ;;  %v964_v17 = vld [vmem:[#allocation9 + $0x448] sm:$0xff]  ;;  %v6602_v20 = vcombine.low %v972_v9, %v976_v10  ;;  %v6467_v21 = vcombine.high %v836_v15, %v840_v16  ;;  %v6466_v28 = vcombine.low %v836_v15, %v840_v16 }
 0x225   :  { %2480 = vmatprep.mubr.bf16.mxu0 %v8359_v41  ;;  %2438 = vmatmul.mubr.bf16.vlgmr.msra.gmra.mxu1 %v8357_v40  ;;  %v968_v18 = vld [vmem:[#allocation9 + $0x468] sm:$0xff] }
 0x226   :  { %2481 = vmatmul.mubr.bf16.vlgmr.msra.gmra.mxu0 %v8361_v42  ;;  %2492 = vmatpush1.bf16.msra.mxu1 %v6514_v54  ;;  %v852_v54 = vld [vmem:[#allocation9 + $0xc8] sm:$0xff]  ;;  %v6595_v22 = vcombine.high %v964_v17, %v968_v18  ;;  %v6594_v31 = vcombine.low %v964_v17, %v968_v18 }
 0x227   :  { %2535 = vmatpush1.bf16.msra.mxu0 %v6642_v55  ;;  %2523 = vmatprep.mubr.bf16.mxu1 %v8355_v35  ;;  %v856_v55 = vld [vmem:[#allocation9 + $0xe8] sm:$0xff] }
 0x228   :  { %2566 = vmatprep.mubr.bf16.mxu0 %v8359_v41  ;;  %2493 = vmatprep.subr.bf16.mxu1 %v6507_v43  ;;  %v6483_v5 = vcombine.high %v852_v54, %v856_v55  ;;  %v6482_v11 = vcombine.low %v852_v54, %v856_v55  ;;  %v828_v23 = vld [vmem:[#allocation9 + $0x8] sm:$0xff] }
 0x229   :  { %2536 = vmatprep.subr.bf16.mxu0 %v6635_v46  ;;  %v832_v24 = vld [vmem:[#allocation9 + $0x28] sm:$0xff] }
 0x22a   :  { %2494 = vmatpush1.bf16.msra.mxu1 %v6506_v52  ;;  %v956_v25 = vld [vmem:[#allocation9 + $0x408] sm:$0xff]  ;;  %v6459_v32 = vcombine.high %v828_v23, %v832_v24  ;;  %v6458_v39 = vcombine.low %v828_v23, %v832_v24 }
 0x22b   :  { %2537 = vmatpush1.bf16.msra.mxu0 %v6634_v56  ;;  %2495 = vmatprep.subr.bf16.mxu1 %v6499_v57  ;;  %v960_v26 = vld [vmem:[#allocation9 + $0x428] sm:$0xff]  ;;  %v6706_v57 = vcombine.low %v1076_v37, %v1080_v38 }
 0x22c   :  { %2538 = vmatprep.subr.bf16.mxu0 %v6627_v60  ;;  %v6587_v33 = vcombine.high %v956_v25, %v960_v26  ;;  %v948_v34 = vld [vmem:[#allocation9 + $0x3c8] sm:$0xff]  ;;  %v6586_v43 = vcombine.low %v956_v25, %v960_v26 }
 0x22d   :  { %v952_v36 = vld [vmem:[#allocation9 + $0x3e8] sm:$0xff] }
 0x22e   :  { %2496 = vmatpush1.bf16.msra.mxu1 %v6498_v49  ;;  %v6579_v44 = vcombine.high %v948_v34, %v952_v36  ;;  %v940_v46 = vld [vmem:[#allocation9 + $0x388] sm:$0xff]  ;;  %v6578_v56 = vcombine.low %v948_v34, %v952_v36 }
 0x22f   :  { %2539 = vmatpush1.bf16.msra.mxu0 %v6626_v50  ;;  %2497 = vmatprep.subr.bf16.mxu1 %v6491_v51  ;;  %v944_v47 = vld [vmem:[#allocation9 + $0x3a8] sm:$0xff] }
 0x230   :  { %2540 = vmatprep.subr.bf16.mxu0 %v6619_v53  ;;  %v1068_v48 = vld [vmem:[#allocation9 + $0x788] sm:$0xff]  ;;  %v6571_v60 = vcombine.high %v940_v46, %v944_v47  ;;  %v6570_v50 = vcombine.low %v940_v46, %v944_v47  ;;  %v885_v47 = vld [vmem:[#allocation9 + $0x1d0] sm:$0xff] }
 0x231   :  { %v1072_v52 = vld [vmem:[#allocation9 + $0x7a8] sm:$0xff] }
 0x232   :  { %2498 = vmatpush1.bf16.msra.mxu1 %v6490_v3  ;;  %v6699_v61 = vcombine.high %v1068_v48, %v1072_v52  ;;  %v936_v63 = vld [vmem:[#allocation9 + $0x368] sm:$0xff]  ;;  %v6698_v51 = vcombine.low %v1068_v48, %v1072_v52  ;;  %v889_v48 = vld [vmem:[#allocation9 + $0x1f0] sm:$0xff] }
 0x233   :  { %2541 = vmatpush1.bf16.msra.mxu0 %v6618_v4  ;;  %2499 = vmatprep.subr.bf16.mxu1 %v6483_v5  ;;  %v1060_v0 = vld [vmem:[#allocation9 + $0x748] sm:$0xff]  ;;  %v6563_v53 = vcombine.high %v932_v62, %v936_v63  ;;  %v6562_v4 = vcombine.low %v932_v62, %v936_v63  ;;  %v1013_v52 = vld [vmem:[#allocation9 + $0x5d0] sm:$0xff] }
 0x234   :  { %2542 = vmatprep.subr.bf16.mxu0 %v6611_v6  ;;  %v1064_v49 = vld [vmem:[#allocation9 + $0x768] sm:$0xff]  ;;  %v877_v63 = vld [vmem:[#allocation9 + $0x190] sm:$0xff] }
 0x235   :  { %v6691_v54 = vcombine.high %v1060_v0, %v1064_v49  ;;  %v924_v55 = vld [vmem:[#allocation9 + $0x308] sm:$0xff]  ;;  %v6690_v5 = vcombine.low %v1060_v0, %v1064_v49  ;;  %v881_v0 = vld [vmem:[#allocation9 + $0x1b0] sm:$0xff]  ;;  %v6516_v49 = vcombine.low %v885_v47, %v889_v48 }
 0x236   :  { %2500 = vmatpush1.bf16.msra.mxu1 %v6482_v11  ;;  %v928_v1 = vld [vmem:[#allocation9 + $0x328] sm:$0xff] }
 0x237   :  { %2543 = vmatpush1.bf16.msra.mxu0 %v6610_v12  ;;  %2501 = vmatprep.subr.bf16.mxu1 %v6475_v13  ;;  %v1052_v2 = vld [vmem:[#allocation9 + $0x708] sm:$0xff]  ;;  %v6555_v6 = vcombine.high %v924_v55, %v928_v1  ;;  %v6554_v12 = vcombine.low %v924_v55, %v928_v1  ;;  %v869_v55 = vld [vmem:[#allocation9 + $0x150] sm:$0xff] }
 0x238   :  { %2544 = vmatprep.subr.bf16.mxu0 %v6603_v14  ;;  %v1056_v3 = vld [vmem:[#allocation9 + $0x728] sm:$0xff]  ;;  %v873_v1 = vld [vmem:[#allocation9 + $0x170] sm:$0xff] }
 0x239   :  { %v6683_v7 = vcombine.high %v1052_v2, %v1056_v3  ;;  %v916_v8 = vld [vmem:[#allocation9 + $0x2c8] sm:$0xff]  ;;  %v6682_v13 = vcombine.low %v1052_v2, %v1056_v3  ;;  %v997_v3 = vld [vmem:[#allocation9 + $0x550] sm:$0xff] }
 0x23a   :  { %2502 = vmatpush1.bf16.msra.mxu1 %v6474_v19  ;;  %v920_v9 = vld [vmem:[#allocation9 + $0x2e8] sm:$0xff] }
 0x23b   :  { %2545 = vmatpush1.bf16.msra.mxu0 %v6602_v20  ;;  %2503 = vmatprep.subr.bf16.mxu1 %v6467_v21  ;;  %v1044_v10 = vld [vmem:[#allocation9 + $0x6c8] sm:$0xff]  ;;  %v6547_v14 = vcombine.high %v916_v8, %v920_v9  ;;  %v6546_v20 = vcombine.low %v916_v8, %v920_v9  ;;  %v861_v9 = vld [vmem:[#allocation9 + $0x110] sm:$0xff] }
 0x23c   :  { %2546 = vmatprep.subr.bf16.mxu0 %v6595_v22  ;;  %v1048_v11 = vld [vmem:[#allocation9 + $0x6e8] sm:$0xff] }
 0x23d   :  { %v6675_v15 = vcombine.high %v1044_v10, %v1048_v11  ;;  %v908_v16 = vld [vmem:[#allocation9 + $0x288] sm:$0xff]  ;;  %v6674_v21 = vcombine.low %v1044_v10, %v1048_v11  ;;  %v865_v10 = vld [vmem:[#allocation9 + $0x130] sm:$0xff] }
 0x23e   :  { %2504 = vmatpush1.bf16.msra.mxu1 %v6466_v28  ;;  %v912_v17 = vld [vmem:[#allocation9 + $0x2a8] sm:$0xff]  ;;  %v989_v11 = vld [vmem:[#allocation9 + $0x510] sm:$0xff] }
 0x23f   :  { %2547 = vmatpush1.bf16.msra.mxu0 %v6594_v31  ;;  %2505 = vmatprep.subr.bf16.mxu1 %v6459_v32  ;;  %v1036_v18 = vld [vmem:[#allocation9 + $0x688] sm:$0xff]  ;;  %v6539_v22 = vcombine.high %v908_v16, %v912_v17  ;;  %v6538_v31 = vcombine.low %v908_v16, %v912_v17  ;;  %v853_v17 = vld [vmem:[#allocation9 + $0xd0] sm:$0xff] }
 0x240   :  { %2548 = vmatprep.subr.bf16.mxu0 %v6587_v33  ;;  %v1040_v19 = vld [vmem:[#allocation9 + $0x6a8] sm:$0xff] }
 0x241   :  { %v6667_v23 = vcombine.high %v1036_v18, %v1040_v19  ;;  %v900_v24 = vld [vmem:[#allocation9 + $0x248] sm:$0xff]  ;;  %v6666_v32 = vcombine.low %v1036_v18, %v1040_v19  ;;  %v857_v18 = vld [vmem:[#allocation9 + $0xf0] sm:$0xff] }
 0x242   :  { %2506 = vmatpush1.bf16.msra.mxu1 %v6458_v39  ;;  %v904_v25 = vld [vmem:[#allocation9 + $0x268] sm:$0xff]  ;;  %v981_v19 = vld [vmem:[#allocation9 + $0x4d0] sm:$0xff] }
 0x243   :  { %2549 = vmatpush1.bf16.msra.mxu0 %v6586_v43  ;;  %2507 = vmatprep.subr.bf16.mxu1 %v6579_v44  ;;  %v1028_v26 = vld [vmem:[#allocation9 + $0x648] sm:$0xff]  ;;  %v6531_v33 = vcombine.high %v900_v24, %v904_v25  ;;  %v6530_v43 = vcombine.low %v900_v24, %v904_v25  ;;  %v845_v25 = vld [vmem:[#allocation9 + $0x90] sm:$0xff] }
 0x244   :  { %2550 = vmatprep.subr.bf16.mxu0 %v6707_v45  ;;  %v1032_v28 = vld [vmem:[#allocation9 + $0x668] sm:$0xff] }
 0x245   :  { %v6659_v34 = vcombine.high %v1028_v26, %v1032_v28  ;;  %v892_v36 = vld [vmem:[#allocation9 + $0x208] sm:$0xff]  ;;  %v6658_v44 = vcombine.low %v1028_v26, %v1032_v28  ;;  %v849_v26 = vld [vmem:[#allocation9 + $0xb0] sm:$0xff] }
 0x246   :  { %2508 = vmatpush2.bf16.msra.mxu1 %v6578_v56  ;;  %v896_v37 = vld [vmem:[#allocation9 + $0x228] sm:$0xff]  ;;  %v1017_v56 = vld [vmem:[#allocation9 + $0x5f0] sm:$0xff] }
 0x247   :  { %2551 = vmatpush2.bf16.msra.mxu0 %v6706_v57  ;;  %2509 = vmatprep.subr.bf16.mxu1 %v6571_v60  ;;  %v1020_v38 = vld [vmem:[#allocation9 + $0x608] sm:$0xff]  ;;  %v6523_v45 = vcombine.high %v892_v36, %v896_v37  ;;  %v6522_v57 = vcombine.low %v892_v36, %v896_v37  ;;  %v6645_v62 = vcombine.high %v1013_v52, %v1017_v56  ;;  %v973_v28 = vld [vmem:[#allocation9 + $0x490] sm:$0xff] }
 0x248   :  { %2552 = vmatprep.subr.bf16.mxu0 %v6699_v61  ;;  %v1024_v39 = vld [vmem:[#allocation9 + $0x628] sm:$0xff]  ;;  %v6517_v61 = vcombine.high %v885_v47, %v889_v48  ;;  %v837_v37 = vld [vmem:[#allocation9 + $0x50] sm:$0xff] }
 0x249   :  { %v6651_v46 = vcombine.high %v1020_v38, %v1024_v39  ;;  %v6650_v60 = vcombine.low %v1020_v38, %v1024_v39  ;;  %v841_v38 = vld [vmem:[#allocation9 + $0x70] sm:$0xff] }
 0x24a   :  { %2510 = vmatpush2.bf16.msra.mxu1 %v6570_v50  ;;  %v1005_v50 = vld [vmem:[#allocation9 + $0x590] sm:$0xff] }
 0x24b   :  { %2553 = vmatpush2.bf16.msra.mxu0 %v6698_v51  ;;  %2511 = vmatprep.subr.bf16.mxu1 %v6563_v53  ;;  %v1009_v51 = vld [vmem:[#allocation9 + $0x5b0] sm:$0xff]  ;;  %v6644_v53 = vcombine.low %v1013_v52, %v1017_v56 }
 0x24c   :  { %2554 = vmatprep.subr.bf16.mxu0 %v6691_v54  ;;  %v6509_v54 = vcombine.high %v877_v63, %v881_v0  ;;  %v6637_v2 = vcombine.high %v1005_v50, %v1009_v51  ;;  %v965_v39 = vld [vmem:[#allocation9 + $0x450] sm:$0xff] }
 0x24d   :  { %v829_v48 = vld [vmem:[#allocation9 + $0x10] sm:$0xff] }
 0x24e   :  { %2512 = vmatpush2.bf16.msra.mxu1 %v6562_v4  ;;  %v1001_v4 = vld [vmem:[#allocation9 + $0x570] sm:$0xff] }
 0x24f   :  { %2555 = vmatpush2.bf16.msra.mxu0 %v6690_v5  ;;  %2513 = vmatprep.subr.bf16.mxu1 %v6555_v6  ;;  %v6508_v5 = vcombine.low %v877_v63, %v881_v0  ;;  %v6636_v6 = vcombine.low %v1005_v50, %v1009_v51  ;;  %v6629_v8 = vcombine.high %v997_v3, %v1001_v4  ;;  %v833_v52 = vld [vmem:[#allocation9 + $0x30] sm:$0xff] }
 0x250   :  { %2556 = vmatprep.subr.bf16.mxu0 %v6683_v7  ;;  %v6501_v7 = vcombine.high %v869_v55, %v873_v1  ;;  %v957_v56 = vld [vmem:[#allocation9 + $0x410] sm:$0xff] }
 0x251   :  { %v949_v0 = vld [vmem:[#allocation9 + $0x3d0] sm:$0xff] }
 0x252   :  { %2514 = vmatpush2.bf16.msra.mxu1 %v6554_v12  ;;  %v993_v12 = vld [vmem:[#allocation9 + $0x530] sm:$0xff] }
 0x253   :  { %2557 = vmatpush2.bf16.msra.mxu0 %v6682_v13  ;;  %2515 = vmatprep.subr.bf16.mxu1 %v6547_v14  ;;  %v6500_v13 = vcombine.low %v869_v55, %v873_v1  ;;  %v6628_v14 = vcombine.low %v997_v3, %v1001_v4  ;;  %v6621_v16 = vcombine.high %v989_v11, %v993_v12  ;;  %v1077_v50 = vld [vmem:[#allocation9 + $0x7d0] sm:$0xff] }
 0x254   :  { %2558 = vmatprep.subr.bf16.mxu0 %v6675_v15  ;;  %v6493_v15 = vcombine.high %v861_v9, %v865_v10  ;;  %v1081_v51 = vld [vmem:[#allocation9 + $0x7f0] sm:$0xff] }
 0x255   :  { %v6709_v1 = vcombine.high %v1077_v50, %v1081_v51  ;;  %v945_v3 = vld [vmem:[#allocation9 + $0x3b0] sm:$0xff] }
 0x256   :  { %2516 = vmatpush2.bf16.msra.mxu1 %v6546_v20  ;;  %v985_v20 = vld [vmem:[#allocation9 + $0x4f0] sm:$0xff] }
 0x257   :  { %2559 = vmatpush2.bf16.msra.mxu0 %v6674_v21  ;;  %2517 = vmatprep.subr.bf16.mxu1 %v6539_v22  ;;  %v6492_v21 = vcombine.low %v861_v9, %v865_v10  ;;  %v6620_v22 = vcombine.low %v989_v11, %v993_v12  ;;  %v6613_v24 = vcombine.high %v981_v19, %v985_v20  ;;  %v1069_v4 = vld [vmem:[#allocation9 + $0x790] sm:$0xff] }
 0x258   :  { %2560 = vmatprep.subr.bf16.mxu0 %v6667_v23  ;;  %v6485_v23 = vcombine.high %v853_v17, %v857_v18  ;;  %v933_v10 = vld [vmem:[#allocation9 + $0x350] sm:$0xff] }
 0x259   :  { %v937_v11 = vld [vmem:[#allocation9 + $0x370] sm:$0xff] }
 0x25a   :  { %2518 = vmatpush2.bf16.msra.mxu1 %v6538_v31  ;;  %v977_v31 = vld [vmem:[#allocation9 + $0x4b0] sm:$0xff] }
 0x25b   :  { %2561 = vmatpush2.bf16.msra.mxu0 %v6666_v32  ;;  %2519 = vmatprep.subr.bf16.mxu1 %v6531_v33  ;;  %v6484_v32 = vcombine.low %v853_v17, %v857_v18  ;;  %v6612_v33 = vcombine.low %v981_v19, %v985_v20  ;;  %v6605_v36 = vcombine.high %v973_v28, %v977_v31  ;;  %v1061_v12 = vld [vmem:[#allocation9 + $0x750] sm:$0xff] }
 0x25c   :  { %2562 = vmatprep.subr.bf16.mxu0 %v6659_v34  ;;  %v6477_v34 = vcombine.high %v845_v25, %v849_v26  ;;  %v925_v18 = vld [vmem:[#allocation9 + $0x310] sm:$0xff] }
 0x25d   :  { %v929_v19 = vld [vmem:[#allocation9 + $0x330] sm:$0xff] }
 0x25e   :  { %2520 = vmatpush2.bf16.msra.mxu1 %v6530_v43  ;;  %v969_v43 = vld [vmem:[#allocation9 + $0x470] sm:$0xff] }
 0x25f   :  { %2563 = vmatpush2.bf16.msra.mxu0 %v6658_v44  ;;  %2521 = vmatprep.subr.bf16.mxu1 %v6523_v45  ;;  %v6476_v44 = vcombine.low %v845_v25, %v849_v26  ;;  %v6604_v45 = vcombine.low %v973_v28, %v977_v31  ;;  %v6597_v47 = vcombine.high %v965_v39, %v969_v43  ;;  %v1053_v20 = vld [vmem:[#allocation9 + $0x710] sm:$0xff] }
 0x260   :  { %2564 = vmatprep.subr.bf16.mxu0 %v6651_v46  ;;  %v6469_v46 = vcombine.high %v837_v37, %v841_v38  ;;  %v917_v26 = vld [vmem:[#allocation9 + $0x2d0] sm:$0xff] }
 0x261   :  { %v921_v28 = vld [vmem:[#allocation9 + $0x2f0] sm:$0xff] }
 0x262   :  { %2522 = vmatpush2.bf16.msra.mxu1 %v6522_v57  ;;  %v961_v57 = vld [vmem:[#allocation9 + $0x430] sm:$0xff] }
 0x263   :  { %2565 = vmatpush2.bf16.msra.mxu0 %v6650_v60  ;;  %2577 = vmatprep.subr.bf16.mxu1 %v6517_v61  ;;  %v6468_v60 = vcombine.low %v837_v37, %v841_v38  ;;  %v6596_v61 = vcombine.low %v965_v39, %v969_v43  ;;  %v6589_v63 = vcombine.high %v957_v56, %v961_v57  ;;  %v1045_v31 = vld [vmem:[#allocation9 + $0x6d0] sm:$0xff] }
 0x264   :  { %2620 = vmatprep.subr.bf16.mxu0 %v6645_v62  ;;  %v6461_v62 = vcombine.high %v829_v48, %v833_v52  ;;  %v909_v38 = vld [vmem:[#allocation9 + $0x290] sm:$0xff] }
 0x265   :  { %2524 = vmatmul.mubr.bf16.vlgmr.msra.gmra.mxu1 %v8357_v40  ;;  %v913_v39 = vld [vmem:[#allocation9 + $0x2b0] sm:$0xff] }
 0x266   :  { %2567 = vmatmul.mubr.bf16.vlgmr.msra.gmra.mxu0 %v8361_v42  ;;  %2578 = vmatpush1.bf16.msra.mxu1 %v6516_v49  ;;  %v953_v49 = vld [vmem:[#allocation9 + $0x3f0] sm:$0xff] }
 0x267   :  { %2609 = vmatprep.mubr.bf16.mxu1 %v8355_v35  ;;  %2621 = vmatpush1.bf16.msra.mxu0 %v6644_v53  ;;  %v6460_v53 = vcombine.low %v829_v48, %v833_v52  ;;  %v6581_v55 = vcombine.high %v949_v0, %v953_v49  ;;  %v1037_v43 = vld [vmem:[#allocation9 + $0x690] sm:$0xff] }
 0x268   :  { %2652 = vmatprep.mubr.bf16.mxu0 %v8359_v41  ;;  %2579 = vmatprep.subr.bf16.mxu1 %v6509_v54  ;;  %v6588_v54 = vcombine.low %v957_v56, %v961_v57  ;;  %v901_v52 = vld [vmem:[#allocation9 + $0x250] sm:$0xff] }
 0x269   :  { %2622 = vmatprep.subr.bf16.mxu0 %v6637_v2  ;;  %v941_v2 = vld [vmem:[#allocation9 + $0x390] sm:$0xff] }
 0x26a   :  { %2580 = vmatpush1.bf16.msra.mxu1 %v6508_v5  ;;  %v1073_v5 = vld [vmem:[#allocation9 + $0x7b0] sm:$0xff] }
 0x26b   :  { %2623 = vmatpush1.bf16.msra.mxu0 %v6636_v6  ;;  %2581 = vmatprep.subr.bf16.mxu1 %v6501_v7  ;;  %v6580_v6 = vcombine.low %v949_v0, %v953_v49  ;;  %v6708_v7 = vcombine.low %v1077_v50, %v1081_v51  ;;  %v6701_v9 = vcombine.high %v1069_v4, %v1073_v5  ;;  %v905_v56 = vld [vmem:[#allocation9 + $0x270] sm:$0xff] }
 0x26c   :  { %2624 = vmatprep.subr.bf16.mxu0 %v6629_v8  ;;  %v6573_v8 = vcombine.high %v941_v2, %v945_v3  ;;  %v1029_v57 = vld [vmem:[#allocation9 + $0x650] sm:$0xff] }
 0x26d   :  { %v893_v49 = vld [vmem:[#allocation9 + $0x210] sm:$0xff] }
 0x26e   :  { %2582 = vmatpush1.bf16.msra.mxu1 %v6500_v13  ;;  %v1065_v13 = vld [vmem:[#allocation9 + $0x770] sm:$0xff] }
 0x26f   :  { %2625 = vmatpush1.bf16.msra.mxu0 %v6628_v14  ;;  %2583 = vmatprep.subr.bf16.mxu1 %v6493_v15  ;;  %v6572_v14 = vcombine.low %v941_v2, %v945_v3  ;;  %v6700_v15 = vcombine.low %v1069_v4, %v1073_v5  ;;  %v6693_v17 = vcombine.high %v1061_v12, %v1065_v13  ;;  %v897_v50 = vld [vmem:[#allocation9 + $0x230] sm:$0xff]  ;;  %v886_v3 = vld [vmem:[#allocation9 + $0x1d8] sm:$0xff] }
 0x270   :  { %2626 = vmatprep.subr.bf16.mxu0 %v6621_v16  ;;  %v6565_v16 = vcombine.high %v933_v10, %v937_v11  ;;  %v1021_v51 = vld [vmem:[#allocation9 + $0x610] sm:$0xff]  ;;  %v890_v4 = vld [vmem:[#allocation9 + $0x1f8] sm:$0xff] }
 0x271   :  { %v1014_v5 = vld [vmem:[#allocation9 + $0x5d8] sm:$0xff] }
 0x272   :  { %2584 = vmatpush1.bf16.msra.mxu1 %v6492_v21  ;;  %v1057_v21 = vld [vmem:[#allocation9 + $0x730] sm:$0xff] }
 0x273   :  { %2627 = vmatpush1.bf16.msra.mxu0 %v6620_v22  ;;  %2585 = vmatprep.subr.bf16.mxu1 %v6485_v23  ;;  %v6564_v22 = vcombine.low %v933_v10, %v937_v11  ;;  %v6692_v23 = vcombine.low %v1061_v12, %v1065_v13  ;;  %v6685_v25 = vcombine.high %v1053_v20, %v1057_v21  ;;  %v878_v11 = vld [vmem:[#allocation9 + $0x198] sm:$0xff] }
 0x274   :  { %2628 = vmatprep.subr.bf16.mxu0 %v6613_v24  ;;  %v6557_v24 = vcombine.high %v925_v18, %v929_v19  ;;  %v882_v12 = vld [vmem:[#allocation9 + $0x1b8] sm:$0xff]  ;;  %v6518_v13 = vcombine.low %v886_v3, %v890_v4 }
 0x276   :  { %2586 = vmatpush1.bf16.msra.mxu1 %v6484_v32  ;;  %v1049_v32 = vld [vmem:[#allocation9 + $0x6f0] sm:$0xff] }
 0x277   :  { %2629 = vmatpush1.bf16.msra.mxu0 %v6612_v33  ;;  %2587 = vmatprep.subr.bf16.mxu1 %v6477_v34  ;;  %v6556_v33 = vcombine.low %v925_v18, %v929_v19  ;;  %v6684_v34 = vcombine.low %v1053_v20, %v1057_v21  ;;  %v6677_v37 = vcombine.high %v1045_v31, %v1049_v32  ;;  %v870_v18 = vld [vmem:[#allocation9 + $0x158] sm:$0xff] }
 0x278   :  { %2630 = vmatprep.subr.bf16.mxu0 %v6605_v36  ;;  %v6549_v36 = vcombine.high %v917_v26, %v921_v28  ;;  %v874_v19 = vld [vmem:[#allocation9 + $0x178] sm:$0xff] }
 0x279   :  { %v998_v21 = vld [vmem:[#allocation9 + $0x558] sm:$0xff] }
 0x27a   :  { %2588 = vmatpush1.bf16.msra.mxu1 %v6476_v44  ;;  %v1041_v44 = vld [vmem:[#allocation9 + $0x6b0] sm:$0xff] }
 0x27b   :  { %2631 = vmatpush1.bf16.msra.mxu0 %v6604_v45  ;;  %2589 = vmatprep.subr.bf16.mxu1 %v6469_v46  ;;  %v6548_v45 = vcombine.low %v917_v26, %v921_v28  ;;  %v6676_v46 = vcombine.low %v1045_v31, %v1049_v32  ;;  %v6669_v48 = vcombine.high %v1037_v43, %v1041_v44  ;;  %v862_v28 = vld [vmem:[#allocation9 + $0x118] sm:$0xff] }
 0x27c   :  { %2632 = vmatprep.subr.bf16.mxu0 %v6597_v47  ;;  %v6541_v47 = vcombine.high %v909_v38, %v913_v39  ;;  %v866_v31 = vld [vmem:[#allocation9 + $0x138] sm:$0xff] }
 0x27d   :  { %v990_v32 = vld [vmem:[#allocation9 + $0x518] sm:$0xff] }
 0x27e   :  { %2590 = vmatpush1.bf16.msra.mxu1 %v6468_v60  ;;  %v1033_v60 = vld [vmem:[#allocation9 + $0x670] sm:$0xff] }
 0x27f   :  { %2633 = vmatpush1.bf16.msra.mxu0 %v6596_v61  ;;  %2591 = vmatprep.subr.bf16.mxu1 %v6461_v62  ;;  %v6540_v61 = vcombine.low %v909_v38, %v913_v39  ;;  %v6668_v62 = vcombine.low %v1037_v43, %v1041_v44  ;;  %v6661_v0 = vcombine.high %v1029_v57, %v1033_v60  ;;  %v854_v38 = vld [vmem:[#allocation9 + $0xd8] sm:$0xff] }
 0x280   :  { %2634 = vmatprep.subr.bf16.mxu0 %v6589_v63  ;;  %v6533_v63 = vcombine.high %v901_v52, %v905_v56  ;;  %v858_v39 = vld [vmem:[#allocation9 + $0xf8] sm:$0xff] }
 0x281   :  { %v982_v43 = vld [vmem:[#allocation9 + $0x4d8] sm:$0xff] }
 0x282   :  { %2592 = vmatpush1.bf16.msra.mxu1 %v6460_v53  ;;  %v1025_v53 = vld [vmem:[#allocation9 + $0x630] sm:$0xff]  ;;  %v986_v44 = vld [vmem:[#allocation9 + $0x4f8] sm:$0xff] }
 0x283   :  { %2635 = vmatpush1.bf16.msra.mxu0 %v6588_v54  ;;  %2593 = vmatprep.subr.bf16.mxu1 %v6581_v55  ;;  %v6532_v54 = vcombine.low %v901_v52, %v905_v56  ;;  %v6660_v55 = vcombine.low %v1029_v57, %v1033_v60  ;;  %v6653_v2 = vcombine.high %v1021_v51, %v1025_v53  ;;  %v850_v52 = vld [vmem:[#allocation9 + $0xb8] sm:$0xff] }
 0x284   :  { %2636 = vmatprep.subr.bf16.mxu0 %v6709_v1  ;;  %v6525_v1 = vcombine.high %v893_v49, %v897_v50  ;;  %v974_v56 = vld [vmem:[#allocation9 + $0x498] sm:$0xff]  ;;  %v6486_v60 = vcombine.low %v854_v38, %v858_v39 }
 0x285   :  { %v978_v57 = vld [vmem:[#allocation9 + $0x4b8] sm:$0xff] }
 0x286   :  { %2594 = vmatpush2.bf16.msra.mxu1 %v6580_v6  ;;  %v1018_v6 = vld [vmem:[#allocation9 + $0x5f8] sm:$0xff] }
 0x287   :  { %2637 = vmatpush2.bf16.msra.mxu0 %v6708_v7  ;;  %2595 = vmatprep.subr.bf16.mxu1 %v6573_v8  ;;  %v6524_v7 = vcombine.low %v893_v49, %v897_v50  ;;  %v6652_v8 = vcombine.low %v1021_v51, %v1025_v53  ;;  %v6647_v10 = vcombine.high %v1014_v5, %v1018_v6  ;;  %v842_v49 = vld [vmem:[#allocation9 + $0x78] sm:$0xff] }
 0x288   :  { %2638 = vmatprep.subr.bf16.mxu0 %v6701_v9  ;;  %v6519_v9 = vcombine.high %v886_v3, %v890_v4  ;;  %v966_v50 = vld [vmem:[#allocation9 + $0x458] sm:$0xff] }
 0x289   :  { %v970_v51 = vld [vmem:[#allocation9 + $0x478] sm:$0xff] }
 0x28a   :  { %2596 = vmatpush2.bf16.msra.mxu1 %v6572_v14  ;;  %v1006_v14 = vld [vmem:[#allocation9 + $0x598] sm:$0xff] }
 0x28b   :  { %2639 = vmatpush2.bf16.msra.mxu0 %v6700_v15  ;;  %2597 = vmatprep.subr.bf16.mxu1 %v6565_v16  ;;  %v1010_v15 = vld [vmem:[#allocation9 + $0x5b8] sm:$0xff]  ;;  %v6646_v16 = vcombine.low %v1014_v5, %v1018_v6 }
 0x28c   :  { %2640 = vmatprep.subr.bf16.mxu0 %v6693_v17  ;;  %v6511_v17 = vcombine.high %v878_v11, %v882_v12  ;;  %v6639_v20 = vcombine.high %v1006_v14, %v1010_v15  ;;  %v834_v3 = vld [vmem:[#allocation9 + $0x38] sm:$0xff] }
 0x28d   :  { %v958_v4 = vld [vmem:[#allocation9 + $0x418] sm:$0xff] }
 0x28e   :  { %2598 = vmatpush2.bf16.msra.mxu1 %v6564_v22  ;;  %v1002_v22 = vld [vmem:[#allocation9 + $0x578] sm:$0xff] }
 0x28f   :  { %2641 = vmatpush2.bf16.msra.mxu0 %v6692_v23  ;;  %2599 = vmatprep.subr.bf16.mxu1 %v6557_v24  ;;  %v6510_v23 = vcombine.low %v878_v11, %v882_v12  ;;  %v6638_v24 = vcombine.low %v1006_v14, %v1010_v15  ;;  %v6631_v26 = vcombine.high %v998_v21, %v1002_v22  ;;  %v962_v5 = vld [vmem:[#allocation9 + $0x438] sm:$0xff] }
 0x290   :  { %2642 = vmatprep.subr.bf16.mxu0 %v6685_v25  ;;  %v6503_v25 = vcombine.high %v870_v18, %v874_v19  ;;  %v954_v11 = vld [vmem:[#allocation9 + $0x3f8] sm:$0xff]  ;;  %v6590_v15 = vcombine.low %v958_v4, %v962_v5 }
 0x291   :  { %v1078_v12 = vld [vmem:[#allocation9 + $0x7d8] sm:$0xff] }
 0x292   :  { %2600 = vmatpush2.bf16.msra.mxu1 %v6556_v33  ;;  %v994_v33 = vld [vmem:[#allocation9 + $0x538] sm:$0xff] }
 0x293   :  { %2643 = vmatpush2.bf16.msra.mxu0 %v6684_v34  ;;  %2601 = vmatprep.subr.bf16.mxu1 %v6549_v36  ;;  %v6502_v34 = vcombine.low %v870_v18, %v874_v19  ;;  %v6630_v36 = vcombine.low %v998_v21, %v1002_v22  ;;  %v942_v18 = vld [vmem:[#allocation9 + $0x398] sm:$0xff] }
 0x294   :  { %2644 = vmatprep.subr.bf16.mxu0 %v6677_v37  ;;  %v6495_v37 = vcombine.high %v862_v28, %v866_v31  ;;  %v946_v19 = vld [vmem:[#allocation9 + $0x3b8] sm:$0xff] }
 0x295   :  { %v1074_v21 = vld [vmem:[#allocation9 + $0x7b8] sm:$0xff] }
 0x296   :  { %2602 = vmatpush2.bf16.msra.mxu1 %v6548_v45  ;;  %v6622_v45 = vcombine.low %v990_v32, %v994_v33 }
 0x297   :  { %2645 = vmatpush2.bf16.msra.mxu0 %v6676_v46  ;;  %2603 = vmatprep.subr.bf16.mxu1 %v6541_v47  ;;  %v6487_v46 = vcombine.high %v854_v38, %v858_v39  ;;  %v6615_v47 = vcombine.high %v982_v43, %v986_v44  ;;  %v930_v38 = vld [vmem:[#allocation9 + $0x338] sm:$0xff] }
 0x298   :  { %2646 = vmatprep.subr.bf16.mxu0 %v6669_v48  ;;  %v846_v48 = vld [vmem:[#allocation9 + $0x98] sm:$0xff] }
 0x299   :  { %v6478_v53 = vcombine.low %v846_v48, %v850_v52  ;;  %v1054_v39 = vld [vmem:[#allocation9 + $0x718] sm:$0xff] }
 0x29a   :  { %2604 = vmatpush2.bf16.msra.mxu1 %v6540_v61  ;;  %v6614_v61 = vcombine.low %v982_v43, %v986_v44  ;;  %v1058_v43 = vld [vmem:[#allocation9 + $0x738] sm:$0xff] }
 0x29b   :  { %2647 = vmatpush2.bf16.msra.mxu0 %v6668_v62  ;;  %2605 = vmatprep.subr.bf16.mxu1 %v6533_v63  ;;  %v6479_v62 = vcombine.high %v846_v48, %v850_v52  ;;  %v6607_v63 = vcombine.high %v974_v56, %v978_v57  ;;  %v922_v48 = vld [vmem:[#allocation9 + $0x2f8] sm:$0xff] }
 0x29c   :  { %2648 = vmatprep.subr.bf16.mxu0 %v6661_v0  ;;  %v838_v0 = vld [vmem:[#allocation9 + $0x58] sm:$0xff] }
 0x29d   :  { %v6470_v6 = vcombine.low %v838_v0, %v842_v49  ;;  %v1046_v52 = vld [vmem:[#allocation9 + $0x6d8] sm:$0xff] }
 0x29e   :  { %2606 = vmatpush2.bf16.msra.mxu1 %v6532_v54  ;;  %v6606_v54 = vcombine.low %v974_v56, %v978_v57  ;;  %v1050_v56 = vld [vmem:[#allocation9 + $0x6f8] sm:$0xff] }
 0x29f   :  { %2649 = vmatpush2.bf16.msra.mxu0 %v6660_v55  ;;  %2607 = vmatprep.subr.bf16.mxu1 %v6525_v1  ;;  %v6471_v55 = vcombine.high %v838_v0, %v842_v49  ;;  %v6599_v1 = vcombine.high %v966_v50, %v970_v51  ;;  %v914_v0 = vld [vmem:[#allocation9 + $0x2b8] sm:$0xff] }
 0x2a0   :  { %2650 = vmatprep.subr.bf16.mxu0 %v6653_v2  ;;  %v830_v2 = vld [vmem:[#allocation9 + $0x18] sm:$0xff] }
 0x2a1   :  { %v6462_v14 = vcombine.low %v830_v2, %v834_v3  ;;  %v1038_v49 = vld [vmem:[#allocation9 + $0x698] sm:$0xff] }
 0x2a2   :  { %2608 = vmatpush2.bf16.msra.mxu1 %v6524_v7  ;;  %v6598_v7 = vcombine.low %v966_v50, %v970_v51  ;;  %v1042_v50 = vld [vmem:[#allocation9 + $0x6b8] sm:$0xff] }
 0x2a3   :  { %2651 = vmatpush2.bf16.msra.mxu0 %v6652_v8  ;;  %2663 = vmatprep.subr.bf16.mxu1 %v6519_v9  ;;  %v6463_v8 = vcombine.high %v830_v2, %v834_v3  ;;  %v6591_v9 = vcombine.high %v958_v4, %v962_v5  ;;  %v906_v2 = vld [vmem:[#allocation9 + $0x278] sm:$0xff] }
 0x2a4   :  { %2706 = vmatprep.subr.bf16.mxu0 %v6647_v10  ;;  %v950_v10 = vld [vmem:[#allocation9 + $0x3d8] sm:$0xff] }
 0x2a5   :  { %2610 = vmatmul.mubr.bf16.vlgmr.msra.gmra.mxu1 %v8357_v40  ;;  %v6582_v22 = vcombine.low %v950_v10, %v954_v11  ;;  %v1030_v3 = vld [vmem:[#allocation9 + $0x658] sm:$0xff] }
 0x2a6   :  { %2653 = vmatmul.mubr.bf16.vlgmr.msra.gmra.mxu0 %v8361_v42  ;;  %2664 = vmatpush1.bf16.msra.mxu1 %v6518_v13  ;;  %v1082_v13 = vld [vmem:[#allocation9 + $0x7f8] sm:$0xff] }
 0x2a7   :  { %2695 = vmatprep.mubr.bf16.mxu1 %v8355_v35  ;;  %2707 = vmatpush1.bf16.msra.mxu0 %v6646_v16  ;;  %v6623_v35 = vcombine.high %v990_v32, %v994_v33  ;;  %v6583_v16 = vcombine.high %v950_v10, %v954_v11  ;;  %v1066_v32 = vld [vmem:[#allocation9 + $0x778] sm:$0xff]  ;;  %v6574_v33 = vcombine.low %v942_v18, %v946_v19 }
 0x2a8   :  { %2738 = vmatprep.mubr.bf16.mxu0 %v8359_v41  ;;  %2665 = vmatprep.subr.bf16.mxu1 %v6511_v17  ;;  %v6494_v41 = vcombine.low %v862_v28, %v866_v31  ;;  %v6711_v17 = vcombine.high %v1078_v12, %v1082_v13  ;;  %v938_v28 = vld [vmem:[#allocation9 + $0x378] sm:$0xff] }
 0x2a9   :  { %2708 = vmatprep.subr.bf16.mxu0 %v6639_v20  ;;  %v1070_v20 = vld [vmem:[#allocation9 + $0x798] sm:$0xff] }
 0x2aa   :  { %2666 = vmatpush1.bf16.msra.mxu1 %v6510_v23  ;;  %v6710_v23 = vcombine.low %v1078_v12, %v1082_v13  ;;  %v1062_v31 = vld [vmem:[#allocation9 + $0x758] sm:$0xff] }
 0x2ab   :  { %2709 = vmatpush1.bf16.msra.mxu0 %v6638_v24  ;;  %2667 = vmatprep.subr.bf16.mxu1 %v6503_v25  ;;  %v6575_v24 = vcombine.high %v942_v18, %v946_v19  ;;  %v6703_v25 = vcombine.high %v1070_v20, %v1074_v21  ;;  %v1034_v4 = vld [vmem:[#allocation9 + $0x678] sm:$0xff]  ;;  %v7388_v19 = vld [vmem:[#allocation12 + $0x18c] ss:$28 sps:$4 sm:$0xff]  }
 0x2ac   :  { %2710 = vmatprep.subr.bf16.mxu0 %v6631_v26  ;;  %v934_v26 = vld [vmem:[#allocation9 + $0x358] sm:$0xff] }
 0x2ad   :  { %v6566_v44 = vcombine.low %v934_v26, %v938_v28  ;;  %v898_v10 = vld [vmem:[#allocation9 + $0x238] sm:$0xff] }
 0x2ae   :  { %2668 = vmatpush1.bf16.msra.mxu1 %v6502_v34  ;;  %v6702_v34 = vcombine.low %v1070_v20, %v1074_v21  ;;  %v1022_v11 = vld [vmem:[#allocation9 + $0x618] sm:$0xff]  ;;  %v7403_v20 = vld [vmem:[#allocation12 + $0x50c] ss:$28 sps:$4 sm:$0xff]  }
 0x2af   :  { %2711 = vmatpush1.bf16.msra.mxu0 %v6630_v36  ;;  %2669 = vmatprep.subr.bf16.mxu1 %v6495_v37  ;;  %v6567_v36 = vcombine.high %v934_v26, %v938_v28  ;;  %v6695_v37 = vcombine.high %v1062_v31, %v1066_v32  ;;  %v1026_v12 = vld [vmem:[#allocation9 + $0x638] sm:$0xff]  ;;  %v7386_v21 = vld [vmem:[#allocation12 + $0x188] ss:$28 sps:$4 sm:$0xff]  }
 0x2b0   :  { %2712 = vmatprep.subr.bf16.mxu0 %v6623_v35  ;;  %v926_v35 = vld [vmem:[#allocation9 + $0x318] sm:$0xff]  ;;  %v6654_v18 = vcombine.low %v1022_v11, %v1026_v12 }
 0x2b1   :  { %v6558_v57 = vcombine.low %v926_v35, %v930_v38  ;;  %v7409_v26 = vld [vmem:[#allocation12 + $0x4d4] ss:$28 sps:$4 sm:$0xff]  }
 0x2b2   :  { %2670 = vmatpush1.bf16.msra.mxu1 %v6494_v41  ;;  %v6694_v41 = vcombine.low %v1062_v31, %v1066_v32  ;;  %v7389_v32 = vld [vmem:[#allocation12 + $0x150] ss:$28 sps:$4 sm:$0xff]  }
 0x2b3   :  { %2713 = vmatpush1.bf16.msra.mxu0 %v6622_v45  ;;  %2671 = vmatprep.subr.bf16.mxu1 %v6487_v46  ;;  %v6559_v45 = vcombine.high %v926_v35, %v930_v38  ;;  %v6687_v46 = vcombine.high %v1054_v39, %v1058_v43  ;;  %v7415_v38 = vld [vmem:[#allocation12 + $0x49c] ss:$28 sps:$4 sm:$0xff]  }
 0x2b4   :  { %2714 = vmatprep.subr.bf16.mxu0 %v6615_v47  ;;  %v918_v47 = vld [vmem:[#allocation9 + $0x2d8] sm:$0xff] }
 0x2b5   :  { %v6550_v51 = vcombine.low %v918_v47, %v922_v48 }
 0x2b6   :  { %2672 = vmatpush1.bf16.msra.mxu1 %v6486_v60  ;;  %v6686_v60 = vcombine.low %v1054_v39, %v1058_v43  ;;  %v7392_v43 = vld [vmem:[#allocation12 + $0x118] ss:$28 sps:$4 sm:$0xff]  }
 0x2b7   :  { %2715 = vmatpush1.bf16.msra.mxu0 %v6614_v61  ;;  %2673 = vmatprep.subr.bf16.mxu1 %v6479_v62  ;;  %v6551_v61 = vcombine.high %v918_v47, %v922_v48  ;;  %v6679_v62 = vcombine.high %v1046_v52, %v1050_v56 }
 0x2b8   :  { %2716 = vmatprep.subr.bf16.mxu0 %v6607_v63  ;;  %v910_v63 = vld [vmem:[#allocation9 + $0x298] sm:$0xff] }
 0x2b9   :  { %v6542_v5 = vcombine.low %v910_v63, %v914_v0 }
 0x2ba   :  { %2674 = vmatpush1.bf16.msra.mxu1 %v6478_v53  ;;  %v6678_v53 = vcombine.low %v1046_v52, %v1050_v56  ;;  %v7395_v52 = vld [vmem:[#allocation12 + $0xe0] ss:$28 sps:$4 sm:$0xff]  }
 0x2bb   :  { %2717 = vmatpush1.bf16.msra.mxu0 %v6606_v54  ;;  %2675 = vmatprep.subr.bf16.mxu1 %v6471_v55  ;;  %v6543_v54 = vcombine.high %v910_v63, %v914_v0  ;;  %v6671_v55 = vcombine.high %v1038_v49, %v1042_v50  ;;  %v7398_v0 = vld [vmem:[#allocation12 + $0xa8] ss:$28 sps:$4 sm:$0xff]  }
 0x2bc   :  { %2718 = vmatprep.subr.bf16.mxu0 %v6599_v1  ;;  %v902_v1 = vld [vmem:[#allocation9 + $0x258] sm:$0xff] }
 0x2bd   :  { %v6534_v13 = vcombine.low %v902_v1, %v906_v2 }
 0x2be   :  { %2676 = vmatpush1.bf16.msra.mxu1 %v6470_v6  ;;  %v6670_v6 = vcombine.low %v1038_v49, %v1042_v50 }
 0x2bf   :  { %2719 = vmatpush1.bf16.msra.mxu0 %v6598_v7  ;;  %2677 = vmatprep.subr.bf16.mxu1 %v6463_v8  ;;  %v6535_v7 = vcombine.high %v902_v1, %v906_v2  ;;  %v6663_v8 = vcombine.high %v1030_v3, %v1034_v4  ;;  %v7404_v1 = vld [vmem:[#allocation12 + $0x70] ss:$28 sps:$4 sm:$0xff]   ;;  %v7412_v2 = vld [vmem:[#allocation12 + $0x3c] ss:$28 sps:$4 sm:$0xff]  }
 0x2c0   :  { %2720 = vmatprep.subr.bf16.mxu0 %v6591_v9  ;;  %v894_v9 = vld [vmem:[#allocation9 + $0x218] sm:$0xff] }
 0x2c2   :  { %2678 = vmatpush1.bf16.msra.mxu1 %v6462_v14  ;;  %v6662_v14 = vcombine.low %v1030_v3, %v1034_v4  ;;  %v7431_v3 = vld [vmem:[#allocation12 + $0x3f0] ss:$28 sps:$4 sm:$0xff]   ;;  %v7439_v4 = vld [vmem:[#allocation12 + $0x3bc] ss:$28 sps:$4 sm:$0xff]  }
 0x2c3   :  { %2721 = vmatpush1.bf16.msra.mxu0 %v6590_v15  ;;  %2679 = vmatprep.subr.bf16.mxu1 %v6583_v16  ;;  %v6527_v15 = vcombine.high %v894_v9, %v898_v10  ;;  %v6655_v16 = vcombine.high %v1022_v11, %v1026_v12  ;;  %v7443_v11 = vld [vmem:[#allocation12 + $0x380] ss:$28 sps:$4 sm:$0xff]   ;;  %v7451_v12 = vld [vmem:[#allocation12 + $0x6cc] ss:$28 sps:$4 sm:$0xff]  }
 0x2c4   :  { %2722 = vmatprep.subr.bf16.mxu0 %v6711_v17  ;;  %v6526_v17 = vcombine.low %v894_v9, %v898_v10  ;;  %v7416_v9 = vld [vmem:[#allocation12] ss:$28 sps:$4 sm:$0xff]   ;;  %v7424_v10 = vld [vmem:[#allocation12 + $0x34c] ss:$28 sps:$4 sm:$0xff]  }
 0x2c6   :  { %2680 = vmatpush2.bf16.msra.mxu1 %v6582_v22  ;;  %v8383_v22 = vld [vmem:[#allocation10] sm:$0xff] }
 0x2c7   :  { %2723 = vmatpush2.bf16.msra.mxu0 %v6710_v23  ;;  %2681 = vmatprep.subr.bf16.mxu1 %v6575_v24  ;;  %v7391_v23 = vld [vmem:[#allocation12 + $0x154] ss:$28 sps:$4 sm:$0xff]   ;;  %v7401_v24 = vld [vmem:[#allocation12 + $0x508] ss:$28 sps:$4 sm:$0xff]  }
 0x2c8   :  { %2724 = vmatprep.subr.bf16.mxu0 %v6703_v25  ;;  %v1092_v25 = vrot.slane %v8383_v22, %v8324_v30 }
 0x2ca   :  { %2682 = vmatpush2.bf16.msra.mxu1 %v6574_v33 }
 0x2cb   :  { %2725 = vmatpush2.bf16.msra.mxu0 %v6702_v34  ;;  %2683 = vmatprep.subr.bf16.mxu1 %v6567_v36  ;;  %v7394_v34 = vld [vmem:[#allocation12 + $0x11c] ss:$28 sps:$4 sm:$0xff]   ;;  %v7407_v36 = vld [vmem:[#allocation12 + $0x4d0] ss:$28 sps:$4 sm:$0xff]  }
 0x2cc   :  { %2726 = vmatprep.subr.bf16.mxu0 %v6695_v37 }
 0x2ce   :  { %2684 = vmatpush2.bf16.msra.mxu1 %v6566_v44 }
 0x2cf   :  { %2727 = vmatpush2.bf16.msra.mxu0 %v6694_v41  ;;  %2685 = vmatprep.subr.bf16.mxu1 %v6559_v45  ;;  %v7397_v41 = vld [vmem:[#allocation12 + $0xe4] ss:$28 sps:$4 sm:$0xff]   ;;  %v7413_v45 = vld [vmem:[#allocation12 + $0x498] ss:$28 sps:$4 sm:$0xff]  }
 0x2d0   :  { %2728 = vmatprep.subr.bf16.mxu0 %v6687_v46  ;;  %v7421_v46 = vld [vmem:[#allocation12 + $0x464] ss:$28 sps:$4 sm:$0xff]  }
 0x2d2   :  { %2686 = vmatpush2.bf16.msra.mxu1 %v6558_v57 }
 0x2d3   :  { %2729 = vmatpush2.bf16.msra.mxu0 %v6686_v60  ;;  %2687 = vmatprep.subr.bf16.mxu1 %v6551_v61  ;;  %v7400_v60 = vld [vmem:[#allocation12 + $0xac] ss:$28 sps:$4 sm:$0xff]   ;;  %v7419_v61 = vld [vmem:[#allocation12 + $0x460] ss:$28 sps:$4 sm:$0xff]  }
 0x2d4   :  { %2730 = vmatprep.subr.bf16.mxu0 %v6679_v62  ;;  %v7427_v62 = vld [vmem:[#allocation12 + $0x42c] ss:$28 sps:$4 sm:$0xff]  }
 0x2d6   :  { %2688 = vmatpush2.bf16.msra.mxu1 %v6550_v51  ;;  %v7406_v51 = vld [vmem:[#allocation12 + $0x74] ss:$28 sps:$4 sm:$0xff]  }
 0x2d7   :  { %2731 = vmatpush2.bf16.msra.mxu0 %v6678_v53  ;;  %2689 = vmatprep.subr.bf16.mxu1 %v6543_v54  ;;  %v7425_v53 = vld [vmem:[#allocation12 + $0x428] ss:$28 sps:$4 sm:$0xff]  }
 0x2d8   :  { %2732 = vmatprep.subr.bf16.mxu0 %v6671_v55  ;;  %v7433_v55 = vld [vmem:[#allocation12 + $0x3f4] ss:$28 sps:$4 sm:$0xff]  }
 0x2da   :  { %2690 = vmatpush2.bf16.msra.mxu1 %v6542_v5  ;;  %v7410_v5 = vld [vmem:[#allocation12 + $0x38] ss:$28 sps:$4 sm:$0xff]  }
 0x2db   :  { %2733 = vmatpush2.bf16.msra.mxu0 %v6670_v6  ;;  %2691 = vmatprep.subr.bf16.mxu1 %v6535_v7  ;;  %v7418_v6 = vld [vmem:[#allocation12 + $0x4] ss:$28 sps:$4 sm:$0xff]   ;;  %v7437_v7 = vld [vmem:[#allocation12 + $0x3b8] ss:$28 sps:$4 sm:$0xff]  }
 0x2dc   :  { %2734 = vmatprep.subr.bf16.mxu0 %v6663_v8  ;;  %v7445_v8 = vld [vmem:[#allocation12 + $0x384] ss:$28 sps:$4 sm:$0xff]  }
 0x2de   :  { %2692 = vmatpush2.bf16.msra.mxu1 %v6534_v13  ;;  %v7422_v13 = vld [vmem:[#allocation12 + $0x348] ss:$28 sps:$4 sm:$0xff]  }
 0x2df   :  { %2735 = vmatpush2.bf16.msra.mxu0 %v6662_v14  ;;  %2693 = vmatprep.subr.bf16.mxu1 %v6527_v15  ;;  %v7430_v14 = vld [vmem:[#allocation12 + $0x314] ss:$28 sps:$4 sm:$0xff]   ;;  %v7449_v15 = vld [vmem:[#allocation12 + $0x6c8] ss:$28 sps:$4 sm:$0xff]  }
 0x2e0   :  { %2736 = vmatprep.subr.bf16.mxu0 %v6655_v16  ;;  %v7457_v16 = vld [vmem:[#allocation12 + $0x694] ss:$28 sps:$4 sm:$0xff]  }
 0x2e2   :  { %2694 = vmatpush2.bf16.msra.mxu1 %v6526_v17  ;;  %v7428_v17 = vld [vmem:[#allocation12 + $0x310] ss:$28 sps:$4 sm:$0xff]  }
 0x2e3   :  { %2737 = vmatpush2.bf16.msra.mxu0 %v6654_v18  ;;  %5658 = vmatprep.subr.bf16.mxu1 %v7388_v19  ;;  %v7436_v18 = vld [vmem:[#allocation12 + $0x2dc] ss:$28 sps:$4 sm:$0xff]   ;;  %v7455_v19 = vld [vmem:[#allocation12 + $0x690] ss:$28 sps:$4 sm:$0xff]  }
 0x2e4   :  { %5701 = vmatprep.subr.bf16.mxu0 %v7403_v20  ;;  %v7463_v20 = vld [vmem:[#allocation12 + $0x65c] ss:$28 sps:$4 sm:$0xff]  }
 0x2e5   :  { %2696 = vmatmul.mubr.bf16.vlgmr.msra.gmra.mxu1 %v8357_v40  ;;  %v8388_v28 = vpop.f32.mrf.mxu1 }
 0x2e6   :  { %2739 = vmatmul.mubr.bf16.vlgmr.msra.gmra.mxu0 %v8361_v42  ;;  %v8391_v31 = vpop.f32.mrf.mxu0  ;;  %5659 = vmatpush1.bf16.msra.mxu1 %v7386_v21  ;;  %v7434_v21 = vld [vmem:[#allocation12 + $0x2d8] ss:$28 sps:$4 sm:$0xff]  }
 0x2e7   :  { %v2441_v33 = vpop.f32.mrf.mxu1  ;;  %5660 = vmatprep.subr.bf16.mxu1 %v7391_v23  ;;  %5702 = vmatpush1.bf16.msra.mxu0 %v7401_v24  ;;  %v7442_v23 = vld [vmem:[#allocation12 + $0x2a4] ss:$28 sps:$4 sm:$0xff]   ;;  %v7461_v24 = vld [vmem:[#allocation12 + $0x658] ss:$28 sps:$4 sm:$0xff]  }
 0x2e8   :  { %v2442_v37 = vadd.f32 %v2441_v33, %v1092_v25  ;;  %v2484_v35 = vpop.f32.mrf.mxu0  ;;  %5703 = vmatprep.subr.bf16.mxu0 %v7409_v26  ;;  %v7440_v26 = vld [vmem:[#allocation12 + $0x2a0] ss:$28 sps:$4 sm:$0xff]  }
 0x2e9   :  { %v8393_v39 = vpop.f32.mrf.mxu1  ;;  %v7467_v33 = vld [vmem:[#allocation12 + $0x620] ss:$28 sps:$4 sm:$0xff]  }
 0x2ea   :  { %v8395_v40 = vpop.f32.mrf.mxu0  ;;  %5661 = vmatpush1.bf16.msra.mxu1 %v7389_v32  ;;  %v2485_v42 = vadd.f32 %v2484_v35, %v2442_v37  ;;  %v7448_v32 = vld [vmem:[#allocation12 + $0x26c] ss:$28 sps:$4 sm:$0xff]   ;;  %v7454_v35 = vld [vmem:[#allocation12 + $0x234] ss:$28 sps:$4 sm:$0xff]  }
 0x2eb   :  { %v2445_v44 = vpop.f32.mrf.mxu1  ;;  %5662 = vmatprep.subr.bf16.mxu1 %v7394_v34  ;;  %5704 = vmatpush1.bf16.msra.mxu0 %v7407_v36  ;;  %v7472_v34 = vld [vmem:[#allocation12 + $0x5ec] ss:$28 sps:$4 sm:$0xff]   ;;  %v1088_v36 = vrot.slane %v8383_v22, %v8321_v29 }
 0x2ec   :  { %5705 = vmatprep.subr.bf16.mxu0 %v7415_v38  ;;  %v2446_v47 = vadd.f32 %v2445_v44, %v1092_v25  ;;  %v2488_v48 = vpop.f32.mrf.mxu0  ;;  %v2766_v56 = vmul.f32 0.2, %v2485_v42  ;;  %vm2750_vm12 = vcmp.gt.f32.partialorder %v2485_v42, 0.0  ;;  %v7469_v25 = vld [vmem:[#allocation12 + $0x624] ss:$28 sps:$4 sm:$0xff]  }
 0x2ed   :  { %v7446_v37 = vld [vmem:[#allocation12 + $0x268] ss:$28 sps:$4 sm:$0xff]   ;;  %v2440_v44 = vadd.f32 %v8388_v28, %v1088_v36 }
 0x2ee   :  { %5663 = vmatpush1.bf16.msra.mxu1 %v7392_v43  ;;  %v2489_v57 = vadd.f32 %v2488_v48, %v2446_v47  ;;  %v2782_v49 = vsel %vm2750_vm12, %v2485_v42, %v2766_v56  ;;  %v7470_v38 = vld [vmem:[#allocation12 + $0x5e8] ss:$28 sps:$4 sm:$0xff]   ;;  %v2444_v43 = vadd.f32 %v8393_v39, %v1088_v36  ;;  %v7475_v42 = vld [vmem:[#allocation12 + $0x5b4] ss:$28 sps:$4 sm:$0xff]   ;;  %v7478_v48 = vld [vmem:[#allocation12 + $0x57c] ss:$28 sps:$4 sm:$0xff]  }
 0x2ef   :  { %5664 = vmatprep.subr.bf16.mxu1 %v7397_v41  ;;  %5706 = vmatpush1.bf16.msra.mxu0 %v7413_v45  ;;  %v7452_v41 = vld [vmem:[#allocation12 + $0x230] ss:$28 sps:$4 sm:$0xff]   ;;  %v7460_v45 = vld [vmem:[#allocation12 + $0x1fc] ss:$28 sps:$4 sm:$0xff]   ;;  %v7466_v39 = vld [vmem:[#allocation12 + $0x1c4] ss:$28 sps:$4 sm:$0xff]  }
 0x2f0   :  { %5707 = vmatprep.subr.bf16.mxu0 %v7421_v46  ;;  %vm2758_vm13 = vcmp.gt.f32.partialorder %v2489_v57, 0.0  ;;  %v2774_v63 = vmul.f32 0.2, %v2489_v57  ;;  %v7473_v46 = vld [vmem:[#allocation12 + $0x5b0] ss:$28 sps:$4 sm:$0xff]   ;;  %v2487_v47 = vadd.f32 %v8395_v40, %v2444_v43 }
 0x2f1   :  { %v7458_v56 = vld [vmem:[#allocation12 + $0x1f8] ss:$28 sps:$4 sm:$0xff]   ;;  %v7481_v28 = vld [vmem:[#allocation12 + $0x544] ss:$28 sps:$4 sm:$0xff]  }
 0x2f2   :  { %5665 = vmatpush1.bf16.msra.mxu1 %v7395_v52  ;;  %v2790_v50 = vsel %vm2758_vm13, %v2489_v57, %v2774_v63  ;;  %v2483_v52 = vadd.f32 %v8391_v31, %v2440_v44  ;;  %v7476_v57 = vld [vmem:[#allocation12 + $0x578] ss:$28 sps:$4 sm:$0xff]   ;;  %vm2757_vm14 = vcmp.gt.f32.partialorder %v2487_v47, 0.0  ;;  %v7479_v40 = vld [vmem:[#allocation12 + $0x540] ss:$28 sps:$4 sm:$0xff]  }
 0x2f3   :  { %5666 = vmatprep.subr.bf16.mxu1 %v7400_v60  ;;  %5708 = vmatpush1.bf16.msra.mxu0 %v7419_v61  ;;  %v8397_v54 = vpack.c.bf16 %v2790_v50, %v2782_v49  ;;  %v2773_v60 = vmul.f32 0.2, %v2487_v47  ;;  %v7484_v63 = vld [vmem:[#allocation12 + $0x88c] ss:$28 sps:$4 sm:$0xff]  }
 0x2f4   :  { %5709 = vmatprep.subr.bf16.mxu0 %v7427_v62  ;;  %v2765_v61 = vmul.f32 0.2, %v2483_v52  ;;  %v7464_v62 = vld [vmem:[#allocation12 + $0x1c0] ss:$28 sps:$4 sm:$0xff]   ;;  %vm2749_vm15 = vcmp.gt.f32.partialorder %v2483_v52, 0.0 }
 0x2f5   :  { %5690 = vmatprep.mubr.bf16.mxu1 %v8397_v54  ;;  %v7532_v31 = vld [vmem:[#allocation12 + $0xc0c] ss:$28 sps:$4 sm:$0xff]  }
 0x2f6   :  { %5667 = vmatpush1.bf16.msra.mxu1 %v7398_v0  ;;  %v2789_v0 = vsel %vm2757_vm14, %v2487_v47, %v2773_v60  ;;  %v2781_v49 = vsel %vm2749_vm15, %v2483_v52, %v2765_v61  ;;  %v7482_v50 = vld [vmem:[#allocation12 + $0x888] ss:$28 sps:$4 sm:$0xff]   ;;  %v7502_v47 = vld [vmem:[#allocation12 + $0x73c] ss:$28 sps:$4 sm:$0xff]  }
 0x2f7   :  { %5668 = vmatprep.subr.bf16.mxu1 %v7406_v51  ;;  %5710 = vmatpush1.bf16.msra.mxu0 %v7425_v53  ;;  %v8406_v51 = vpack.c.bf16 %v2789_v0, %v2781_v49  ;;  %v7487_v53 = vld [vmem:[#allocation12 + $0x854] ss:$28 sps:$4 sm:$0xff]   ;;  %v7494_v36 = vld [vmem:[#allocation12 + $0x7a8] ss:$28 sps:$4 sm:$0xff]   ;;  %v7544_v52 = vld [vmem:[#allocation12 + $0xb9c] ss:$28 sps:$4 sm:$0xff]  }
 0x2f8   :  { %5711 = vmatprep.subr.bf16.mxu0 %v7433_v55  ;;  %v1096_v55 = vrot.slane %v8383_v22, %v8348_v59  ;;  %v7530_v44 = vld [vmem:[#allocation12 + $0xc08] ss:$28 sps:$4 sm:$0xff]   ;;  %v7511_v0 = vld [vmem:[#allocation12 + $0xa14] ss:$28 sps:$4 sm:$0xff]  }
 0x2f9   :  { %v7550_v60 = vld [vmem:[#allocation12 + $0xb64] ss:$28 sps:$4 sm:$0xff]   ;;  %v7508_v61 = vld [vmem:[#allocation12 + $0xa4c] ss:$28 sps:$4 sm:$0xff]   ;;  %v7562_v49 = vld [vmem:[#allocation12 + $0xaf4] ss:$28 sps:$4 sm:$0xff]  }
 0x2fa   :  { %5669 = vmatpush1.bf16.msra.mxu1 %v7404_v1  ;;  %v1100_v1 = vrot.slane %v8383_v22, %v8345_v58 }
 0x2fb   :  { %5670 = vmatprep.subr.bf16.mxu1 %v7412_v2  ;;  %5712 = vmatpush1.bf16.msra.mxu0 %v7431_v3 }
 0x2fc   :  { %5713 = vmatprep.subr.bf16.mxu0 %v7439_v4  ;;  %v7485_v4 = vld [vmem:[#allocation12 + $0x850] ss:$28 sps:$4 sm:$0xff]  }
 0x2fe   :  { %5671 = vmatpush1.bf16.msra.mxu1 %v7410_v5 }
 0x2ff   :  { %5672 = vmatprep.subr.bf16.mxu1 %v7418_v6  ;;  %5714 = vmatpush1.bf16.msra.mxu0 %v7437_v7  ;;  %v7490_v6 = vld [vmem:[#allocation12 + $0x81c] ss:$28 sps:$4 sm:$0xff]  }
 0x300   :  { %5715 = vmatprep.subr.bf16.mxu0 %v7445_v8 }
 0x302   :  { %5673 = vmatpush1.bf16.msra.mxu1 %v7416_v9 }
 0x303   :  { %5674 = vmatprep.subr.bf16.mxu1 %v7424_v10  ;;  %5716 = vmatpush1.bf16.msra.mxu0 %v7443_v11 }
 0x304   :  { %5717 = vmatprep.subr.bf16.mxu0 %v7451_v12 }
 0x306   :  { %5675 = vmatpush2.bf16.msra.mxu1 %v7422_v13  ;;  %v7488_v13 = vld [vmem:[#allocation12 + $0x818] ss:$28 sps:$4 sm:$0xff]  }
 0x307   :  { %5676 = vmatprep.subr.bf16.mxu1 %v7430_v14  ;;  %5718 = vmatpush2.bf16.msra.mxu0 %v7449_v15 }
 0x308   :  { %5719 = vmatprep.subr.bf16.mxu0 %v7457_v16  ;;  %v7493_v16 = vld [vmem:[#allocation12 + $0x7e4] ss:$28 sps:$4 sm:$0xff]  }
 0x30a   :  { %5677 = vmatpush2.bf16.msra.mxu1 %v7428_v17 }
 0x30b   :  { %5678 = vmatprep.subr.bf16.mxu1 %v7436_v18  ;;  %5720 = vmatpush2.bf16.msra.mxu0 %v7455_v19 }
 0x30c   :  { %5721 = vmatprep.subr.bf16.mxu0 %v7463_v20 }
 0x30e   :  { %5679 = vmatpush2.bf16.msra.mxu1 %v7434_v21 }
 0x30f   :  { %5680 = vmatprep.subr.bf16.mxu1 %v7442_v23  ;;  %5722 = vmatpush2.bf16.msra.mxu0 %v7461_v24  ;;  %v7491_v23 = vld [vmem:[#allocation12 + $0x7e0] ss:$28 sps:$4 sm:$0xff]  }
 0x310   :  { %5723 = vmatprep.subr.bf16.mxu0 %v7469_v25 }
 0x312   :  { %5681 = vmatpush2.bf16.msra.mxu1 %v7440_v26  ;;  %v7496_v26 = vld [vmem:[#allocation12 + $0x7ac] ss:$28 sps:$4 sm:$0xff]  }
 0x313   :  { %5682 = vmatprep.subr.bf16.mxu1 %v7448_v32  ;;  %5724 = vmatpush2.bf16.msra.mxu0 %v7467_v33 }
 0x314   :  { %5725 = vmatprep.subr.bf16.mxu0 %v7472_v34 }
 0x316   :  { %5683 = vmatpush2.bf16.msra.mxu1 %v7446_v37 }
 0x317   :  { %5684 = vmatprep.subr.bf16.mxu1 %v7454_v35  ;;  %5726 = vmatpush2.bf16.msra.mxu0 %v7470_v38  ;;  %v7499_v38 = vld [vmem:[#allocation12 + $0x774] ss:$28 sps:$4 sm:$0xff]  }
 0x318   :  { %5727 = vmatprep.subr.bf16.mxu0 %v7475_v42 }
 0x31a   :  { %5685 = vmatpush2.bf16.msra.mxu1 %v7452_v41 }
 0x31b   :  { %5686 = vmatprep.subr.bf16.mxu1 %v7460_v45  ;;  %5728 = vmatpush2.bf16.msra.mxu0 %v7473_v46  ;;  %v7538_v45 = vld [vmem:[#allocation12 + $0xbd4] ss:$28 sps:$4 sm:$0xff]  }
 0x31c   :  { %5729 = vmatprep.subr.bf16.mxu0 %v7478_v48  ;;  %v7497_v46 = vld [vmem:[#allocation12 + $0x770] ss:$28 sps:$4 sm:$0xff]  }
 0x31d   :  { %v7536_v48 = vld [vmem:[#allocation12 + $0xbd0] ss:$28 sps:$4 sm:$0xff]  }
 0x31e   :  { %5687 = vmatpush2.bf16.msra.mxu1 %v7458_v56  ;;  %v7500_v56 = vld [vmem:[#allocation12 + $0x738] ss:$28 sps:$4 sm:$0xff]  }
 0x31f   :  { %5688 = vmatprep.subr.bf16.mxu1 %v7466_v39  ;;  %5730 = vmatpush2.bf16.msra.mxu0 %v7476_v57  ;;  %v7505_v39 = vld [vmem:[#allocation12 + $0x704] ss:$28 sps:$4 sm:$0xff]   ;;  %v7542_v57 = vld [vmem:[#allocation12 + $0xb98] ss:$28 sps:$4 sm:$0xff]  }
 0x320   :  { %5731 = vmatprep.subr.bf16.mxu0 %v7481_v28  ;;  %v7503_v28 = vld [vmem:[#allocation12 + $0x700] ss:$28 sps:$4 sm:$0xff]  }
 0x322   :  { %5689 = vmatpush2.bf16.msra.mxu1 %v7464_v62  ;;  %v7548_v62 = vld [vmem:[#allocation12 + $0xb60] ss:$28 sps:$4 sm:$0xff]  }
 0x323   :  { %5732 = vmatpush2.bf16.msra.mxu0 %v7479_v40  ;;  %5744 = vmatprep.subr.bf16.mxu1 %v7484_v63  ;;  %v7556_v40 = vld [vmem:[#allocation12 + $0xb2c] ss:$28 sps:$4 sm:$0xff]  }
 0x324   :  { %5787 = vmatprep.subr.bf16.mxu0 %v7532_v31  ;;  %v7506_v63 = vld [vmem:[#allocation12 + $0xa48] ss:$28 sps:$4 sm:$0xff]  }
 0x325   :  { %v2525_v2 = vpop.f32.mrf.mxu1  ;;  %5691 = vmatmul.mubr.bf16.vlgmr.msra.gmra.mxu1 %v8406_v51  ;;  %v7554_v31 = vld [vmem:[#allocation12 + $0xb28] ss:$28 sps:$4 sm:$0xff]  }
 0x326   :  { %v2568_v3 = vpop.f32.mrf.mxu0  ;;  %5745 = vmatpush1.bf16.msra.mxu1 %v7482_v50  ;;  %v2526_v7 = vadd.f32 %v2525_v2, %v1096_v55  ;;  %v7509_v50 = vld [vmem:[#allocation12 + $0xa10] ss:$28 sps:$4 sm:$0xff]   ;;  %v7512_v2 = vld [vmem:[#allocation12 + $0x9d8] ss:$28 sps:$4 sm:$0xff]  }
 0x327   :  { %v2527_v5 = vpop.f32.mrf.mxu1  ;;  %5746 = vmatprep.subr.bf16.mxu1 %v7487_v53  ;;  %v7514_v53 = vld [vmem:[#allocation12 + $0x9dc] ss:$28 sps:$4 sm:$0xff]  }
 0x328   :  { %v2528_v8 = vadd.f32 %v2527_v5, %v1100_v1  ;;  %v2570_v9 = vpop.f32.mrf.mxu0  ;;  %v2569_v17 = vadd.f32 %v2568_v3, %v2526_v7  ;;  %v7517_v3 = vld [vmem:[#allocation12 + $0x9a4] ss:$28 sps:$4 sm:$0xff]   ;;  %v7520_v7 = vld [vmem:[#allocation12 + $0x96c] ss:$28 sps:$4 sm:$0xff]  }
 0x329   :  { %v2529_v10 = vpop.f32.mrf.mxu1  ;;  %v7574_v5 = vld [vmem:[#allocation12 + $0xa84] ss:$28 sps:$4 sm:$0xff]  }
 0x32a   :  { %v2530_v11 = vadd.f32 %v2529_v10, %v1096_v55  ;;  %v2572_v12 = vpop.f32.mrf.mxu0  ;;  %5747 = vmatpush1.bf16.msra.mxu1 %v7485_v4  ;;  %v2571_v14 = vadd.f32 %v2570_v9, %v2528_v8  ;;  %v2767_v32 = vmul.f32 0.2, %v2569_v17  ;;  %vm2751_vm2 = vcmp.gt.f32.partialorder %v2569_v17, 0.0  ;;  %v7560_v55 = vld [vmem:[#allocation12 + $0xaf0] ss:$28 sps:$4 sm:$0xff]  }
 0x32b   :  { %v2531_v15 = vpop.f32.mrf.mxu1  ;;  %5748 = vmatprep.subr.bf16.mxu1 %v7490_v6  ;;  %v7566_v4 = vld [vmem:[#allocation12 + $0xab8] ss:$28 sps:$4 sm:$0xff]   ;;  %v7515_v6 = vld [vmem:[#allocation12 + $0x9a0] ss:$28 sps:$4 sm:$0xff]   ;;  %v7580_v9 = vld [vmem:[#allocation12 + $0xdcc] ss:$28 sps:$4 sm:$0xff]  }
 0x32c   :  { %v2573_v18 = vadd.f32 %v2572_v12, %v2530_v11  ;;  %v2532_v19 = vadd.f32 %v2531_v15, %v1100_v1  ;;  %v2574_v21 = vpop.f32.mrf.mxu0  ;;  %v2768_v24 = vmul.f32 0.2, %v2571_v14  ;;  %vm2752_vm1 = vcmp.gt.f32.partialorder %v2571_v14, 0.0  ;;  %v7568_v1 = vld [vmem:[#allocation12 + $0xabc] ss:$28 sps:$4 sm:$0xff]  }
 0x32d   :  { %v2783_v43 = vsel %vm2751_vm2, %v2569_v17, %v2767_v32  ;;  %v7572_v8 = vld [vmem:[#allocation12 + $0xa80] ss:$28 sps:$4 sm:$0xff]   ;;  %v7518_v10 = vld [vmem:[#allocation12 + $0x968] ss:$28 sps:$4 sm:$0xff]   ;;  %v7523_v11 = vld [vmem:[#allocation12 + $0x934] ss:$28 sps:$4 sm:$0xff]  }
 0x32e   :  { %v2775_v20 = vmul.f32 0.2, %v2573_v18  ;;  %5749 = vmatpush1.bf16.msra.mxu1 %v7488_v13  ;;  %vm2759_vm0 = vcmp.gt.f32.partialorder %v2573_v18, 0.0  ;;  %v2575_v25 = vadd.f32 %v2574_v21, %v2532_v19  ;;  %v2784_v37 = vsel %vm2752_vm1, %v2571_v14, %v2768_v24  ;;  %v7578_v12 = vld [vmem:[#allocation12 + $0xdc8] ss:$28 sps:$4 sm:$0xff]  }
 0x32f   :  { %5750 = vmatprep.subr.bf16.mxu1 %v7493_v16  ;;  %v7586_v13 = vld [vmem:[#allocation12 + $0xd94] ss:$28 sps:$4 sm:$0xff]   ;;  %v7526_v15 = vld [vmem:[#allocation12 + $0x8fc] ss:$28 sps:$4 sm:$0xff]   ;;  %v7529_v19 = vld [vmem:[#allocation12 + $0x8c4] ss:$28 sps:$4 sm:$0xff]  }
 0x330   :  { %vm2760_vm3 = vcmp.gt.f32.partialorder %v2575_v25, 0.0  ;;  %v2776_v33 = vmul.f32 0.2, %v2575_v25  ;;  %v2791_v34 = vsel %vm2759_vm0, %v2573_v18, %v2775_v20  ;;  %v7521_v14 = vld [vmem:[#allocation12 + $0x930] ss:$28 sps:$4 sm:$0xff]  }
 0x331   :  { %v8415_v41 = vpack.c.bf16 %v2791_v34, %v2783_v43  ;;  %v7584_v16 = vld [vmem:[#allocation12 + $0xd90] ss:$28 sps:$4 sm:$0xff]   ;;  %v7592_v17 = vld [vmem:[#allocation12 + $0xd5c] ss:$28 sps:$4 sm:$0xff]   ;;  %v7598_v21 = vld [vmem:[#allocation12 + $0xd24] ss:$28 sps:$4 sm:$0xff]  }
 0x332   :  { %5751 = vmatpush1.bf16.msra.mxu1 %v7491_v23  ;;  %v2792_v35 = vsel %vm2760_vm3, %v2575_v25, %v2776_v33  ;;  %v7524_v18 = vld [vmem:[#allocation12 + $0x8f8] ss:$28 sps:$4 sm:$0xff]   ;;  %v7527_v23 = vld [vmem:[#allocation12 + $0x8c0] ss:$28 sps:$4 sm:$0xff]   ;;  %v1103_v25 = vsub.s32 4, %v8318_v27 }
 0x333   :  { %5752 = vmatprep.subr.bf16.mxu1 %v7496_v26  ;;  %v8413_v42 = vpack.c.bf16 %v2792_v35, %v2784_v37  ;;  %v7590_v20 = vld [vmem:[#allocation12 + $0xd58] ss:$28 sps:$4 sm:$0xff]   ;;  %v1107_v26 = vsub.s32 5, %v8318_v27  ;;  %v7596_v32 = vld [vmem:[#allocation12 + $0xd20] ss:$28 sps:$4 sm:$0xff]  }
 0x334   :  { %v7535_v24 = vld [vmem:[#allocation12 + $0x194] ss:$28 sps:$4 sm:$0xff]   ;;  %v7604_v33 = vld [vmem:[#allocation12 + $0xcec] ss:$28 sps:$4 sm:$0xff]   ;;  %v1104_v34 = vrot.slane %v8383_v22, %v1103_v25 }
 0x335   :  { %5733 = vmatprep.mubr.bf16.mxu0 %v8413_v42  ;;  %v7602_v37 = vld [vmem:[#allocation12 + $0xce8] ss:$28 sps:$4 sm:$0xff]  }
 0x336   :  { %5753 = vmatpush1.bf16.msra.mxu1 %v7494_v36  ;;  %5734 = vmatmul.mubr.bf16.vlgmr.msra.gmra.mxu0 %v8415_v41  ;;  %v1108_v36 = vrot.slane %v8383_v22, %v1107_v26 }
 0x337   :  { %5754 = vmatprep.subr.bf16.mxu1 %v7499_v38  ;;  %5788 = vmatpush1.bf16.msra.mxu0 %v7530_v44  ;;  %v7610_v38 = vld [vmem:[#allocation12 + $0xcb4] ss:$28 sps:$4 sm:$0xff]  }
 0x338   :  { %5789 = vmatprep.subr.bf16.mxu0 %v7538_v45 }
 0x33a   :  { %5755 = vmatpush1.bf16.msra.mxu1 %v7497_v46 }
 0x33b   :  { %5756 = vmatprep.subr.bf16.mxu1 %v7502_v47  ;;  %5790 = vmatpush1.bf16.msra.mxu0 %v7536_v48  ;;  %v7608_v48 = vld [vmem:[#allocation12 + $0xcb0] ss:$28 sps:$4 sm:$0xff]  }
 0x33c   :  { %5791 = vmatprep.subr.bf16.mxu0 %v7544_v52 }
 0x33e   :  { %5757 = vmatpush1.bf16.msra.mxu1 %v7500_v56  ;;  %v7616_v56 = vld [vmem:[#allocation12 + $0xc7c] ss:$28 sps:$4 sm:$0xff]  }
 0x33f   :  { %5758 = vmatprep.subr.bf16.mxu1 %v7505_v39  ;;  %5792 = vmatpush1.bf16.msra.mxu0 %v7542_v57 }
 0x340   :  { %5793 = vmatprep.subr.bf16.mxu0 %v7550_v60 }
 0x342   :  { %5759 = vmatpush1.bf16.msra.mxu1 %v7503_v28 }
 0x343   :  { %5760 = vmatprep.subr.bf16.mxu1 %v7508_v61  ;;  %5794 = vmatpush1.bf16.msra.mxu0 %v7548_v62 }
 0x344   :  { %5795 = vmatprep.subr.bf16.mxu0 %v7556_v40  ;;  %v7614_v40 = vld [vmem:[#allocation12 + $0xc78] ss:$28 sps:$4 sm:$0xff]  }
 0x346   :  { %5761 = vmatpush2.bf16.msra.mxu1 %v7506_v63 }
 0x347   :  { %5762 = vmatprep.subr.bf16.mxu1 %v7511_v0  ;;  %5796 = vmatpush1.bf16.msra.mxu0 %v7554_v31  ;;  %v7622_v0 = vld [vmem:[#allocation12 + $0xc44] ss:$28 sps:$4 sm:$0xff]  }
 0x348   :  { %5797 = vmatprep.subr.bf16.mxu0 %v7562_v49 }
 0x34a   :  { %5763 = vmatpush2.bf16.msra.mxu1 %v7509_v50 }
 0x34b   :  { %5764 = vmatprep.subr.bf16.mxu1 %v7514_v53  ;;  %5798 = vmatpush1.bf16.msra.mxu0 %v7560_v55 }
 0x34c   :  { %5799 = vmatprep.subr.bf16.mxu0 %v7568_v1  ;;  %v7620_v1 = vld [vmem:[#allocation12 + $0xc40] ss:$28 sps:$4 sm:$0xff]  }
 0x34e   :  { %5765 = vmatpush2.bf16.msra.mxu1 %v7512_v2 }
 0x34f   :  { %5766 = vmatprep.subr.bf16.mxu1 %v7517_v3  ;;  %5800 = vmatpush1.bf16.msra.mxu0 %v7566_v4  ;;  %v7628_v3 = vld [vmem:[#allocation12 + $0x514] ss:$28 sps:$4 sm:$0xff]  }
 0x350   :  { %5801 = vmatprep.subr.bf16.mxu0 %v7574_v5 }
 0x352   :  { %5767 = vmatpush2.bf16.msra.mxu1 %v7515_v6 }
 0x353   :  { %5768 = vmatprep.subr.bf16.mxu1 %v7520_v7  ;;  %5802 = vmatpush1.bf16.msra.mxu0 %v7572_v8 }
 0x354   :  { %5803 = vmatprep.subr.bf16.mxu0 %v7580_v9  ;;  %v7533_v9 = vld [vmem:[#allocation12 + $0x190] ss:$28 sps:$4 sm:$0xff]  }
 0x356   :  { %5769 = vmatpush2.bf16.msra.mxu1 %v7518_v10 }
 0x357   :  { %5770 = vmatprep.subr.bf16.mxu1 %v7523_v11  ;;  %5804 = vmatpush2.bf16.msra.mxu0 %v7578_v12  ;;  %v7541_v11 = vld [vmem:[#allocation12 + $0x15c] ss:$28 sps:$4 sm:$0xff]  }
 0x358   :  { %5805 = vmatprep.subr.bf16.mxu0 %v7586_v13  ;;  %v7539_v12 = vld [vmem:[#allocation12 + $0x158] ss:$28 sps:$4 sm:$0xff]   ;;  %v7547_v13 = vld [vmem:[#allocation12 + $0x124] ss:$28 sps:$4 sm:$0xff]  }
 0x35a   :  { %5771 = vmatpush2.bf16.msra.mxu1 %v7521_v14  ;;  %v7545_v14 = vld [vmem:[#allocation12 + $0x120] ss:$28 sps:$4 sm:$0xff]  }
 0x35b   :  { %5772 = vmatprep.subr.bf16.mxu1 %v7526_v15  ;;  %5806 = vmatpush2.bf16.msra.mxu0 %v7584_v16  ;;  %v7553_v15 = vld [vmem:[#allocation12 + $0xec] ss:$28 sps:$4 sm:$0xff]  }
 0x35c   :  { %5807 = vmatprep.subr.bf16.mxu0 %v7592_v17  ;;  %v7551_v16 = vld [vmem:[#allocation12 + $0xe8] ss:$28 sps:$4 sm:$0xff]   ;;  %v7559_v17 = vld [vmem:[#allocation12 + $0xb4] ss:$28 sps:$4 sm:$0xff]  }
 0x35e   :  { %5773 = vmatpush2.bf16.msra.mxu1 %v7524_v18  ;;  %v7557_v18 = vld [vmem:[#allocation12 + $0xb0] ss:$28 sps:$4 sm:$0xff]  }
 0x35f   :  { %5774 = vmatprep.subr.bf16.mxu1 %v7529_v19  ;;  %5808 = vmatpush2.bf16.msra.mxu0 %v7590_v20  ;;  %v7565_v19 = vld [vmem:[#allocation12 + $0x7c] ss:$28 sps:$4 sm:$0xff]  }
 0x360   :  { %5809 = vmatprep.subr.bf16.mxu0 %v7598_v21  ;;  %v7563_v20 = vld [vmem:[#allocation12 + $0x78] ss:$28 sps:$4 sm:$0xff]   ;;  %v7571_v21 = vld [vmem:[#allocation12 + $0x44] ss:$28 sps:$4 sm:$0xff]  }
 0x362   :  { %5775 = vmatpush2.bf16.msra.mxu1 %v7527_v23  ;;  %v7569_v23 = vld [vmem:[#allocation12 + $0x40] ss:$28 sps:$4 sm:$0xff]  }
 0x363   :  { %5830 = vmatprep.subr.bf16.mxu1 %v7535_v24  ;;  %5810 = vmatpush2.bf16.msra.mxu0 %v7596_v32  ;;  %v7577_v24 = vld [vmem:[#allocation12 + $0xc] ss:$28 sps:$4 sm:$0xff]  }
 0x364   :  { %5811 = vmatprep.subr.bf16.mxu0 %v7604_v33  ;;  %v7575_v32 = vld [vmem:[#allocation12 + $0x8] ss:$28 sps:$4 sm:$0xff]   ;;  %v7583_v33 = vld [vmem:[#allocation12 + $0x354] ss:$28 sps:$4 sm:$0xff]  }
 0x365   :  { %v2611_v35 = vpop.f32.mrf.mxu1 }
 0x366   :  { %v2654_v43 = vpop.f32.mrf.mxu0  ;;  %v2612_v45 = vadd.f32 %v2611_v35, %v1104_v34  ;;  %v7595_v35 = vld [vmem:[#allocation12 + $0x2e4] ss:$28 sps:$4 sm:$0xff]  }
 0x367   :  { %v2613_v44 = vpop.f32.mrf.mxu1  ;;  %5812 = vmatpush2.bf16.msra.mxu0 %v7602_v37  ;;  %v7587_v37 = vld [vmem:[#allocation12 + $0x318] ss:$28 sps:$4 sm:$0xff]  }
 0x368   :  { %v2614_v46 = vadd.f32 %v2613_v44, %v1108_v36  ;;  %v2656_v47 = vpop.f32.mrf.mxu0  ;;  %5813 = vmatprep.subr.bf16.mxu0 %v7610_v38  ;;  %v2655_v61 = vadd.f32 %v2654_v43, %v2612_v45  ;;  %v7593_v38 = vld [vmem:[#allocation12 + $0x2e0] ss:$28 sps:$4 sm:$0xff]   ;;  %v7601_v43 = vld [vmem:[#allocation12 + $0x2ac] ss:$28 sps:$4 sm:$0xff]   ;;  %v1111_v45 = vsub.s32 6, %v8318_v27 }
 0x369   :  { %v2615_v52 = vpop.f32.mrf.mxu1  ;;  %v7599_v44 = vld [vmem:[#allocation12 + $0x2a8] ss:$28 sps:$4 sm:$0xff]  }
 0x36a   :  { %v2616_v39 = vadd.f32 %v2615_v52, %v1104_v34  ;;  %v2658_v57 = vpop.f32.mrf.mxu0  ;;  %v2657_v60 = vadd.f32 %v2656_v47, %v2614_v46  ;;  %v2769_v55 = vmul.f32 0.2, %v2655_v61  ;;  %vm2753_vm6 = vcmp.gt.f32.partialorder %v2655_v61, 0.0  ;;  %v7581_v34 = vld [vmem:[#allocation12 + $0x350] ss:$28 sps:$4 sm:$0xff]  }
 0x36b   :  { %v2617_v28 = vpop.f32.mrf.mxu1  ;;  %5814 = vmatpush2.bf16.msra.mxu0 %v7608_v48  ;;  %v1115_v46 = vsub.s32 7, %v8318_v27  ;;  %v7607_v47 = vld [vmem:[#allocation12 + $0x274] ss:$28 sps:$4 sm:$0xff]   ;;  %v1112_v48 = vrot.slane %v8383_v22, %v1111_v45 }
 0x36c   :  { %v2659_v62 = vadd.f32 %v2658_v57, %v2616_v39  ;;  %v2618_v63 = vadd.f32 %v2617_v28, %v1108_v36  ;;  %5815 = vmatprep.subr.bf16.mxu0 %v7616_v56  ;;  %v2660_v49 = vpop.f32.mrf.mxu0  ;;  %v2770_v50 = vmul.f32 0.2, %v2657_v60  ;;  %vm2754_vm5 = vcmp.gt.f32.partialorder %v2657_v60, 0.0  ;;  %v7589_v36 = vld [vmem:[#allocation12 + $0x31c] ss:$28 sps:$4 sm:$0xff]  }
 0x36d   :  { %v2785_v7 = vsel %vm2753_vm6, %v2655_v61, %v2769_v55  ;;  %v7605_v52 = vld [vmem:[#allocation12 + $0x270] ss:$28 sps:$4 sm:$0xff]   ;;  %v1116_v56 = vrot.slane %v8383_v22, %v1115_v46  ;;  %v7613_v57 = vld [vmem:[#allocation12 + $0x23c] ss:$28 sps:$4 sm:$0xff]   ;;  %v7644_v46 = vld [vmem:[#allocation12 + $0x468] ss:$28 sps:$4 sm:$0xff]  }
 0x36e   :  { %v2777_v31 = vmul.f32 0.2, %v2659_v62  ;;  %vm2761_vm4 = vcmp.gt.f32.partialorder %v2659_v62, 0.0  ;;  %v2661_v53 = vadd.f32 %v2660_v49, %v2618_v63  ;;  %v2786_v5 = vsel %vm2754_vm5, %v2657_v60, %v2770_v50  ;;  %v7611_v63 = vld [vmem:[#allocation12 + $0x238] ss:$28 sps:$4 sm:$0xff]  }
 0x36f   :  { %5816 = vmatpush2.bf16.msra.mxu0 %v7614_v40  ;;  %v7617_v22 = vld [vmem:[#allocation12 + $0x200] ss:$28 sps:$4 sm:$0xff]  }
 0x370   :  { %vm2762_vm7 = vcmp.gt.f32.partialorder %v2661_v53, 0.0  ;;  %v2778_v2 = vmul.f32 0.2, %v2661_v53  ;;  %5817 = vmatprep.subr.bf16.mxu0 %v7622_v0  ;;  %v2793_v4 = vsel %vm2761_vm4, %v2659_v62, %v2777_v31  ;;  %v7619_v31 = vld [vmem:[#allocation12 + $0x204] ss:$28 sps:$4 sm:$0xff]  }
 0x371   :  { %v8429_v10 = vpack.c.bf16 %v2793_v4, %v2785_v7  ;;  %v7625_v4 = vld [vmem:[#allocation12 + $0x1cc] ss:$28 sps:$4 sm:$0xff]  }
 0x372   :  { %v2794_v6 = vsel %vm2762_vm7, %v2661_v53, %v2778_v2 }
 0x373   :  { %v8427_v8 = vpack.c.bf16 %v2794_v6, %v2786_v5  ;;  %5818 = vmatpush2.bf16.msra.mxu0 %v7620_v1 }
 0x374   :  { %5873 = vmatprep.subr.bf16.mxu0 %v7628_v3 }
 0x375   :  { %5776 = vmatprep.mubr.bf16.mxu1 %v8427_v8 }
 0x376   :  { %5777 = vmatmul.mubr.bf16.vlgmr.msra.gmra.mxu1 %v8429_v10 }
 0x377   :  { %5831 = vmatpush1.bf16.msra.mxu1 %v7533_v9  ;;  %5862 = vmatprep.mubr.bf16.mxu1 %v8397_v54 }
 0x378   :  { %5832 = vmatprep.subr.bf16.mxu1 %v7541_v11 }
 0x37b   :  { %5833 = vmatpush1.bf16.msra.mxu1 %v7539_v12  ;;  %v7623_v12 = vld [vmem:[#allocation12 + $0x1c8] ss:$28 sps:$4 sm:$0xff]  }
 0x37c   :  { %5834 = vmatprep.subr.bf16.mxu1 %v7547_v13 }
 0x37f   :  { %5835 = vmatpush1.bf16.msra.mxu1 %v7545_v14  ;;  %v7631_v14 = vld [vmem:[#allocation12 + $0x894] ss:$28 sps:$4 sm:$0xff]  }
 0x380   :  { %5836 = vmatprep.subr.bf16.mxu1 %v7553_v15 }
 0x383   :  { %5837 = vmatpush1.bf16.msra.mxu1 %v7551_v16 }
 0x384   :  { %5838 = vmatprep.subr.bf16.mxu1 %v7559_v17 }
 0x387   :  { %5839 = vmatpush1.bf16.msra.mxu1 %v7557_v18 }
 0x388   :  { %5840 = vmatprep.subr.bf16.mxu1 %v7565_v19 }
 0x38b   :  { %5841 = vmatpush1.bf16.msra.mxu1 %v7563_v20  ;;  %v7626_v20 = vld [vmem:[#allocation12 + $0x510] ss:$28 sps:$4 sm:$0xff]  }
 0x38c   :  { %5842 = vmatprep.subr.bf16.mxu1 %v7571_v21  ;;  %v7629_v21 = vld [vmem:[#allocation12 + $0x890] ss:$28 sps:$4 sm:$0xff]  }
 0x38f   :  { %5843 = vmatpush1.bf16.msra.mxu1 %v7569_v23 }
 0x390   :  { %5844 = vmatprep.subr.bf16.mxu1 %v7577_v24  ;;  %v7634_v24 = vld [vmem:[#allocation12 + $0x4dc] ss:$28 sps:$4 sm:$0xff]  }
 0x393   :  { %5845 = vmatpush1.bf16.msra.mxu1 %v7575_v32  ;;  %v7637_v32 = vld [vmem:[#allocation12 + $0x85c] ss:$28 sps:$4 sm:$0xff]  }
 0x394   :  { %5846 = vmatprep.subr.bf16.mxu1 %v7583_v33  ;;  %v7632_v33 = vld [vmem:[#allocation12 + $0x4d8] ss:$28 sps:$4 sm:$0xff]  }
 0x397   :  { %5847 = vmatpush2.bf16.msra.mxu1 %v7581_v34  ;;  %v7635_v34 = vld [vmem:[#allocation12 + $0x858] ss:$28 sps:$4 sm:$0xff]  }
 0x398   :  { %5848 = vmatprep.subr.bf16.mxu1 %v7589_v36  ;;  %v7640_v36 = vld [vmem:[#allocation12 + $0x4a4] ss:$28 sps:$4 sm:$0xff]  }
 0x39b   :  { %5849 = vmatpush2.bf16.msra.mxu1 %v7587_v37  ;;  %v7643_v37 = vld [vmem:[#allocation12 + $0x824] ss:$28 sps:$4 sm:$0xff]  }
 0x39c   :  { %5850 = vmatprep.subr.bf16.mxu1 %v7595_v35  ;;  %v7638_v35 = vld [vmem:[#allocation12 + $0x4a0] ss:$28 sps:$4 sm:$0xff]  }
 0x39f   :  { %5851 = vmatpush2.bf16.msra.mxu1 %v7593_v38  ;;  %v7641_v38 = vld [vmem:[#allocation12 + $0x820] ss:$28 sps:$4 sm:$0xff]  }
 0x3a0   :  { %5852 = vmatprep.subr.bf16.mxu1 %v7601_v43  ;;  %v7646_v43 = vld [vmem:[#allocation12 + $0x46c] ss:$28 sps:$4 sm:$0xff]  }
 0x3a3   :  { %5853 = vmatpush2.bf16.msra.mxu1 %v7599_v44  ;;  %v7649_v44 = vld [vmem:[#allocation12 + $0x7ec] ss:$28 sps:$4 sm:$0xff]  }
 0x3a4   :  { %5854 = vmatprep.subr.bf16.mxu1 %v7607_v47  ;;  %v7647_v47 = vld [vmem:[#allocation12 + $0x7e8] ss:$28 sps:$4 sm:$0xff]  }
 0x3a5   :  { %v2697_v39 = vpop.f32.mrf.mxu1 }
 0x3a6   :  { %v2740_v60 = vpop.f32.mrf.mxu0  ;;  %v2698_v61 = vadd.f32 %v2697_v39, %v1112_v48  ;;  %v7653_v39 = vld [vmem:[#allocation12 + $0x7b0] ss:$28 sps:$4 sm:$0xff]  }
 0x3a7   :  { %v2699_v28 = vpop.f32.mrf.mxu1  ;;  %5855 = vmatpush2.bf16.msra.mxu1 %v7605_v52  ;;  %v7655_v52 = vld [vmem:[#allocation12 + $0x7b4] ss:$28 sps:$4 sm:$0xff]  }
 0x3a8   :  { %v2700_v62 = vadd.f32 %v2699_v28, %v1116_v56  ;;  %v2742_v40 = vpop.f32.mrf.mxu0  ;;  %5856 = vmatprep.subr.bf16.mxu1 %v7613_v57  ;;  %v2741_v1 = vadd.f32 %v2740_v60, %v2698_v61  ;;  %v7658_v57 = vld [vmem:[#allocation12 + $0x3fc] ss:$28 sps:$4 sm:$0xff]  }
 0x3a9   :  { %v2701_v0 = vpop.f32.mrf.mxu1  ;;  %v7661_v60 = vld [vmem:[#allocation12 + $0x77c] ss:$28 sps:$4 sm:$0xff]  }
 0x3aa   :  { %v2702_v49 = vadd.f32 %v2701_v0, %v1112_v48  ;;  %v2744_v50 = vpop.f32.mrf.mxu0  ;;  %v2743_v53 = vadd.f32 %v2742_v40, %v2700_v62  ;;  %v2771_v11 = vmul.f32 0.2, %v2741_v1  ;;  %vm2755_vm10 = vcmp.gt.f32.partialorder %v2741_v1, 0.0  ;;  %v7652_v48 = vld [vmem:[#allocation12 + $0x434] ss:$28 sps:$4 sm:$0xff]  }
 0x3ab   :  { %v2703_v55 = vpop.f32.mrf.mxu1  ;;  %5857 = vmatpush2.bf16.msra.mxu1 %v7611_v63  ;;  %v7656_v28 = vld [vmem:[#allocation12 + $0x3f8] ss:$28 sps:$4 sm:$0xff]   ;;  %v7664_v62 = vld [vmem:[#allocation12 + $0x3c4] ss:$28 sps:$4 sm:$0xff]  }
 0x3ac   :  { %v2745_v2 = vadd.f32 %v2744_v50, %v2702_v49  ;;  %v2704_v3 = vadd.f32 %v2703_v55, %v1116_v56  ;;  %5858 = vmatprep.subr.bf16.mxu1 %v7619_v31  ;;  %v2746_v6 = vpop.f32.mrf.mxu0  ;;  %v2772_v7 = vmul.f32 0.2, %v2743_v53  ;;  %vm2756_vm9 = vcmp.gt.f32.partialorder %v2743_v53, 0.0  ;;  %v7650_v56 = vld [vmem:[#allocation12 + $0x430] ss:$28 sps:$4 sm:$0xff]  }
 0x3ad   :  { %v2787_v18 = vsel %vm2755_vm10, %v2741_v1, %v2771_v11  ;;  %v7659_v61 = vld [vmem:[#allocation12 + $0x778] ss:$28 sps:$4 sm:$0xff]   ;;  %v7667_v40 = vld [vmem:[#allocation12 + $0x744] ss:$28 sps:$4 sm:$0xff]   ;;  %v7670_v31 = vld [vmem:[#allocation12 + $0x38c] ss:$28 sps:$4 sm:$0xff]  }
 0x3ae   :  { %v2779_v5 = vmul.f32 0.2, %v2745_v2  ;;  %vm2763_vm8 = vcmp.gt.f32.partialorder %v2745_v2, 0.0  ;;  %v2747_v9 = vadd.f32 %v2746_v6, %v2704_v3  ;;  %v2788_v16 = vsel %vm2756_vm9, %v2743_v53, %v2772_v7  ;;  %v7662_v63 = vld [vmem:[#allocation12 + $0x3c0] ss:$28 sps:$4 sm:$0xff]  }
 0x3af   :  { %5859 = vmatpush2.bf16.msra.mxu1 %v7617_v22  ;;  %v7665_v0 = vld [vmem:[#allocation12 + $0x740] ss:$28 sps:$4 sm:$0xff]   ;;  %v7673_v49 = vld [vmem:[#allocation12 + $0x70c] ss:$28 sps:$4 sm:$0xff]   ;;  %v7676_v55 = vld [vmem:[#allocation12 + $0x6d4] ss:$28 sps:$4 sm:$0xff]  }
 0x3b0   :  { %vm2764_vm11 = vcmp.gt.f32.partialorder %v2747_v9, 0.0  ;;  %v2780_v13 = vmul.f32 0.2, %v2747_v9  ;;  %5860 = vmatprep.subr.bf16.mxu1 %v7625_v4  ;;  %v2795_v15 = vsel %vm2763_vm8, %v2745_v2, %v2779_v5  ;;  %v7668_v50 = vld [vmem:[#allocation12 + $0x388] ss:$28 sps:$4 sm:$0xff]  }
 0x3b1   :  { %v8442_v23 = vpack.c.bf16 %v2795_v15, %v2787_v18  ;;  %v7671_v53 = vld [vmem:[#allocation12 + $0x708] ss:$28 sps:$4 sm:$0xff]   ;;  %v7679_v1 = vld [vmem:[#allocation12 + $0xa54] ss:$28 sps:$4 sm:$0xff]   ;;  %v7682_v3 = vld [vmem:[#allocation12 + $0x69c] ss:$28 sps:$4 sm:$0xff]  }
 0x3b2   :  { %v2796_v17 = vsel %vm2764_vm11, %v2747_v9, %v2780_v13  ;;  %v7674_v2 = vld [vmem:[#allocation12 + $0x6d0] ss:$28 sps:$4 sm:$0xff]   ;;  %v7685_v4 = vld [vmem:[#allocation12 + $0xa1c] ss:$28 sps:$4 sm:$0xff]   ;;  %v7688_v7 = vld [vmem:[#allocation12 + $0x664] ss:$28 sps:$4 sm:$0xff]  }
 0x3b3   :  { %v8440_v19 = vpack.c.bf16 %v2796_v17, %v2788_v16  ;;  %5861 = vmatpush2.bf16.msra.mxu1 %v7623_v12  ;;  %v7677_v22 = vld [vmem:[#allocation12 + $0xa50] ss:$28 sps:$4 sm:$0xff]   ;;  %v7680_v5 = vld [vmem:[#allocation12 + $0x698] ss:$28 sps:$4 sm:$0xff]   ;;  %v7691_v9 = vld [vmem:[#allocation12 + $0x9e4] ss:$28 sps:$4 sm:$0xff]  }
 0x3b4   :  { %5916 = vmatprep.subr.bf16.mxu1 %v7631_v14  ;;  %v7683_v6 = vld [vmem:[#allocation12 + $0xa18] ss:$28 sps:$4 sm:$0xff]   ;;  %v7686_v11 = vld [vmem:[#allocation12 + $0x660] ss:$28 sps:$4 sm:$0xff]   ;;  %v7694_v13 = vld [vmem:[#allocation12 + $0x62c] ss:$28 sps:$4 sm:$0xff]  }
 0x3b5   :  { %5819 = vmatprep.mubr.bf16.mxu0 %v8440_v19  ;;  %v7689_v12 = vld [vmem:[#allocation12 + $0x9e0] ss:$28 sps:$4 sm:$0xff]   ;;  %v7697_v14 = vld [vmem:[#allocation12 + $0x9ac] ss:$28 sps:$4 sm:$0xff]   ;;  %v7700_v17 = vld [vmem:[#allocation12 + $0x5f4] ss:$28 sps:$4 sm:$0xff]  }
 0x3b6   :  { %5863 = vmatmul.mubr.bf16.vlgmr.msra.gmra.mxu1 %v8406_v51  ;;  %5820 = vmatmul.mubr.bf16.vlgmr.msra.gmra.mxu0 %v8442_v23  ;;  %v7692_v15 = vld [vmem:[#allocation12 + $0x628] ss:$28 sps:$4 sm:$0xff]   ;;  %v7703_v18 = vld [vmem:[#allocation12 + $0x974] ss:$28 sps:$4 sm:$0xff]  }
 0x3b7   :  { %5874 = vmatpush1.bf16.msra.mxu0 %v7626_v20  ;;  %5917 = vmatpush1.bf16.msra.mxu1 %v7629_v21  ;;  %v7695_v16 = vld [vmem:[#allocation12 + $0x9a8] ss:$28 sps:$4 sm:$0xff]   ;;  %v7698_v20 = vld [vmem:[#allocation12 + $0x5f0] ss:$28 sps:$4 sm:$0xff]  }
 0x3b8   :  { %5948 = vmatprep.mubr.bf16.mxu1 %v8427_v8  ;;  %5905 = vmatprep.mubr.bf16.mxu0 %v8413_v42  ;;  %v7701_v21 = vld [vmem:[#allocation12 + $0x970] ss:$28 sps:$4 sm:$0xff]  }
 0x3b9   :  { %5875 = vmatprep.subr.bf16.mxu0 %v7634_v24  ;;  %5918 = vmatprep.subr.bf16.mxu1 %v7637_v32  ;;  %v7706_v24 = vld [vmem:[#allocation12 + $0x5bc] ss:$28 sps:$4 sm:$0xff]  }
 0x3ba   :  { %v7709_v32 = vld [vmem:[#allocation12 + $0x93c] ss:$28 sps:$4 sm:$0xff]  }
 0x3bb   :  { %5876 = vmatpush1.bf16.msra.mxu0 %v7632_v33  ;;  %5919 = vmatpush1.bf16.msra.mxu1 %v7635_v34  ;;  %v7704_v33 = vld [vmem:[#allocation12 + $0x5b8] ss:$28 sps:$4 sm:$0xff]  }
 0x3bc   :  { %5877 = vmatprep.subr.bf16.mxu0 %v7640_v36  ;;  %5920 = vmatprep.subr.bf16.mxu1 %v7643_v37  ;;  %v7707_v34 = vld [vmem:[#allocation12 + $0x938] ss:$28 sps:$4 sm:$0xff]   ;;  %v7712_v36 = vld [vmem:[#allocation12 + $0x584] ss:$28 sps:$4 sm:$0xff]  }
 0x3bd   :  { %v7715_v37 = vld [vmem:[#allocation12 + $0x904] ss:$28 sps:$4 sm:$0xff]  }
 0x3bf   :  { %5878 = vmatpush1.bf16.msra.mxu0 %v7638_v35  ;;  %5921 = vmatpush1.bf16.msra.mxu1 %v7641_v38  ;;  %v7710_v35 = vld [vmem:[#allocation12 + $0x580] ss:$28 sps:$4 sm:$0xff]  }
 0x3c0   :  { %5879 = vmatprep.subr.bf16.mxu0 %v7646_v43  ;;  %5922 = vmatprep.subr.bf16.mxu1 %v7649_v44  ;;  %v7713_v38 = vld [vmem:[#allocation12 + $0x900] ss:$28 sps:$4 sm:$0xff]   ;;  %v7718_v43 = vld [vmem:[#allocation12 + $0x54c] ss:$28 sps:$4 sm:$0xff]  }
 0x3c1   :  { %v7721_v44 = vld [vmem:[#allocation12 + $0x8cc] ss:$28 sps:$4 sm:$0xff]  }
 0x3c3   :  { %5880 = vmatpush1.bf16.msra.mxu0 %v7644_v46  ;;  %5923 = vmatpush1.bf16.msra.mxu1 %v7647_v47  ;;  %v7716_v46 = vld [vmem:[#allocation12 + $0x548] ss:$28 sps:$4 sm:$0xff]  }
 0x3c4   :  { %5881 = vmatprep.subr.bf16.mxu0 %v7652_v48  ;;  %5924 = vmatprep.subr.bf16.mxu1 %v7655_v52  ;;  %v7719_v47 = vld [vmem:[#allocation12 + $0x8c8] ss:$28 sps:$4 sm:$0xff]   ;;  %v7724_v48 = vld [vmem:[#allocation12 + $0xc14] ss:$28 sps:$4 sm:$0xff]   ;;  %v7727_v52 = vld [vmem:[#allocation12 + $0x19c] ss:$28 sps:$4 sm:$0xff]  }
 0x3c7   :  { %5882 = vmatpush1.bf16.msra.mxu0 %v7650_v56  ;;  %5925 = vmatpush1.bf16.msra.mxu1 %v7653_v39  ;;  %v7722_v56 = vld [vmem:[#allocation12 + $0xc10] ss:$28 sps:$4 sm:$0xff]   ;;  %v7725_v39 = vld [vmem:[#allocation12 + $0x198] ss:$28 sps:$4 sm:$0xff]  }
 0x3c8   :  { %5883 = vmatprep.subr.bf16.mxu0 %v7658_v57  ;;  %5926 = vmatprep.subr.bf16.mxu1 %v7661_v60  ;;  %v7730_v57 = vld [vmem:[#allocation12 + $0xbdc] ss:$28 sps:$4 sm:$0xff]   ;;  %v7733_v60 = vld [vmem:[#allocation12 + $0x164] ss:$28 sps:$4 sm:$0xff]  }
 0x3cb   :  { %5884 = vmatpush1.bf16.msra.mxu0 %v7656_v28  ;;  %5927 = vmatpush1.bf16.msra.mxu1 %v7659_v61  ;;  %v7728_v28 = vld [vmem:[#allocation12 + $0xbd8] ss:$28 sps:$4 sm:$0xff]   ;;  %v7731_v61 = vld [vmem:[#allocation12 + $0x160] ss:$28 sps:$4 sm:$0xff]  }
 0x3cc   :  { %5885 = vmatprep.subr.bf16.mxu0 %v7664_v62  ;;  %5928 = vmatprep.subr.bf16.mxu1 %v7667_v40  ;;  %v7736_v62 = vld [vmem:[#allocation12 + $0xba4] ss:$28 sps:$4 sm:$0xff]   ;;  %v7739_v40 = vld [vmem:[#allocation12 + $0x12c] ss:$28 sps:$4 sm:$0xff]  }
 0x3cf   :  { %5886 = vmatpush1.bf16.msra.mxu0 %v7662_v63  ;;  %5929 = vmatpush1.bf16.msra.mxu1 %v7665_v0  ;;  %v7734_v63 = vld [vmem:[#allocation12 + $0xba0] ss:$28 sps:$4 sm:$0xff]   ;;  %v7737_v0 = vld [vmem:[#allocation12 + $0x128] ss:$28 sps:$4 sm:$0xff]  }
 0x3d0   :  { %5887 = vmatprep.subr.bf16.mxu0 %v7670_v31  ;;  %5930 = vmatprep.subr.bf16.mxu1 %v7673_v49  ;;  %v7742_v31 = vld [vmem:[#allocation12 + $0xb6c] ss:$28 sps:$4 sm:$0xff]   ;;  %v7745_v49 = vld [vmem:[#allocation12 + $0xf4] ss:$28 sps:$4 sm:$0xff]  }
 0x3d3   :  { %5888 = vmatpush1.bf16.msra.mxu0 %v7668_v50  ;;  %5931 = vmatpush1.bf16.msra.mxu1 %v7671_v53  ;;  %v7740_v50 = vld [vmem:[#allocation12 + $0xb68] ss:$28 sps:$4 sm:$0xff]   ;;  %v7743_v53 = vld [vmem:[#allocation12 + $0xf0] ss:$28 sps:$4 sm:$0xff]  }
 0x3d4   :  { %5889 = vmatprep.subr.bf16.mxu0 %v7676_v55  ;;  %5932 = vmatprep.subr.bf16.mxu1 %v7679_v1  ;;  %v7748_v55 = vld [vmem:[#allocation12 + $0xb34] ss:$28 sps:$4 sm:$0xff]   ;;  %v7751_v1 = vld [vmem:[#allocation12 + $0xbc] ss:$28 sps:$4 sm:$0xff]  }
 0x3d7   :  { %5890 = vmatpush2.bf16.msra.mxu0 %v7674_v2  ;;  %5933 = vmatpush2.bf16.msra.mxu1 %v7677_v22  ;;  %v7746_v2 = vld [vmem:[#allocation12 + $0xb30] ss:$28 sps:$4 sm:$0xff]   ;;  %v7749_v22 = vld [vmem:[#allocation12 + $0xb8] ss:$28 sps:$4 sm:$0xff]  }
 0x3d8   :  { %5891 = vmatprep.subr.bf16.mxu0 %v7682_v3  ;;  %5934 = vmatprep.subr.bf16.mxu1 %v7685_v4  ;;  %v7754_v3 = vld [vmem:[#allocation12 + $0xafc] ss:$28 sps:$4 sm:$0xff]   ;;  %v7757_v4 = vld [vmem:[#allocation12 + $0x84] ss:$28 sps:$4 sm:$0xff]  }
 0x3db   :  { %5892 = vmatpush2.bf16.msra.mxu0 %v7680_v5  ;;  %5935 = vmatpush2.bf16.msra.mxu1 %v7683_v6  ;;  %v7752_v5 = vld [vmem:[#allocation12 + $0xaf8] ss:$28 sps:$4 sm:$0xff]   ;;  %v7755_v6 = vld [vmem:[#allocation12 + $0x80] ss:$28 sps:$4 sm:$0xff]  }
 0x3dc   :  { %5893 = vmatprep.subr.bf16.mxu0 %v7688_v7  ;;  %5936 = vmatprep.subr.bf16.mxu1 %v7691_v9  ;;  %v7760_v7 = vld [vmem:[#allocation12 + $0xac4] ss:$28 sps:$4 sm:$0xff]   ;;  %v7763_v9 = vld [vmem:[#allocation12 + $0x4c] ss:$28 sps:$4 sm:$0xff]  }
 0x3df   :  { %5894 = vmatpush2.bf16.msra.mxu0 %v7686_v11  ;;  %5937 = vmatpush2.bf16.msra.mxu1 %v7689_v12  ;;  %v7758_v11 = vld [vmem:[#allocation12 + $0xac0] ss:$28 sps:$4 sm:$0xff]   ;;  %v7761_v12 = vld [vmem:[#allocation12 + $0x48] ss:$28 sps:$4 sm:$0xff]  }
 0x3e0   :  { %5895 = vmatprep.subr.bf16.mxu0 %v7694_v13  ;;  %5938 = vmatprep.subr.bf16.mxu1 %v7697_v14  ;;  %v7766_v13 = vld [vmem:[#allocation12 + $0xa8c] ss:$28 sps:$4 sm:$0xff]   ;;  %v7769_v14 = vld [vmem:[#allocation12 + $0x14] ss:$28 sps:$4 sm:$0xff]  }
 0x3e3   :  { %5896 = vmatpush2.bf16.msra.mxu0 %v7692_v15  ;;  %5939 = vmatpush2.bf16.msra.mxu1 %v7695_v16  ;;  %v7764_v15 = vld [vmem:[#allocation12 + $0xa88] ss:$28 sps:$4 sm:$0xff]   ;;  %v7767_v16 = vld [vmem:[#allocation12 + $0x10] ss:$28 sps:$4 sm:$0xff]  }
 0x3e4   :  { %5897 = vmatprep.subr.bf16.mxu0 %v7700_v17  ;;  %5940 = vmatprep.subr.bf16.mxu1 %v7703_v18  ;;  %v7772_v17 = vld [vmem:[#allocation12 + $0xdd4] ss:$28 sps:$4 sm:$0xff]   ;;  %v7775_v18 = vld [vmem:[#allocation12 + $0x35c] ss:$28 sps:$4 sm:$0xff]  }
 0x3e7   :  { %5898 = vmatpush2.bf16.msra.mxu0 %v7698_v20  ;;  %5941 = vmatpush2.bf16.msra.mxu1 %v7701_v21  ;;  %v7770_v20 = vld [vmem:[#allocation12 + $0xdd0] ss:$28 sps:$4 sm:$0xff]   ;;  %v7773_v21 = vld [vmem:[#allocation12 + $0x358] ss:$28 sps:$4 sm:$0xff]  }
 0x3e8   :  { %5899 = vmatprep.subr.bf16.mxu0 %v7706_v24  ;;  %5942 = vmatprep.subr.bf16.mxu1 %v7709_v32  ;;  %v7778_v24 = vld [vmem:[#allocation12 + $0xd9c] ss:$28 sps:$4 sm:$0xff]   ;;  %v7781_v32 = vld [vmem:[#allocation12 + $0x324] ss:$28 sps:$4 sm:$0xff]  }
 0x3eb   :  { %5900 = vmatpush2.bf16.msra.mxu0 %v7704_v33  ;;  %5943 = vmatpush2.bf16.msra.mxu1 %v7707_v34  ;;  %v7776_v33 = vld [vmem:[#allocation12 + $0xd98] ss:$28 sps:$4 sm:$0xff]   ;;  %v7779_v34 = vld [vmem:[#allocation12 + $0x320] ss:$28 sps:$4 sm:$0xff]  }
 0x3ec   :  { %5901 = vmatprep.subr.bf16.mxu0 %v7712_v36  ;;  %5944 = vmatprep.subr.bf16.mxu1 %v7715_v37  ;;  %v7784_v36 = vld [vmem:[#allocation12 + $0xd64] ss:$28 sps:$4 sm:$0xff]   ;;  %v7787_v37 = vld [vmem:[#allocation12 + $0x2ec] ss:$28 sps:$4 sm:$0xff]  }
 0x3ef   :  { %5902 = vmatpush2.bf16.msra.mxu0 %v7710_v35  ;;  %5945 = vmatpush2.bf16.msra.mxu1 %v7713_v38  ;;  %v7782_v35 = vld [vmem:[#allocation12 + $0xd60] ss:$28 sps:$4 sm:$0xff]   ;;  %v7785_v38 = vld [vmem:[#allocation12 + $0x2e8] ss:$28 sps:$4 sm:$0xff]  }
 0x3f0   :  { %5903 = vmatprep.subr.bf16.mxu0 %v7718_v43  ;;  %5946 = vmatprep.subr.bf16.mxu1 %v7721_v44  ;;  %v7790_v43 = vld [vmem:[#allocation12 + $0xd2c] ss:$28 sps:$4 sm:$0xff]   ;;  %v7793_v44 = vld [vmem:[#allocation12 + $0x2b4] ss:$28 sps:$4 sm:$0xff]  }
 0x3f3   :  { %5904 = vmatpush2.bf16.msra.mxu0 %v7716_v46  ;;  %5947 = vmatpush2.bf16.msra.mxu1 %v7719_v47  ;;  %v7788_v46 = vld [vmem:[#allocation12 + $0xd28] ss:$28 sps:$4 sm:$0xff]   ;;  %v7791_v47 = vld [vmem:[#allocation12 + $0x2b0] ss:$28 sps:$4 sm:$0xff]  }
 0x3f4   :  { %5959 = vmatprep.subr.bf16.mxu0 %v7724_v48  ;;  %6002 = vmatprep.subr.bf16.mxu1 %v7727_v52  ;;  %v7796_v48 = vld [vmem:[#allocation12 + $0xcf4] ss:$28 sps:$4 sm:$0xff]   ;;  %v7799_v52 = vld [vmem:[#allocation12 + $0x27c] ss:$28 sps:$4 sm:$0xff]  }
 0x3f6   :  { %5906 = vmatmul.mubr.bf16.vlgmr.msra.gmra.mxu0 %v8415_v41  ;;  %5949 = vmatmul.mubr.bf16.vlgmr.msra.gmra.mxu1 %v8429_v10 }
 0x3f7   :  { %5960 = vmatpush1.bf16.msra.mxu0 %v7722_v56  ;;  %5991 = vmatprep.mubr.bf16.mxu0 %v8440_v19  ;;  %v7794_v56 = vld [vmem:[#allocation12 + $0xcf0] ss:$28 sps:$4 sm:$0xff]  }
 0x3f8   :  { %6003 = vmatpush1.bf16.msra.mxu1 %v7725_v39  ;;  %6034 = vmatprep.mubr.bf16.mxu1 %v8397_v54  ;;  %v7797_v39 = vld [vmem:[#allocation12 + $0x278] ss:$28 sps:$4 sm:$0xff]  }
 0x3f9   :  { %5961 = vmatprep.subr.bf16.mxu0 %v7730_v57  ;;  %6004 = vmatprep.subr.bf16.mxu1 %v7733_v60  ;;  %v7802_v57 = vld [vmem:[#allocation12 + $0xcbc] ss:$28 sps:$4 sm:$0xff]   ;;  %v7805_v60 = vld [vmem:[#allocation12 + $0x244] ss:$28 sps:$4 sm:$0xff]  }
 0x3fb   :  { %5962 = vmatpush1.bf16.msra.mxu0 %v7728_v28  ;;  %v7800_v28 = vld [vmem:[#allocation12 + $0xcb8] ss:$28 sps:$4 sm:$0xff]  }
 0x3fc   :  { %6005 = vmatpush1.bf16.msra.mxu1 %v7731_v61  ;;  %5963 = vmatprep.subr.bf16.mxu0 %v7736_v62  ;;  %v7803_v61 = vld [vmem:[#allocation12 + $0x240] ss:$28 sps:$4 sm:$0xff]  }
 0x3fd   :  { %6006 = vmatprep.subr.bf16.mxu1 %v7739_v40  ;;  %v7808_v62 = vld [vmem:[#allocation12 + $0xc84] ss:$28 sps:$4 sm:$0xff]   ;;  %v7811_v40 = vld [vmem:[#allocation12 + $0x20c] ss:$28 sps:$4 sm:$0xff]  }
 0x3ff   :  { %5964 = vmatpush1.bf16.msra.mxu0 %v7734_v63  ;;  %v7806_v63 = vld [vmem:[#allocation12 + $0xc80] ss:$28 sps:$4 sm:$0xff]  }
 0x400   :  { %6007 = vmatpush1.bf16.msra.mxu1 %v7737_v0  ;;  %5965 = vmatprep.subr.bf16.mxu0 %v7742_v31  ;;  %v7809_v0 = vld [vmem:[#allocation12 + $0x208] ss:$28 sps:$4 sm:$0xff]  }
 0x401   :  { %6008 = vmatprep.subr.bf16.mxu1 %v7745_v49  ;;  %v7814_v31 = vld [vmem:[#allocation12 + $0xc4c] ss:$28 sps:$4 sm:$0xff]   ;;  %v7817_v49 = vld [vmem:[#allocation12 + $0x1d4] ss:$28 sps:$4 sm:$0xff]  }
 0x403   :  { %5966 = vmatpush1.bf16.msra.mxu0 %v7740_v50  ;;  %v7812_v50 = vld [vmem:[#allocation12 + $0xc48] ss:$28 sps:$4 sm:$0xff]  }
 0x404   :  { %6009 = vmatpush1.bf16.msra.mxu1 %v7743_v53  ;;  %5967 = vmatprep.subr.bf16.mxu0 %v7748_v55  ;;  %v7815_v53 = vld [vmem:[#allocation12 + $0x1d0] ss:$28 sps:$4 sm:$0xff]   ;;  %v7820_v55 = vld [vmem:[#allocation12 + $0x51c] ss:$28 sps:$4 sm:$0xff]  }
 0x405   :  { %6010 = vmatprep.subr.bf16.mxu1 %v7751_v1  ;;  %v7823_v1 = vld [vmem:[#allocation12 + $0x89c] ss:$28 sps:$4 sm:$0xff]  }
 0x407   :  { %5968 = vmatpush1.bf16.msra.mxu0 %v7746_v2  ;;  %v7818_v2 = vld [vmem:[#allocation12 + $0x518] ss:$28 sps:$4 sm:$0xff]  }
 0x408   :  { %6011 = vmatpush1.bf16.msra.mxu1 %v7749_v22  ;;  %5969 = vmatprep.subr.bf16.mxu0 %v7754_v3  ;;  %v7821_v22 = vld [vmem:[#allocation12 + $0x898] ss:$28 sps:$4 sm:$0xff]   ;;  %v7826_v3 = vld [vmem:[#allocation12 + $0x4e4] ss:$28 sps:$4 sm:$0xff]  }
 0x409   :  { %6012 = vmatprep.subr.bf16.mxu1 %v7757_v4  ;;  %v7829_v4 = vld [vmem:[#allocation12 + $0x864] ss:$28 sps:$4 sm:$0xff]  }
 0x40b   :  { %5970 = vmatpush1.bf16.msra.mxu0 %v7752_v5  ;;  %v7824_v5 = vld [vmem:[#allocation12 + $0x4e0] ss:$28 sps:$4 sm:$0xff]  }
 0x40c   :  { %6013 = vmatpush1.bf16.msra.mxu1 %v7755_v6  ;;  %5971 = vmatprep.subr.bf16.mxu0 %v7760_v7  ;;  %v7827_v6 = vld [vmem:[#allocation12 + $0x860] ss:$28 sps:$4 sm:$0xff]   ;;  %v7832_v7 = vld [vmem:[#allocation12 + $0x4ac] ss:$28 sps:$4 sm:$0xff]  }
 0x40d   :  { %6014 = vmatprep.subr.bf16.mxu1 %v7763_v9  ;;  %v7835_v9 = vld [vmem:[#allocation12 + $0x82c] ss:$28 sps:$4 sm:$0xff]  }
 0x40f   :  { %5972 = vmatpush1.bf16.msra.mxu0 %v7758_v11  ;;  %v7830_v11 = vld [vmem:[#allocation12 + $0x4a8] ss:$28 sps:$4 sm:$0xff]  }
 0x410   :  { %6015 = vmatpush1.bf16.msra.mxu1 %v7761_v12  ;;  %5973 = vmatprep.subr.bf16.mxu0 %v7766_v13  ;;  %v7833_v12 = vld [vmem:[#allocation12 + $0x828] ss:$28 sps:$4 sm:$0xff]   ;;  %v7838_v13 = vld [vmem:[#allocation12 + $0x474] ss:$28 sps:$4 sm:$0xff]  }
 0x411   :  { %6016 = vmatprep.subr.bf16.mxu1 %v7769_v14  ;;  %v7841_v14 = vld [vmem:[#allocation12 + $0x7f4] ss:$28 sps:$4 sm:$0xff]  }
 0x413   :  { %5974 = vmatpush1.bf16.msra.mxu0 %v7764_v15  ;;  %v7836_v15 = vld [vmem:[#allocation12 + $0x470] ss:$28 sps:$4 sm:$0xff]  }
 0x414   :  { %6017 = vmatpush1.bf16.msra.mxu1 %v7767_v16  ;;  %5975 = vmatprep.subr.bf16.mxu0 %v7772_v17  ;;  %v7839_v16 = vld [vmem:[#allocation12 + $0x7f0] ss:$28 sps:$4 sm:$0xff]   ;;  %v7844_v17 = vld [vmem:[#allocation12 + $0x43c] ss:$28 sps:$4 sm:$0xff]  }
 0x415   :  { %6018 = vmatprep.subr.bf16.mxu1 %v7775_v18  ;;  %v7847_v18 = vld [vmem:[#allocation12 + $0x7bc] ss:$28 sps:$4 sm:$0xff]  }
 0x417   :  { %5976 = vmatpush2.bf16.msra.mxu0 %v7770_v20  ;;  %v7842_v20 = vld [vmem:[#allocation12 + $0x438] ss:$28 sps:$4 sm:$0xff]  }
 0x418   :  { %6019 = vmatpush2.bf16.msra.mxu1 %v7773_v21  ;;  %5977 = vmatprep.subr.bf16.mxu0 %v7778_v24  ;;  %v7845_v21 = vld [vmem:[#allocation12 + $0x7b8] ss:$28 sps:$4 sm:$0xff]   ;;  %v7850_v24 = vld [vmem:[#allocation12 + $0x404] ss:$28 sps:$4 sm:$0xff]  }
 0x419   :  { %6020 = vmatprep.subr.bf16.mxu1 %v7781_v32  ;;  %v7853_v32 = vld [vmem:[#allocation12 + $0x784] ss:$28 sps:$4 sm:$0xff]  }
 0x41b   :  { %5978 = vmatpush2.bf16.msra.mxu0 %v7776_v33  ;;  %v7848_v33 = vld [vmem:[#allocation12 + $0x400] ss:$28 sps:$4 sm:$0xff]  }
 0x41c   :  { %6021 = vmatpush2.bf16.msra.mxu1 %v7779_v34  ;;  %5979 = vmatprep.subr.bf16.mxu0 %v7784_v36  ;;  %v7851_v34 = vld [vmem:[#allocation12 + $0x780] ss:$28 sps:$4 sm:$0xff]   ;;  %v7856_v36 = vld [vmem:[#allocation12 + $0x3cc] ss:$28 sps:$4 sm:$0xff]  }
 0x41d   :  { %6022 = vmatprep.subr.bf16.mxu1 %v7787_v37  ;;  %v7859_v37 = vld [vmem:[#allocation12 + $0x74c] ss:$28 sps:$4 sm:$0xff]  }
 0x41f   :  { %5980 = vmatpush2.bf16.msra.mxu0 %v7782_v35  ;;  %v7854_v35 = vld [vmem:[#allocation12 + $0x3c8] ss:$28 sps:$4 sm:$0xff]  }
 0x420   :  { %6023 = vmatpush2.bf16.msra.mxu1 %v7785_v38  ;;  %5981 = vmatprep.subr.bf16.mxu0 %v7790_v43  ;;  %v7857_v38 = vld [vmem:[#allocation12 + $0x748] ss:$28 sps:$4 sm:$0xff]   ;;  %v7862_v43 = vld [vmem:[#allocation12 + $0x394] ss:$28 sps:$4 sm:$0xff]  }
 0x421   :  { %6024 = vmatprep.subr.bf16.mxu1 %v7793_v44  ;;  %v7865_v44 = vld [vmem:[#allocation12 + $0x714] ss:$28 sps:$4 sm:$0xff]  }
 0x423   :  { %5982 = vmatpush2.bf16.msra.mxu0 %v7788_v46  ;;  %v7860_v46 = vld [vmem:[#allocation12 + $0x390] ss:$28 sps:$4 sm:$0xff]  }
 0x424   :  { %6025 = vmatpush2.bf16.msra.mxu1 %v7791_v47  ;;  %5983 = vmatprep.subr.bf16.mxu0 %v7796_v48  ;;  %v7863_v47 = vld [vmem:[#allocation12 + $0x710] ss:$28 sps:$4 sm:$0xff]   ;;  %v7868_v48 = vld [vmem:[#allocation12 + $0x6dc] ss:$28 sps:$4 sm:$0xff]  }
 0x425   :  { %6026 = vmatprep.subr.bf16.mxu1 %v7799_v52  ;;  %v7871_v52 = vld [vmem:[#allocation12 + $0xa5c] ss:$28 sps:$4 sm:$0xff]  }
 0x427   :  { %5984 = vmatpush2.bf16.msra.mxu0 %v7794_v56  ;;  %v7866_v56 = vld [vmem:[#allocation12 + $0x6d8] ss:$28 sps:$4 sm:$0xff]  }
 0x428   :  { %6027 = vmatpush2.bf16.msra.mxu1 %v7797_v39  ;;  %5985 = vmatprep.subr.bf16.mxu0 %v7802_v57  ;;  %v7869_v39 = vld [vmem:[#allocation12 + $0xa58] ss:$28 sps:$4 sm:$0xff]   ;;  %v7874_v57 = vld [vmem:[#allocation12 + $0x6a4] ss:$28 sps:$4 sm:$0xff]  }
 0x429   :  { %6028 = vmatprep.subr.bf16.mxu1 %v7805_v60  ;;  %v7877_v60 = vld [vmem:[#allocation12 + $0xa24] ss:$28 sps:$4 sm:$0xff]  }
 0x42b   :  { %5986 = vmatpush2.bf16.msra.mxu0 %v7800_v28  ;;  %v7872_v28 = vld [vmem:[#allocation12 + $0x6a0] ss:$28 sps:$4 sm:$0xff]  }
 0x42c   :  { %6029 = vmatpush2.bf16.msra.mxu1 %v7803_v61  ;;  %5987 = vmatprep.subr.bf16.mxu0 %v7808_v62  ;;  %v7875_v61 = vld [vmem:[#allocation12 + $0xa20] ss:$28 sps:$4 sm:$0xff]   ;;  %v7880_v62 = vld [vmem:[#allocation12 + $0x66c] ss:$28 sps:$4 sm:$0xff]  }
 0x42d   :  { %6030 = vmatprep.subr.bf16.mxu1 %v7811_v40  ;;  %v7883_v40 = vld [vmem:[#allocation12 + $0x9ec] ss:$28 sps:$4 sm:$0xff]  }
 0x42f   :  { %5988 = vmatpush2.bf16.msra.mxu0 %v7806_v63  ;;  %v7878_v63 = vld [vmem:[#allocation12 + $0x668] ss:$28 sps:$4 sm:$0xff]  }
 0x430   :  { %6031 = vmatpush2.bf16.msra.mxu1 %v7809_v0  ;;  %5989 = vmatprep.subr.bf16.mxu0 %v7814_v31  ;;  %v7881_v0 = vld [vmem:[#allocation12 + $0x9e8] ss:$28 sps:$4 sm:$0xff]   ;;  %v7886_v31 = vld [vmem:[#allocation12 + $0x634] ss:$28 sps:$4 sm:$0xff]  }
 0x431   :  { %6032 = vmatprep.subr.bf16.mxu1 %v7817_v49  ;;  %v7889_v49 = vld [vmem:[#allocation12 + $0x9b4] ss:$28 sps:$4 sm:$0xff]  }
 0x433   :  { %5990 = vmatpush2.bf16.msra.mxu0 %v7812_v50  ;;  %v5692_v50 = vpop.f32.mrf.mxu1 }
 0x434   :  { %6033 = vmatpush2.bf16.msra.mxu1 %v7815_v53  ;;  %6045 = vmatprep.subr.bf16.mxu0 %v7820_v55  ;;  %v7884_v53 = vld [vmem:[#allocation12 + $0x630] ss:$28 sps:$4 sm:$0xff]  }
 0x435   :  { %6088 = vmatprep.subr.bf16.mxu1 %v7823_v1  ;;  %v7887_v55 = vld [vmem:[#allocation12 + $0x9b0] ss:$28 sps:$4 sm:$0xff]   ;;  %v7892_v1 = vld [vmem:[#allocation12 + $0x5fc] ss:$28 sps:$4 sm:$0xff]  }
 0x436   :  { %5992 = vmatmul.mubr.bf16.vlgmr.msra.gmra.mxu0 %v8442_v23 }
 0x437   :  { %6035 = vmatmul.mubr.bf16.vlgmr.msra.gmra.mxu1 %v8406_v51  ;;  %6046 = vmatpush1.bf16.msra.mxu0 %v7818_v2  ;;  %v7895_v2 = vld [vmem:[#allocation12 + $0x97c] ss:$28 sps:$4 sm:$0xff]  }
 0x438   :  { %6077 = vmatprep.mubr.bf16.mxu0 %v8413_v42  ;;  %6089 = vmatpush1.bf16.msra.mxu1 %v7821_v22  ;;  %v5694_v22 = vpop.f32.mrf.mxu1 }
 0x439   :  { %6120 = vmatprep.mubr.bf16.mxu1 %v8427_v8  ;;  %6047 = vmatprep.subr.bf16.mxu0 %v7826_v3  ;;  %v7890_v3 = vld [vmem:[#allocation12 + $0x5f8] ss:$28 sps:$4 sm:$0xff]  }
 0x43a   :  { %6090 = vmatprep.subr.bf16.mxu1 %v7829_v4  ;;  %v7893_v4 = vld [vmem:[#allocation12 + $0x978] ss:$28 sps:$4 sm:$0xff]  }
 0x43b   :  { %6048 = vmatpush1.bf16.msra.mxu0 %v7824_v5  ;;  %v7898_v5 = vld [vmem:[#allocation12 + $0x5c4] ss:$28 sps:$4 sm:$0xff]  }
 0x43c   :  { %6091 = vmatpush1.bf16.msra.mxu1 %v7827_v6  ;;  %6049 = vmatprep.subr.bf16.mxu0 %v7832_v7  ;;  %v7901_v6 = vld [vmem:[#allocation12 + $0x944] ss:$28 sps:$4 sm:$0xff]   ;;  %v5696_v7 = vpop.f32.mrf.mxu1 }
 0x43d   :  { %6092 = vmatprep.subr.bf16.mxu1 %v7835_v9  ;;  %v7896_v9 = vld [vmem:[#allocation12 + $0x5c0] ss:$28 sps:$4 sm:$0xff]  }
 0x43f   :  { %6050 = vmatpush1.bf16.msra.mxu0 %v7830_v11  ;;  %v5735_v11 = vpop.f32.mrf.mxu0 }
 0x440   :  { %6093 = vmatpush1.bf16.msra.mxu1 %v7833_v12  ;;  %6051 = vmatprep.subr.bf16.mxu0 %v7838_v13  ;;  %v7899_v12 = vld [vmem:[#allocation12 + $0x940] ss:$28 sps:$4 sm:$0xff]   ;;  %v7904_v13 = vld [vmem:[#allocation12 + $0x58c] ss:$28 sps:$4 sm:$0xff]  }
 0x441   :  { %6094 = vmatprep.subr.bf16.mxu1 %v7841_v14  ;;  %v7907_v14 = vld [vmem:[#allocation12 + $0x90c] ss:$28 sps:$4 sm:$0xff]  }
 0x443   :  { %6052 = vmatpush1.bf16.msra.mxu0 %v7836_v15  ;;  %v8457_v15 = vld [vmem:[#allocation13] sm:$0xff] }
 0x444   :  { %6095 = vmatpush1.bf16.msra.mxu1 %v7839_v16  ;;  %6053 = vmatprep.subr.bf16.mxu0 %v7844_v17  ;;  %v5698_v16 = vpop.f32.mrf.mxu1  ;;  %v7902_v17 = vld [vmem:[#allocation12 + $0x588] ss:$28 sps:$4 sm:$0xff]  }
 0x445   :  { %6096 = vmatprep.subr.bf16.mxu1 %v7847_v18  ;;  %v5737_v18 = vpop.f32.mrf.mxu0 }
 0x447   :  { %6054 = vmatpush1.bf16.msra.mxu0 %v7842_v20  ;;  %v5778_v20 = vpop.f32.mrf.mxu1 }
 0x448   :  { %6097 = vmatpush1.bf16.msra.mxu1 %v7845_v21  ;;  %6055 = vmatprep.subr.bf16.mxu0 %v7850_v24  ;;  %v7905_v21 = vld [vmem:[#allocation12 + $0x908] ss:$28 sps:$4 sm:$0xff]   ;;  %v7910_v24 = vld [vmem:[#allocation12 + $0x554] ss:$28 sps:$4 sm:$0xff]  }
 0x449   :  { %6098 = vmatprep.subr.bf16.mxu1 %v7853_v32  ;;  %v3322_v32 = vrot.slane %v8457_v15, %v8321_v29  ;;  %v7914_v29 = vld [vmem:[#allocation12 + $0xc18] ss:$28 sps:$4 sm:$0xff]  }
 0x44b   :  { %6056 = vmatpush1.bf16.msra.mxu0 %v7848_v33  ;;  %v7913_v33 = vld [vmem:[#allocation12 + $0x8d4] ss:$28 sps:$4 sm:$0xff]  }
 0x44c   :  { %6099 = vmatpush1.bf16.msra.mxu1 %v7851_v34  ;;  %6057 = vmatprep.subr.bf16.mxu0 %v7856_v36  ;;  %v3326_v34 = vrot.slane %v8457_v15, %v8324_v30  ;;  %v7908_v36 = vld [vmem:[#allocation12 + $0x550] ss:$28 sps:$4 sm:$0xff]   ;;  %v7918_v30 = vld [vmem:[#allocation12 + $0x1a0] ss:$28 sps:$4 sm:$0xff]  }
 0x44d   :  { %6100 = vmatprep.subr.bf16.mxu1 %v7859_v37  ;;  %v5739_v37 = vpop.f32.mrf.mxu0 }
 0x44f   :  { %6058 = vmatpush1.bf16.msra.mxu0 %v7854_v35  ;;  %v5780_v35 = vpop.f32.mrf.mxu1 }
 0x450   :  { %6101 = vmatpush1.bf16.msra.mxu1 %v7857_v38  ;;  %6059 = vmatprep.subr.bf16.mxu0 %v7862_v43  ;;  %v7911_v38 = vld [vmem:[#allocation12 + $0x8d0] ss:$28 sps:$4 sm:$0xff]   ;;  %v7916_v43 = vld [vmem:[#allocation12 + $0xc1c] ss:$28 sps:$4 sm:$0xff]  }
 0x451   :  { %6102 = vmatprep.subr.bf16.mxu1 %v7865_v44  ;;  %v5693_v44 = vadd.f32 %v5692_v50, %v3322_v32 }
 0x453   :  { %6060 = vmatpush1.bf16.msra.mxu0 %v7860_v46  ;;  %v7917_v46 = vld [vmem:[#allocation12 + $0x360] ss:$28 sps:$4 sm:$0xff]  }
 0x454   :  { %6103 = vmatpush1.bf16.msra.mxu1 %v7863_v47  ;;  %6061 = vmatprep.subr.bf16.mxu0 %v7868_v48  ;;  %v5695_v47 = vadd.f32 %v5694_v22, %v3326_v34  ;;  %v5736_v48 = vadd.f32 %v5735_v11, %v5693_v44 }
 0x455   :  { %6104 = vmatprep.subr.bf16.mxu1 %v7871_v52  ;;  %v5741_v52 = vpop.f32.mrf.mxu0 }
 0x457   :  { %6062 = vmatpush2.bf16.msra.mxu0 %v7866_v56  ;;  %v5782_v56 = vpop.f32.mrf.mxu1 }
 0x458   :  { %6105 = vmatpush2.bf16.msra.mxu1 %v7869_v39  ;;  %6063 = vmatprep.subr.bf16.mxu0 %v7874_v57  ;;  %v5697_v39 = vadd.f32 %v5696_v7, %v3322_v32  ;;  %v5738_v57 = vadd.f32 %v5737_v18, %v5695_v47  ;;  %v7936_v18 = vld [vmem:[#allocation12 + $0xb3c] ss:$28 sps:$4 sm:$0xff]   ;;  %v7941_v32 = vld [vmem:[#allocation12 + $0xb04] ss:$28 sps:$4 sm:$0xff]  }
 0x459   :  { %6106 = vmatprep.subr.bf16.mxu1 %v7877_v60  ;;  %v5779_v60 = vadd.f32 %v5778_v20, %v5736_v48  ;;  %v5784_v50 = vpop.f32.mrf.mxu1  ;;  %v7937_v20 = vld [vmem:[#allocation12 + $0x280] ss:$28 sps:$4 sm:$0xff]   ;;  %v7948_v48 = vld [vmem:[#allocation12 + $0x50] ss:$28 sps:$4 sm:$0xff]  }
 0x45b   :  { %6064 = vmatpush2.bf16.msra.mxu0 %v7872_v28  ;;  %v7921_v28 = vld [vmem:[#allocation12 + $0xbe4] ss:$28 sps:$4 sm:$0xff]  }
 0x45c   :  { %6107 = vmatpush2.bf16.msra.mxu1 %v7875_v61  ;;  %6065 = vmatprep.subr.bf16.mxu0 %v7880_v62  ;;  %v5699_v61 = vadd.f32 %v5698_v16, %v3326_v34  ;;  %v7932_v16 = vld [vmem:[#allocation12 + $0x2b8] ss:$28 sps:$4 sm:$0xff]  }
 0x45d   :  { %6108 = vmatprep.subr.bf16.mxu1 %v7883_v40  ;;  %v7922_v40 = vld [vmem:[#allocation12 + $0x328] ss:$28 sps:$4 sm:$0xff]  }
 0x45f   :  { %6066 = vmatpush2.bf16.msra.mxu0 %v7878_v63  ;;  %v5740_v63 = vadd.f32 %v5739_v37, %v5697_v39  ;;  %v7956_v39 = vld [vmem:[#allocation12 + $0xddc] ss:$28 sps:$4 sm:$0xff]  }
 0x460   :  { %6109 = vmatpush2.bf16.msra.mxu1 %v7881_v0  ;;  %6067 = vmatprep.subr.bf16.mxu0 %v7886_v31  ;;  %v5781_v0 = vadd.f32 %v5780_v35, %v5738_v57  ;;  %v7943_v35 = vld [vmem:[#allocation12 + $0x88] ss:$28 sps:$4 sm:$0xff]   ;;  %v7957_v57 = vld [vmem:[#allocation12 + $0xa60] ss:$28 sps:$4 sm:$0xff]  }
 0x461   :  { %6110 = vmatprep.subr.bf16.mxu1 %v7889_v49  ;;  %v7919_v49 = vld [vmem:[#allocation12 + $0xbe0] ss:$28 sps:$4 sm:$0xff]   ;;  %v5783_v22 = vadd.f32 %v5782_v56, %v5740_v63  ;;  %v7949_v56 = vld [vmem:[#allocation12 + $0xa90] ss:$28 sps:$4 sm:$0xff]   ;;  %v7963_v63 = vld [vmem:[#allocation12 + $0x868] ss:$28 sps:$4 sm:$0xff]  }
 0x463   :  { %6068 = vmatpush2.bf16.msra.mxu0 %v7884_v53 }
 0x464   :  { %6111 = vmatpush2.bf16.msra.mxu1 %v7887_v55  ;;  %6069 = vmatprep.subr.bf16.mxu0 %v7892_v1  ;;  %v7923_v55 = vld [vmem:[#allocation12 + $0x168] ss:$28 sps:$4 sm:$0xff]  }
 0x465   :  { %6112 = vmatprep.subr.bf16.mxu1 %v7895_v2  ;;  %v7926_v1 = vld [vmem:[#allocation12 + $0xbac] ss:$28 sps:$4 sm:$0xff]   ;;  %v5742_v2 = vadd.f32 %v5741_v52, %v5699_v61  ;;  %v7952_v52 = vld [vmem:[#allocation12 + $0x1d8] ss:$28 sps:$4 sm:$0xff]   ;;  %v7961_v61 = vld [vmem:[#allocation12 + $0xda4] ss:$28 sps:$4 sm:$0xff]  }
 0x467   :  { %6070 = vmatpush2.bf16.msra.mxu0 %v7890_v3 }
 0x468   :  { %6113 = vmatpush2.bf16.msra.mxu1 %v7893_v4  ;;  %6071 = vmatprep.subr.bf16.mxu0 %v7898_v5  ;;  %v7927_v4 = vld [vmem:[#allocation12 + $0x2f0] ss:$28 sps:$4 sm:$0xff]  }
 0x469   :  { %6114 = vmatprep.subr.bf16.mxu1 %v7901_v6  ;;  %v5785_v6 = vadd.f32 %v5784_v50, %v5742_v2  ;;  %v7968_v50 = vld [vmem:[#allocation12 + $0x830] ss:$28 sps:$4 sm:$0xff]   ;;  %v7976_v2 = vld [vmem:[#allocation12 + $0xcfc] ss:$28 sps:$4 sm:$0xff]  }
 0x46b   :  { %6072 = vmatpush2.bf16.msra.mxu0 %v7896_v9  ;;  %v7924_v9 = vld [vmem:[#allocation12 + $0xba8] ss:$28 sps:$4 sm:$0xff]  }
 0x46c   :  { %6115 = vmatpush2.bf16.msra.mxu1 %v7899_v12  ;;  %6073 = vmatprep.subr.bf16.mxu0 %v7904_v13  ;;  %v7928_v12 = vld [vmem:[#allocation12 + $0x130] ss:$28 sps:$4 sm:$0xff]  }
 0x46d   :  { %6116 = vmatprep.subr.bf16.mxu1 %v7907_v14  ;;  %v7931_v13 = vld [vmem:[#allocation12 + $0xb74] ss:$28 sps:$4 sm:$0xff]  }
 0x46f   :  { %6074 = vmatpush2.bf16.msra.mxu0 %v7902_v17  ;;  %v7933_v17 = vld [vmem:[#allocation12 + $0xf8] ss:$28 sps:$4 sm:$0xff]  }
 0x470   :  { %6117 = vmatpush2.bf16.msra.mxu1 %v7905_v21  ;;  %6075 = vmatprep.subr.bf16.mxu0 %v7910_v24  ;;  %v7934_v21 = vld [vmem:[#allocation12 + $0xb38] ss:$28 sps:$4 sm:$0xff]   ;;  %v7938_v24 = vld [vmem:[#allocation12 + $0xc0] ss:$28 sps:$4 sm:$0xff]  }
 0x471   :  { %6118 = vmatprep.subr.bf16.mxu1 %v7913_v33  ;;  %v7942_v33 = vld [vmem:[#allocation12 + $0x248] ss:$28 sps:$4 sm:$0xff]  }
 0x473   :  { %6076 = vmatpush2.bf16.msra.mxu0 %v7908_v36  ;;  %v7939_v36 = vld [vmem:[#allocation12 + $0xb00] ss:$28 sps:$4 sm:$0xff]  }
 0x474   :  { %6119 = vmatpush2.bf16.msra.mxu1 %v7911_v38  ;;  %6131 = vmatprep.subr.bf16.mxu0 %v7916_v43  ;;  %v7946_v38 = vld [vmem:[#allocation12 + $0xacc] ss:$28 sps:$4 sm:$0xff]  }
 0x475   :  { %7160 = vmatprep.subr.bf16.mxu1 %v7917_v46  ;;  %v7947_v43 = vld [vmem:[#allocation12 + $0x210] ss:$28 sps:$4 sm:$0xff]   ;;  %v7944_v46 = vld [vmem:[#allocation12 + $0xac8] ss:$28 sps:$4 sm:$0xff]  }
 0x476   :  { %6078 = vmatmul.mubr.bf16.vlgmr.msra.gmra.mxu0 %v8415_v41  ;;  %v5821_v62 = vpop.f32.mrf.mxu0 }
 0x477   :  { %6121 = vmatmul.mubr.bf16.vlgmr.msra.gmra.mxu1 %v8429_v10  ;;  %v5822_v31 = vadd.f32 %v5821_v62, %v5779_v60  ;;  %6132 = vmatpush1.bf16.msra.mxu0 %v7914_v29  ;;  %v7951_v29 = vld [vmem:[#allocation12 + $0xa94] ss:$28 sps:$4 sm:$0xff]   ;;  %v7962_v62 = vld [vmem:[#allocation12 + $0xa28] ss:$28 sps:$4 sm:$0xff]  }
 0x478   :  { %6163 = vmatprep.mubr.bf16.mxu0 %v8440_v19  ;;  %7161 = vmatpush3.bf16.msra.mxu1 %v7918_v30  ;;  %v5823_v53 = vpop.f32.mrf.mxu0  ;;  %v7953_v30 = vld [vmem:[#allocation12 + $0x18] ss:$28 sps:$4 sm:$0xff]  }
 0x479   :  { %8026 = vtanh.f32 %v5822_v31  ;;  %6206 = vmatprep.mubr.bf16.mxu1 %v8397_v54  ;;  %v5824_v3 = vadd.f32 %v5823_v53, %v5781_v0  ;;  %6133 = vmatprep.subr.bf16.mxu0 %v7921_v28  ;;  %v7929_v54 = vld [vmem:[#allocation12 + $0xb70] ss:$28 sps:$4 sm:$0xff]   ;;  %v7954_v60 = vld [vmem:[#allocation12 + $0xdd8] ss:$28 sps:$4 sm:$0xff]   ;;  %v7958_v28 = vld [vmem:[#allocation12 + $0x8a0] ss:$28 sps:$4 sm:$0xff]  }
 0x47a   :  { %7162 = vmatprep.subr.bf16.mxu1 %v7922_v40  ;;  %v5825_v5 = vpop.f32.mrf.mxu0  ;;  %v7959_v40 = vld [vmem:[#allocation12 + $0xda0] ss:$28 sps:$4 sm:$0xff]   ;;  %v7966_v0 = vld [vmem:[#allocation12 + $0xd6c] ss:$28 sps:$4 sm:$0xff]   ;;  %v7971_v53 = vld [vmem:[#allocation12 + $0xd34] ss:$28 sps:$4 sm:$0xff]  }
 0x47b   :  { %8028 = vtanh.f32 %v5824_v3  ;;  %v5826_v7 = vadd.f32 %v5825_v5, %v5783_v22  ;;  %6134 = vmatpush1.bf16.msra.mxu0 %v7919_v49  ;;  %v7967_v31 = vld [vmem:[#allocation12 + $0x9f0] ss:$28 sps:$4 sm:$0xff]   ;;  %v7964_v49 = vld [vmem:[#allocation12 + $0xd68] ss:$28 sps:$4 sm:$0xff]   ;;  %v7974_v22 = vld [vmem:[#allocation12 + $0xcf8] ss:$28 sps:$4 sm:$0xff]  }
 0x47c   :  { %7163 = vmatpush3.bf16.msra.mxu1 %v7923_v55  ;;  %v5827_v11 = vpop.f32.mrf.mxu0  ;;  %6135 = vmatprep.subr.bf16.mxu0 %v7926_v1  ;;  %v7972_v55 = vld [vmem:[#allocation12 + $0x9b8] ss:$28 sps:$4 sm:$0xff]   ;;  %v7978_v3 = vld [vmem:[#allocation12 + $0x7c0] ss:$28 sps:$4 sm:$0xff]   ;;  %v7982_v5 = vld [vmem:[#allocation12 + $0x948] ss:$28 sps:$4 sm:$0xff]  }
 0x47d   :  { %8030 = vtanh.f32 %v5826_v7  ;;  %v5828_v14 = vadd.f32 %v5827_v11, %v5785_v6  ;;  %7164 = vmatprep.subr.bf16.mxu1 %v7927_v4  ;;  %v7973_v1 = vld [vmem:[#allocation12 + $0x7f8] ss:$28 sps:$4 sm:$0xff]   ;;  %v7981_v4 = vld [vmem:[#allocation12 + $0xcc4] ss:$28 sps:$4 sm:$0xff]   ;;  %v7987_v11 = vld [vmem:[#allocation12 + $0x910] ss:$28 sps:$4 sm:$0xff]  }
 0x47e   :  { %v7979_v6 = vld [vmem:[#allocation12 + $0xcc0] ss:$28 sps:$4 sm:$0xff]   ;;  %v7983_v7 = vld [vmem:[#allocation12 + $0x788] ss:$28 sps:$4 sm:$0xff]  }
 0x47f   :  { %8032 = vtanh.f32 %v5828_v14  ;;  %6136 = vmatpush1.bf16.msra.mxu0 %v7924_v9  ;;  %v7986_v9 = vld [vmem:[#allocation12 + $0xc8c] ss:$28 sps:$4 sm:$0xff]   ;;  %v7991_v14 = vld [vmem:[#allocation12 + $0xc54] ss:$28 sps:$4 sm:$0xff]  }
 0x480   :  { %7165 = vmatpush3.bf16.msra.mxu1 %v7928_v12  ;;  %6137 = vmatprep.subr.bf16.mxu0 %v7931_v13  ;;  %v7984_v12 = vld [vmem:[#allocation12 + $0xc88] ss:$28 sps:$4 sm:$0xff]   ;;  %v7988_v13 = vld [vmem:[#allocation12 + $0x750] ss:$28 sps:$4 sm:$0xff]  }
 0x481   :  { %7166 = vmatprep.subr.bf16.mxu1 %v7932_v16  ;;  %v7992_v16 = vld [vmem:[#allocation12 + $0x8d8] ss:$28 sps:$4 sm:$0xff]  }
 0x483   :  { %6138 = vmatpush1.bf16.msra.mxu0 %v7929_v54  ;;  %v7989_v54 = vld [vmem:[#allocation12 + $0xc50] ss:$28 sps:$4 sm:$0xff]  }
 0x484   :  { %7167 = vmatpush3.bf16.msra.mxu1 %v7933_v17  ;;  %6139 = vmatprep.subr.bf16.mxu0 %v7936_v18  ;;  %v7993_v17 = vld [vmem:[#allocation12 + $0x718] ss:$28 sps:$4 sm:$0xff]   ;;  %v7994_v18 = vld [vmem:[#allocation12 + $0x6e0] ss:$28 sps:$4 sm:$0xff]  }
 0x485   :  { %7168 = vmatprep.subr.bf16.mxu1 %v7937_v20  ;;  %v7995_v20 = vld [vmem:[#allocation12 + $0x520] ss:$28 sps:$4 sm:$0xff]  }
 0x486   :  { %v8027_v34 = vpop.eup %8026 }
 0x487   :  { %6352 = vst [vmem:[%s8539_s9] sm:$0xff] %v8027_v34  ;;  %6140 = vmatpush1.bf16.msra.mxu0 %v7934_v21  ;;  %v7996_v21 = vld [vmem:[#allocation12 + $0x6a8] ss:$28 sps:$4 sm:$0xff]   ;;  %v8000_v34 = vld [vmem:[#allocation12 + $0x638] ss:$28 sps:$4 sm:$0xff]  }
 0x488   :  { %v8029_v37 = vpop.eup %8028  ;;  %7169 = vmatpush3.bf16.msra.mxu1 %v7938_v24  ;;  %6141 = vmatprep.subr.bf16.mxu0 %v7941_v32  ;;  %v7997_v24 = vld [vmem:[#allocation12 + $0x4e8] ss:$28 sps:$4 sm:$0xff]   ;;  %v7998_v32 = vld [vmem:[#allocation12 + $0x670] ss:$28 sps:$4 sm:$0xff]  }
 0x489   :  { %6353 = vst [vmem:[%s8539_s9 + $0x8] sm:$0xff] %v8029_v37  ;;  %7170 = vmatprep.subr.bf16.mxu1 %v7942_v33  ;;  %v7999_v33 = vld [vmem:[#allocation12 + $0x4b0] ss:$28 sps:$4 sm:$0xff]   ;;  %v8002_v37 = vld [vmem:[#allocation12 + $0x600] ss:$28 sps:$4 sm:$0xff]  }
 0x48a   :  { %v8031_v44 = vpop.eup %8030 }
 0x48b   :  { %6359 = vst [vmem:[%s8539_s9 + $0x38] sm:$0xff] %v8031_v44  ;;  %6142 = vmatpush1.bf16.msra.mxu0 %v7939_v36  ;;  %v8001_v36 = vld [vmem:[#allocation12 + $0x478] ss:$28 sps:$4 sm:$0xff]  }
 0x48c   :  { %v8033_v47 = vpop.eup %8032  ;;  %7171 = vmatpush3.bf16.msra.mxu1 %v7943_v35  ;;  %6143 = vmatprep.subr.bf16.mxu0 %v7946_v38  ;;  %v8003_v35 = vld [vmem:[#allocation12 + $0x440] ss:$28 sps:$4 sm:$0xff]   ;;  %v8004_v38 = vld [vmem:[#allocation12 + $0x5c8] ss:$28 sps:$4 sm:$0xff]   ;;  %v8008_v44 = vld [vmem:[#allocation12 + $0x558] ss:$28 sps:$4 sm:$0xff]  }
 0x48d   :  { %6360 = vst [vmem:[%s8539_s9 + $0x40] sm:$0xff] %v8033_v47  ;;  %7172 = vmatprep.subr.bf16.mxu1 %v7947_v43  ;;  %v8006_v43 = vld [vmem:[#allocation12 + $0x590] ss:$28 sps:$4 sm:$0xff]   ;;  %v8010_v47 = vld [vmem:[#allocation12 + $0xde0] ss:$28 sps:$4 sm:$0xff]  }
 0x48f   :  { %6144 = vmatpush1.bf16.msra.mxu0 %v7944_v46  ;;  %v8009_v46 = vld [vmem:[#allocation12 + $0x398] ss:$28 sps:$4 sm:$0xff]  }
 0x490   :  { %7173 = vmatpush3.bf16.msra.mxu1 %v7948_v48  ;;  %6145 = vmatprep.subr.bf16.mxu0 %v7951_v29  ;;  %v8011_v48 = vld [vmem:[#allocation12 + $0xc20] ss:$28 sps:$4 sm:$0xff]   ;;  %v8012_v29 = vld [vmem:[#allocation12 + $0xda8] ss:$28 sps:$4 sm:$0xff]  }
 0x491   :  { %7174 = vmatprep.subr.bf16.mxu1 %v7952_v52  ;;  %v8013_v52 = vld [vmem:[#allocation12 + $0xbe8] ss:$28 sps:$4 sm:$0xff]  }
 0x493   :  { %6146 = vmatpush1.bf16.msra.mxu0 %v7949_v56  ;;  %v8014_v56 = vld [vmem:[#allocation12 + $0xd70] ss:$28 sps:$4 sm:$0xff]  }
 0x494   :  { %7175 = vmatpush3.bf16.msra.mxu1 %v7953_v30  ;;  %6147 = vmatprep.subr.bf16.mxu0 %v7956_v39  ;;  %v8015_v30 = vld [vmem:[#allocation12 + $0xbb0] ss:$28 sps:$4 sm:$0xff]   ;;  %v8016_v39 = vld [vmem:[#allocation12 + $0xd38] ss:$28 sps:$4 sm:$0xff]  }
 0x495   :  { %7204 = vmatprep.subr.bf16.mxu1 %v7957_v57  ;;  %v8017_v57 = vld [vmem:[#allocation12 + $0xb78] ss:$28 sps:$4 sm:$0xff]  }
 0x497   :  { %6207 = vmatmul.mubr.bf16.vlgmr.msra.gmra.mxu1 %v8406_v51  ;;  %6148 = vmatpush2.bf16.msra.mxu0 %v7954_v60  ;;  %v7969_v51 = vld [vmem:[#allocation12 + $0xd30] ss:$28 sps:$4 sm:$0xff]   ;;  %v5864_v60 = vpop.f32.mrf.mxu1 }
 0x498   :  { %7205 = vmatpush3.bf16.msra.mxu1 %v7958_v28  ;;  %6288 = vmatprep.mubr.bf16.mxu1 %v8427_v8  ;;  %v7977_v8 = vld [vmem:[#allocation12 + $0x980] ss:$28 sps:$4 sm:$0xff]  }
 0x499   :  { %6149 = vmatprep.subr.bf16.mxu0 %v7961_v61  ;;  %7206 = vmatprep.subr.bf16.mxu1 %v7962_v62  ;;  %v8018_v28 = vld [vmem:[#allocation12 + $0xd00] ss:$28 sps:$4 sm:$0xff]   ;;  %v5866_v62 = vpop.f32.mrf.mxu1 }
 0x49a   :  { %v8019_v61 = vld [vmem:[#allocation12 + $0xb40] ss:$28 sps:$4 sm:$0xff]  }
 0x49b   :  { %6150 = vmatpush2.bf16.msra.mxu0 %v7959_v40  ;;  %v8021_v40 = vld [vmem:[#allocation12 + $0xb08] ss:$28 sps:$4 sm:$0xff]  }
 0x49c   :  { %7207 = vmatpush3.bf16.msra.mxu1 %v7963_v63  ;;  %6151 = vmatprep.subr.bf16.mxu0 %v7966_v0  ;;  %v8022_v0 = vld [vmem:[#allocation12 + $0xc90] ss:$28 sps:$4 sm:$0xff]  }
 0x49d   :  { %7208 = vmatprep.subr.bf16.mxu1 %v7967_v31  ;;  %v3330_v31 = vrot.slane %v8457_v15, %v8348_v59 }
 0x49f   :  { %6152 = vmatpush2.bf16.msra.mxu0 %v7964_v49  ;;  %v8023_v49 = vld [vmem:[#allocation12 + $0xad0] ss:$28 sps:$4 sm:$0xff]  }
 0x4a0   :  { %7209 = vmatpush3.bf16.msra.mxu1 %v7968_v50  ;;  %6153 = vmatprep.subr.bf16.mxu0 %v7971_v53 }
 0x4a1   :  { %7210 = vmatprep.subr.bf16.mxu1 %v7972_v55  ;;  %v8024_v55 = vld [vmem:[#allocation12 + $0xc58] ss:$28 sps:$4 sm:$0xff]  }
 0x4a3   :  { %6154 = vmatpush2.bf16.msra.mxu0 %v7969_v51  ;;  %v3334_v51 = vrot.slane %v8457_v15, %v8345_v58 }
 0x4a4   :  { %7211 = vmatpush3.bf16.msra.mxu1 %v7973_v1  ;;  %6155 = vmatprep.subr.bf16.mxu0 %v7976_v2  ;;  %v5865_v2 = vadd.f32 %v5864_v60, %v3330_v31 }
 0x4a5   :  { %7212 = vmatprep.subr.bf16.mxu1 %v7977_v8  ;;  %v8025_v8 = vld [vmem:[#allocation12 + $0xa98] ss:$28 sps:$4 sm:$0xff]  }
 0x4a7   :  { %6156 = vmatpush2.bf16.msra.mxu0 %v7974_v22 }
 0x4a8   :  { %7213 = vmatpush3.bf16.msra.mxu1 %v7978_v3  ;;  %6157 = vmatprep.subr.bf16.mxu0 %v7981_v4  ;;  %v5867_v3 = vadd.f32 %v5866_v62, %v3334_v51 }
 0x4a9   :  { %7214 = vmatprep.subr.bf16.mxu1 %v7982_v5 }
 0x4ab   :  { %6158 = vmatpush2.bf16.msra.mxu0 %v7979_v6 }
 0x4ac   :  { %7215 = vmatpush3.bf16.msra.mxu1 %v7983_v7  ;;  %6159 = vmatprep.subr.bf16.mxu0 %v7986_v9 }
 0x4ad   :  { %7216 = vmatprep.subr.bf16.mxu1 %v7987_v11 }
 0x4af   :  { %6160 = vmatpush2.bf16.msra.mxu0 %v7984_v12 }
 0x4b0   :  { %7217 = vmatpush3.bf16.msra.mxu1 %v7988_v13  ;;  %6161 = vmatprep.subr.bf16.mxu0 %v7991_v14 }
 0x4b1   :  { %7218 = vmatprep.subr.bf16.mxu1 %v7992_v16 }
 0x4b3   :  { %6162 = vmatpush2.bf16.msra.mxu0 %v7989_v54 }
 0x4b4   :  { %7219 = vmatpush3.bf16.msra.mxu1 %v7993_v17  ;;  %7182 = vmatprep.subr.bf16.mxu0 %v7994_v18 }
 0x4b6   :  { %6164 = vmatmul.mubr.bf16.vlgmr.msra.gmra.mxu0 %v8442_v23  ;;  %v5907_v63 = vpop.f32.mrf.mxu0 }
 0x4b7   :  { %6289 = vmatmul.mubr.bf16.vlgmr.msra.gmra.mxu1 %v8429_v10  ;;  %7183 = vmatpush3.bf16.msra.mxu0 %v7995_v20  ;;  %v8005_v10 = vld [vmem:[#allocation12 + $0x408] ss:$28 sps:$4 sm:$0xff]   ;;  %v5908_v4 = vadd.f32 %v5907_v63, %v5865_v2 }
 0x4b8   :  { %6247 = vmatprep.mubr.bf16.mxu0 %v8413_v42  ;;  %7184 = vmatprep.subr.bf16.mxu0 %v7996_v21  ;;  %v8007_v42 = vld [vmem:[#allocation12 + $0x3d0] ss:$28 sps:$4 sm:$0xff]   ;;  %v5909_v53 = vpop.f32.mrf.mxu0 }
 0x4b9   :  { %v5910_v59 = vadd.f32 %v5909_v53, %v5867_v3 }
 0x4ba   :  { %v5911_v22 = vpop.f32.mrf.mxu0 }
 0x4bb   :  { %7185 = vmatpush3.bf16.msra.mxu0 %v7997_v24 }
 0x4bc   :  { %7186 = vmatprep.subr.bf16.mxu0 %v7998_v32  ;;  %v5913_v7 = vpop.f32.mrf.mxu0 }
 0x4bf   :  { %7187 = vmatpush3.bf16.msra.mxu0 %v7999_v33 }
 0x4c0   :  { %7188 = vmatprep.subr.bf16.mxu0 %v8000_v34 }
 0x4c3   :  { %7189 = vmatpush3.bf16.msra.mxu0 %v8001_v36 }
 0x4c4   :  { %7190 = vmatprep.subr.bf16.mxu0 %v8002_v37 }
 0x4c7   :  { %7191 = vmatpush3.bf16.msra.mxu0 %v8003_v35 }
 0x4c8   :  { %7192 = vmatprep.subr.bf16.mxu0 %v8004_v38 }
 0x4cb   :  { %7193 = vmatpush3.bf16.msra.mxu0 %v8005_v10 }
 0x4cc   :  { %7194 = vmatprep.subr.bf16.mxu0 %v8006_v43 }
 0x4cf   :  { %7195 = vmatpush3.bf16.msra.mxu0 %v8007_v42 }
 0x4d0   :  { %7196 = vmatprep.subr.bf16.mxu0 %v8008_v44 }
 0x4d3   :  { %7197 = vmatpush3.bf16.msra.mxu0 %v8009_v46  ;;  %v3338_v46 = vrot.slane %v8457_v15, %v1103_v25 }
 0x4d4   :  { %7226 = vmatprep.subr.bf16.mxu0 %v8010_v47 }
 0x4d6   :  { %6248 = vmatmul.mubr.bf16.vlgmr.msra.gmra.mxu0 %v8415_v41  ;;  %v8020_v41 = vld [vmem:[#allocation12 + $0xcc8] ss:$28 sps:$4 sm:$0xff]  }
 0x4d7   :  { %7227 = vmatpush3.bf16.msra.mxu0 %v8011_v48  ;;  %6329 = vmatprep.mubr.bf16.mxu0 %v8440_v19  ;;  %v5868_v19 = vpop.f32.mrf.mxu1 }
 0x4d8   :  { %7228 = vmatprep.subr.bf16.mxu0 %v8012_v29  ;;  %v5869_v6 = vadd.f32 %v5868_v19, %v3330_v31  ;;  %v3342_v29 = vrot.slane %v8457_v15, %v1107_v26 }
 0x4d9   :  { %v5870_v50 = vpop.f32.mrf.mxu1 }
 0x4da   :  { %v5871_v9 = vadd.f32 %v5870_v50, %v3334_v51  ;;  %v5912_v12 = vadd.f32 %v5911_v22, %v5869_v6 }
 0x4db   :  { %7229 = vmatpush3.bf16.msra.mxu0 %v8013_v52  ;;  %v5950_v1 = vpop.f32.mrf.mxu1 }
 0x4dc   :  { %7230 = vmatprep.subr.bf16.mxu0 %v8014_v56  ;;  %v5951_v11 = vadd.f32 %v5950_v1, %v5908_v4  ;;  %v5914_v16 = vadd.f32 %v5913_v7, %v5871_v9 }
 0x4dd   :  { %v5952_v5 = vpop.f32.mrf.mxu1 }
 0x4de   :  { %v5953_v58 = vadd.f32 %v5952_v5, %v5910_v59 }
 0x4df   :  { %7231 = vmatpush3.bf16.msra.mxu0 %v8015_v30  ;;  %v5954_v13 = vpop.f32.mrf.mxu1 }
 0x4e0   :  { %7232 = vmatprep.subr.bf16.mxu0 %v8016_v39  ;;  %v5955_v18 = vadd.f32 %v5954_v13, %v5912_v12 }
 0x4e1   :  { %v5956_v21 = vpop.f32.mrf.mxu1 }
 0x4e2   :  { %v5957_v32 = vadd.f32 %v5956_v21, %v5914_v16  ;;  %v3346_v16 = vrot.slane %v8457_v15, %v1111_v45 }
 0x4e3   :  { %7233 = vmatpush3.bf16.msra.mxu0 %v8017_v57 }
 0x4e4   :  { %7234 = vmatprep.subr.bf16.mxu0 %v8018_v28 }
 0x4e7   :  { %7235 = vmatpush3.bf16.msra.mxu0 %v8019_v61 }
 0x4e8   :  { %7236 = vmatprep.subr.bf16.mxu0 %v8020_v41 }
 0x4eb   :  { %7237 = vmatpush3.bf16.msra.mxu0 %v8021_v40 }
 0x4ec   :  { %7238 = vmatprep.subr.bf16.mxu0 %v8022_v0 }
 0x4ef   :  { %7239 = vmatpush3.bf16.msra.mxu0 %v8023_v49 }
 0x4f0   :  { %7240 = vmatprep.subr.bf16.mxu0 %v8024_v55 }
 0x4f3   :  { %7241 = vmatpush3.bf16.msra.mxu0 %v8025_v8 }
 0x4f6   :  { %v5993_v14 = vpop.f32.mrf.mxu0  ;;  %6330 = vmatmul.mubr.bf16.vlgmr.msra.gmra.mxu0 %v8442_v23 }
 0x4f7   :  { %v5994_v54 = vadd.f32 %v5993_v14, %v5951_v11  ;;  %v6036_v10 = vpop.f32.mrf.mxu1 }
 0x4f8   :  { %v5995_v17 = vpop.f32.mrf.mxu0  ;;  %v6037_v56 = vadd.f32 %v6036_v10, %v3338_v46 }
 0x4f9   :  { %8034 = vtanh.f32 %v5994_v54  ;;  %v5996_v20 = vadd.f32 %v5995_v17, %v5953_v58  ;;  %v6038_v43 = vpop.f32.mrf.mxu1 }
 0x4fa   :  { %v5997_v24 = vpop.f32.mrf.mxu0  ;;  %v6039_v39 = vadd.f32 %v6038_v43, %v3342_v29 }
 0x4fb   :  { %8036 = vtanh.f32 %v5996_v20  ;;  %v5998_v33 = vadd.f32 %v5997_v24, %v5955_v18  ;;  %v6040_v42 = vpop.f32.mrf.mxu1 }
 0x4fc   :  { %v5999_v34 = vpop.f32.mrf.mxu0  ;;  %v6041_v28 = vadd.f32 %v6040_v42, %v3338_v46 }
 0x4fd   :  { %8038 = vtanh.f32 %v5998_v33  ;;  %v6000_v36 = vadd.f32 %v5999_v34, %v5957_v32  ;;  %v6042_v47 = vpop.f32.mrf.mxu1 }
 0x4fe   :  { %v6043_v41 = vadd.f32 %v6042_v47, %v3342_v29 }
 0x4ff   :  { %8040 = vtanh.f32 %v6000_v36 }
 0x506   :  { %v8035_v37 = vpop.eup %8034 }
 0x507   :  { %6354 = vst [vmem:[%s8539_s9 + $0x10] sm:$0xff] %v8035_v37 }
 0x508   :  { %v8037_v23 = vpop.eup %8036 }
 0x509   :  { %6355 = vst [vmem:[%s8539_s9 + $0x18] sm:$0xff] %v8037_v23 }
 0x50a   :  { %v8039_v35 = vpop.eup %8038 }
 0x50b   :  { %6361 = vst [vmem:[%s8539_s9 + $0x48] sm:$0xff] %v8039_v35 }
 0x50c   :  { %v8041_v38 = vpop.eup %8040 }
 0x50d   :  { %6362 = vst [vmem:[%s8539_s9 + $0x50] sm:$0xff] %v8041_v38 }
 0x536   :  { %v6079_v44 = vpop.f32.mrf.mxu0 }
 0x537   :  { %v6122_v52 = vpop.f32.mrf.mxu1  ;;  %v6080_v57 = vadd.f32 %v6079_v44, %v6037_v56 }
 0x538   :  { %v6081_v48 = vpop.f32.mrf.mxu0 }
 0x539   :  { %v6124_v60 = vpop.f32.mrf.mxu1  ;;  %v6082_v61 = vadd.f32 %v6081_v48, %v6039_v39  ;;  %v6123_v40 = vadd.f32 %v6122_v52, %v6080_v57 }
 0x53a   :  { %v6083_v30 = vpop.f32.mrf.mxu0 }
 0x53b   :  { %v6084_v19 = vadd.f32 %v6083_v30, %v6041_v28  ;;  %v6126_v63 = vpop.f32.mrf.mxu1  ;;  %v6125_v0 = vadd.f32 %v6124_v60, %v6082_v61 }
 0x53c   :  { %v6085_v62 = vpop.f32.mrf.mxu0 }
 0x53d   :  { %v6086_v31 = vadd.f32 %v6085_v62, %v6043_v41  ;;  %v6127_v53 = vadd.f32 %v6126_v63, %v6084_v19  ;;  %v6128_v55 = vpop.f32.mrf.mxu1 }
 0x53f   :  { %v6129_v1 = vadd.f32 %v6128_v55, %v6086_v31 }
 0x557   :  { %v7176_v59 = vpop.f32.mrf.mxu1 }
 0x559   :  { %v7177_v7 = vpop.f32.mrf.mxu1 }
 0x55a   :  { %v7178_v54 = vadd.f32 %v7177_v7, %v7176_v59 }
 0x55b   :  { %v7179_v9 = vpop.f32.mrf.mxu1 }
 0x55c   :  { %v6209_v21 = vadd.f32 %v7178_v54, %v3346_v16 }
 0x55d   :  { %v7180_v12 = vpop.f32.mrf.mxu1 }
 0x55e   :  { %v7181_v24 = vadd.f32 %v7180_v12, %v7179_v9 }
 0x560   :  { %v6212_v37 = vadd.f32 %v7181_v24, %v3346_v16 }
 0x576   :  { %v6165_v25 = vpop.f32.mrf.mxu0 }
 0x577   :  { %v6166_v49 = vadd.f32 %v6165_v25, %v6123_v40  ;;  %v7220_v14 = vpop.f32.mrf.mxu1 }
 0x578   :  { %v6167_v50 = vpop.f32.mrf.mxu0 }
 0x579   :  { %8042 = vtanh.f32 %v6166_v49  ;;  %v6168_v26 = vadd.f32 %v6167_v50, %v6125_v0  ;;  %v7221_v17 = vpop.f32.mrf.mxu1 }
 0x57a   :  { %v6169_v51 = vpop.f32.mrf.mxu0  ;;  %v7222_v23 = vadd.f32 %v7221_v17, %v7220_v14 }
 0x57b   :  { %8044 = vtanh.f32 %v6168_v26  ;;  %v6170_v2 = vadd.f32 %v6169_v51, %v6127_v53  ;;  %v7223_v32 = vpop.f32.mrf.mxu1 }
 0x57c   :  { %v6171_v8 = vpop.f32.mrf.mxu0 }
 0x57d   :  { %8046 = vtanh.f32 %v6170_v2  ;;  %v6172_v22 = vadd.f32 %v6171_v8, %v6129_v1  ;;  %v7224_v35 = vpop.f32.mrf.mxu1 }
 0x57e   :  { %v7225_v44 = vadd.f32 %v7224_v35, %v7223_v32 }
 0x57f   :  { %8048 = vtanh.f32 %v6172_v22 }
 0x586   :  { %v8043_v3 = vpop.eup %8042 }
 0x587   :  { %6356 = vst [vmem:[%s8539_s9 + $0x20] sm:$0xff] %v8043_v3 }
 0x588   :  { %v8045_v4 = vpop.eup %8044 }
 0x589   :  { %6357 = vst [vmem:[%s8539_s9 + $0x28] sm:$0xff] %v8045_v4 }
 0x58a   :  { %v8047_v5 = vpop.eup %8046 }
 0x58b   :  { %6363 = vst [vmem:[%s8539_s9 + $0x58] sm:$0xff] %v8047_v5 }
 0x58c   :  { %v8049_v6 = vpop.eup %8048 }
 0x58d   :  { %6364 = vst [vmem:[%s8539_s9 + $0x60] sm:$0xff] %v8049_v6 }
 0x596   :  { %v7198_v11 = vpop.f32.mrf.mxu0 }
 0x598   :  { %v7199_v13 = vpop.f32.mrf.mxu0 }
 0x599   :  { %v7200_v18 = vadd.f32 %v7199_v13, %v7198_v11 }
 0x59a   :  { %v7201_v58 = vpop.f32.mrf.mxu0 }
 0x59b   :  { %v6250_v33 = vadd.f32 %v7200_v18, %v6209_v21 }
 0x59c   :  { %v7202_v20 = vpop.f32.mrf.mxu0 }
 0x59d   :  { %v7203_v34 = vadd.f32 %v7202_v20, %v7201_v58  ;;  %v6291_v43 = vadd.f32 %v7222_v23, %v6250_v33 }
 0x59f   :  { %v6253_v10 = vadd.f32 %v7203_v34, %v6212_v37 }
 0x5a1   :  { %v6294_v46 = vadd.f32 %v7225_v44, %v6253_v10 }
 0x5b6   :  { %v7242_v36 = vpop.f32.mrf.mxu0 }
 0x5b8   :  { %v7243_v38 = vpop.f32.mrf.mxu0 }
 0x5b9   :  { %v7244_v42 = vadd.f32 %v7243_v38, %v7242_v36 }
 0x5ba   :  { %v7245_v27 = vpop.f32.mrf.mxu0 }
 0x5bb   :  { %v6332_v45 = vadd.f32 %v7244_v42, %v6291_v43 }
 0x5bc   :  { %v7246_v15 = vpop.f32.mrf.mxu0 }
 0x5bd   :  { %8050 = vtanh.f32 %v6332_v45  ;;  %v7247_v47 = vadd.f32 %v7246_v15, %v7245_v27 }
 0x5bf   :  { %v6335_v48 = vadd.f32 %v7247_v47, %v6294_v46 }
 0x5c1   :  { %8052 = vtanh.f32 %v6335_v48 }
 0x5ca   :  { %v8051_v29 = vpop.eup %8050 }
 0x5cb   :  { %6358 = vst [vmem:[%s8539_s9 + $0x30] sm:$0xff] %v8051_v29 }
 0x5ce   :  { %v8053_v52 = vpop.eup %8052 }
 0x5cf   :  { %6365 = vst [vmem:[%s8539_s9 + $0x68] sm:$0xff] %v8053_v52 }
 0x5d0   :  { %6370 = vsyncpa [#allocation3], 1 }
 0x5d1   :  { %6371 = vsyncpa [#allocation5], 1 }
 0x5d2   :  { %6372 = vsyncpa [#allocation8], 1 }
 0x5d3   :  { %6373 = vsyncpa [#allocation11], 1 }
 0x5d4   :  { %6374 = vsyncpa [#allocation14], 1 }

</bundles_post_ra>
